<compile_context>
chip_gen: v7x
topology: tpu7x:2x2x1
jax: 0.10.0
libtpu: 0.0.40
codegen_flags: <defaults>
</compile_context>

<pallas_src>
import math
import functools

import jax
import jax.numpy as jnp
from jax import lax
from jax.experimental import pallas as pl
from jax.experimental.pallas import tpu as pltpu


# ----------------------------- in-kernel helpers ----------------------------

def _layernorm(y, g, b):
    """LayerNorm over last dim (biased variance, eps=1e-5, like torch)."""
    mu = jnp.mean(y, axis=-1, keepdims=True)
    yc = y - mu
    var = jnp.mean(yc * yc, axis=-1, keepdims=True)
    return yc * lax.rsqrt(var + 1e-5) * g + b


# ----------------------------- Pallas kernels ------------------------------

def _embed_kernel(xin_ref, w_ref, pe_ref, o_ref):
    # xin: [L, 3C+Cm]  (im2col'd circular conv + time features, concatenated)
    # w  : [3C+Cm, D]  (token conv weight and temporal weight, concatenated; no bias)
    o_ref[0] = (jnp.dot(xin_ref[0], w_ref[...], preferred_element_type=jnp.float32)
                + pe_ref[...]).astype(o_ref.dtype)


def pallas_embedding(x_in, w, pe):
    B, L, Cin = x_in.shape
    D = w.shape[1]
    return pl.pallas_call(
        _embed_kernel,
        out_shape=jax.ShapeDtypeStruct((B, L, D), jnp.float32),
        grid=(B,),
        in_specs=[
            pl.BlockSpec((1, L, Cin), lambda i: (i, 0, 0)),
            pl.BlockSpec((Cin, D), lambda i: (0, 0)),
            pl.BlockSpec((L, D), lambda i: (0, 0)),
        ],
        out_specs=pl.BlockSpec((1, L, D), lambda i: (i, 0, 0)),
        compiler_params=pltpu.CompilerParams(dimension_semantics=("parallel",)),
    )(x_in, w, pe)


def _mha_ln_kernel(xq_ref, xkv_ref, wq_ref, wk_ref, wv_ref, bq_ref, bk_ref, bv_ref,
                   wo_ref, bo_ref, g_ref, b_ref, o_ref, *, n_heads, causal):
    """Fused multi-head attention + residual + LayerNorm for one batch element.

    Per-head weights are laid out [H, D, E] so every op inside the kernel is a plain
    2-D matmul / elementwise op (no in-register transposes or lane-offset slicing).
    """
    xq = xq_ref[0]                      # [Lq, D]
    xkv = xkv_ref[0]                    # [Lk, D]
    Lq, D = xq.shape
    Lk = xkv.shape[0]
    E = D // n_heads
    scale = 1.0 / math.sqrt(E)

    if causal:
        row = lax.broadcasted_iota(jnp.int32, (Lq, Lk), 0)
        col = lax.broadcasted_iota(jnp.int32, (Lq, Lk), 1)

    attn = jnp.zeros((Lq, D), jnp.float32)
    for h in range(n_heads):            # static unroll, H is tiny
        qh = jnp.dot(xq, wq_ref[h], preferred_element_type=jnp.float32) + bq_ref[h]
        kh = jnp.dot(xkv, wk_ref[h], preferred_element_type=jnp.float32) + bk_ref[h]
        vh = jnp.dot(xkv, wv_ref[h], preferred_element_type=jnp.float32) + bv_ref[h]
        # scores = (q @ k^T) * scale, contracting the head dim of both operands
        s = lax.dot_general(qh, kh, (((1,), (1,)), ((), ())),
                            preferred_element_type=jnp.float32) * scale     # [Lq, Lk]
        if causal:
            s = jnp.where(col > row, -jnp.inf, s)   # scale first, then mask
        m = jnp.max(s, axis=-1, keepdims=True)
        p = jnp.exp(s - m)
        p = p * pl.reciprocal(jnp.sum(p, axis=-1, keepdims=True), approx=True)
        oh = jnp.dot(p, vh, preferred_element_type=jnp.float32)             # [Lq, E]
        # accumulate the output projection head-by-head: sum_h oh @ Wo[h]
        attn = attn + jnp.dot(oh, wo_ref[h], preferred_element_type=jnp.float32)

    y = xq + attn + bo_ref[...]                      # residual + out-proj bias
    o_ref[0] = _layernorm(y, g_ref[...], b_ref[...]).astype(o_ref.dtype)


def pallas_mha_ln(x_q, x_kv, ap, ln_g, ln_b, n_heads, causal):
    B, Lq, D = x_q.shape
    Lk = x_kv.shape[1]
    E = D // n_heads
    kern = functools.partial(_mha_ln_kernel, n_heads=n_heads, causal=causal)
    return pl.pallas_call(
        kern,
        out_shape=jax.ShapeDtypeStruct((B, Lq, D), jnp.float32),
        grid=(B,),
        in_specs=[
            pl.BlockSpec((1, Lq, D), lambda i: (i, 0, 0)),
            pl.BlockSpec((1, Lk, D), lambda i: (i, 0, 0)),
            pl.BlockSpec((n_heads, D, E), lambda i: (0, 0, 0)),   # q_W
            pl.BlockSpec((n_heads, D, E), lambda i: (0, 0, 0)),   # k_W
            pl.BlockSpec((n_heads, D, E), lambda i: (0, 0, 0)),   # v_W
            pl.BlockSpec((n_heads, 1, E), lambda i: (0, 0, 0)),   # q_b
            pl.BlockSpec((n_heads, 1, E), lambda i: (0, 0, 0)),   # k_b
            pl.BlockSpec((n_heads, 1, E), lambda i: (0, 0, 0)),   # v_b
            pl.BlockSpec((n_heads, E, D), lambda i: (0, 0, 0)),   # o_W
            pl.BlockSpec((1, D), lambda i: (0, 0)),               # o_b
            pl.BlockSpec((1, D), lambda i: (0, 0)),               # ln gamma
            pl.BlockSpec((1, D), lambda i: (0, 0)),               # ln beta
        ],
        out_specs=pl.BlockSpec((1, Lq, D), lambda i: (i, 0, 0)),
        compiler_params=pltpu.CompilerParams(dimension_semantics=("parallel",)),
    )(x_q, x_kv, ap["q_W"], ap["k_W"], ap["v_W"], ap["q_b"], ap["k_b"], ap["v_b"],
      ap["o_W"], ap["o_b"], ln_g, ln_b)


def _ffn_ln_kernel(x_ref, w1_ref, b1_ref, w2_ref, b2_ref, g_ref, b_ref, o_ref):
    x = x_ref[0]                                                        # [L, D]
    h = jnp.dot(x, w1_ref[...], preferred_element_type=jnp.float32) + b1_ref[...]
    h = jnp.maximum(h, 0.0)                                             # relu
    y = x + jnp.dot(h, w2_ref[...], preferred_element_type=jnp.float32) + b2_ref[...]
    o_ref[0] = _layernorm(y, g_ref[...], b_ref[...]).astype(o_ref.dtype)


def pallas_ffn_ln(x, w1, b1, w2, b2, g, b):
    B, L, D = x.shape
    dff = w1.shape[1]
    return pl.pallas_call(
        _ffn_ln_kernel,
        out_shape=jax.ShapeDtypeStruct((B, L, D), jnp.float32),
        grid=(B,),
        in_specs=[
            pl.BlockSpec((1, L, D), lambda i: (i, 0, 0)),
            pl.BlockSpec((D, dff), lambda i: (0, 0)),
            pl.BlockSpec((1, dff), lambda i: (0, 0)),
            pl.BlockSpec((dff, D), lambda i: (0, 0)),
            pl.BlockSpec((1, D), lambda i: (0, 0)),
            pl.BlockSpec((1, D), lambda i: (0, 0)),
            pl.BlockSpec((1, D), lambda i: (0, 0)),
        ],
        out_specs=pl.BlockSpec((1, L, D), lambda i: (i, 0, 0)),
        compiler_params=pltpu.CompilerParams(dimension_semantics=("parallel",)),
    )(x, w1, b1, w2, b2, g, b)


def _ln_kernel(x_ref, g_ref, b_ref, o_ref):
    o_ref[0] = _layernorm(x_ref[0], g_ref[...], b_ref[...]).astype(o_ref.dtype)


def pallas_layernorm(x, g, b):
    B, L, D = x.shape
    return pl.pallas_call(
        _ln_kernel,
        out_shape=jax.ShapeDtypeStruct((B, L, D), jnp.float32),
        grid=(B,),
        in_specs=[
            pl.BlockSpec((1, L, D), lambda i: (i, 0, 0)),
            pl.BlockSpec((1, D), lambda i: (0, 0)),
            pl.BlockSpec((1, D), lambda i: (0, 0)),
        ],
        out_specs=pl.BlockSpec((1, L, D), lambda i: (i, 0, 0)),
        compiler_params=pltpu.CompilerParams(dimension_semantics=("parallel",)),
    )(x, g, b)


def _heads_kernel(x_ref, pw_ref, pb_ref, g1w_ref, g1b_ref, g2w_ref, g2b_ref,
                  s1w_ref, s1b_ref, s2w_ref, s2b_ref, fw_ref, fb_ref,
                  f_ref, gam_ref, sig_ref):
    d = x_ref[0]                                                        # [Ld, D]
    pr = jnp.dot(d, pw_ref[...], preferred_element_type=jnp.float32) + pb_ref[...]
    g1 = jnp.dot(pr, g1w_ref[...], preferred_element_type=jnp.float32) + g1b_ref[...]
    gam = jnp.maximum(
        jnp.dot(g1, g2w_ref[...], preferred_element_type=jnp.float32) + g2b_ref[...], 0.0)
    s1 = jnp.dot(pr, s1w_ref[...], preferred_element_type=jnp.float32) + s1b_ref[...]
    sig = jnp.maximum(
        jnp.dot(s1, s2w_ref[...], preferred_element_type=jnp.float32) + s2b_ref[...], 0.0)
    fin = jnp.dot(pr, fw_ref[...], preferred_element_type=jnp.float32) + fb_ref[...]
    f_ref[0] = fin.astype(f_ref.dtype)
    gam_ref[0] = gam.astype(gam_ref.dtype)
    sig_ref[0] = sig.astype(sig_ref.dtype)


def pallas_heads(dec, hp):
    B, L, D = dec.shape
    c_out = hp["proj_W"].shape[1]
    hid = hp["gamma1_W"].shape[1]
    out_sd = jax.ShapeDtypeStruct((B, L, 1), jnp.float32)
    out_spec = pl.BlockSpec((1, L, 1), lambda i: (i, 0, 0))
    return pl.pallas_call(
        _heads_kernel,
        out_shape=(out_sd, out_sd, out_sd),
        grid=(B,),
        in_specs=[
            pl.BlockSpec((1, L, D), lambda i: (i, 0, 0)),
            pl.BlockSpec((D, c_out), lambda i: (0, 0)),
            pl.BlockSpec((1, c_out), lambda i: (0, 0)),
            pl.BlockSpec((c_out, hid), lambda i: (0, 0)),
            pl.BlockSpec((1, hid), lambda i: (0, 0)),
            pl.BlockSpec((hid, 1), lambda i: (0, 0)),
            pl.BlockSpec((1, 1), lambda i: (0, 0)),
            pl.BlockSpec((c_out, hid), lambda i: (0, 0)),
            pl.BlockSpec((1, hid), lambda i: (0, 0)),
            pl.BlockSpec((hid, 1), lambda i: (0, 0)),
            pl.BlockSpec((1, 1), lambda i: (0, 0)),
            pl.BlockSpec((c_out, 1), lambda i: (0, 0)),
            pl.BlockSpec((1, 1), lambda i: (0, 0)),
        ],
        out_specs=(out_spec, out_spec, out_spec),
        compiler_params=pltpu.CompilerParams(dimension_semantics=("parallel",)),
    )(dec, hp["proj_W"], hp["proj_b"], hp["gamma1_W"], hp["gamma1_b"],
      hp["gamma2_W"], hp["gamma2_b"], hp["sigma1_W"], hp["sigma1_b"],
      hp["sigma2_W"], hp["sigma2_b"], hp["final_W"], hp["final_b"])


# ----------------------------- model components ----------------------------

def positional_embedding(L, d_model):
    pos = jnp.arange(L, dtype=jnp.float32)[:, None]
    div = jnp.exp(jnp.arange(0, d_model, 2, dtype=jnp.float32)
                  * -(math.log(10000.0) / d_model))
    pe = jnp.zeros((L, d_model), jnp.float32)
    pe = pe.at[:, 0::2].set(jnp.sin(pos * div))
    pe = pe.at[:, 1::2].set(jnp.cos(pos * div))
    return pe


def data_embedding(x, x_mark, p, d_model):
    """TokenEmbedding (circular conv1d k=3, no bias) + TimeFeatureEmbedding (no bias)
    + PositionalEmbedding, fused into a single Pallas matmul kernel."""
    B, L, C = x.shape
    # circular padding of 1 along sequence, then im2col + concat time-features
    x_pad = jnp.concatenate([x[:, -1:, :], x, x[:, :1, :]], axis=1)         # [B, L+2, C]
    cols = jnp.concatenate([x_pad[:, 0:L, :], x_pad[:, 1:L + 1, :],
                            x_pad[:, 2:L + 2, :], x_mark], axis=-1)         # [B, L, 3C+Cm]
    pe = positional_embedding(L, d_model)
    # TODO(synk): dropout omitted (eval-mode identity).
    return pallas_embedding(cols, p["emb_W"], pe)


def encoder_layer(x, p, n_heads):
    x = pallas_mha_ln(x, x, p["attn"], p["norm1_g"], p["norm1_b"], n_heads, causal=False)
    return pallas_ffn_ln(x, p["conv1_W"], p["conv1_b"], p["conv2_W"], p["conv2_b"],
                         p["norm2_g"], p["norm2_b"])


def decoder_layer(x, cross, p, n_heads):
    x = pallas_mha_ln(x, x, p["self_attn"], p["norm1_g"], p["norm1_b"], n_heads,
                      causal=True)
    x = pallas_mha_ln(x, cross, p["cross_attn"], p["norm2_g"], p["norm2_b"], n_heads,
                      causal=False)
    return pallas_ffn_ln(x, p["conv1_W"], p["conv1_b"], p["conv2_W"], p["conv2_b"],
                         p["norm3_g"], p["norm3_b"])


def transformer_forward(params, cfg, x_enc, x_mark_enc, x_dec, x_mark_dec):
    d_model = cfg["d_model"]
    n_heads = cfg["n_heads"]
    pred_len = cfg["pred_len"]

    # encoder
    enc = data_embedding(x_enc, x_mark_enc, params["enc_emb"], d_model)
    for lp in params["enc_layers"]:
        enc = encoder_layer(enc, lp, n_heads)
    enc = pallas_layernorm(enc, params["enc_norm_g"], params["enc_norm_b"])

    # decoder
    dec = data_embedding(x_dec, x_mark_dec, params["dec_emb"], d_model)
    for lp in params["dec_layers"]:
        dec = decoder_layer(dec, enc, lp, n_heads)
    dec = pallas_layernorm(dec, params["dec_norm_g"], params["dec_norm_b"])

    # projection + GEV heads (criterion == 'GEV' -> out == 3), fused in one kernel
    f, g, s = pallas_heads(dec, params["heads"])
    # output_attention=False, out==3 branch
    return (f[:, -pred_len:, :], g[:, -pred_len:, :], s[:, -pred_len:, :])


# ----------------------------- parameter init ------------------------------

class KeyGen:
    def __init__(self, key):
        self.key = key

    def __call__(self):
        self.key, sub = jax.random.split(self.key)
        return sub


def init_params(key, cfg):
    kg = KeyGen(key)
    D, dff, H = cfg["d_model"], cfg["d_ff"], cfg["n_heads"]
    E = D // H
    enc_in, dec_in, c_out, mark = cfg["enc_in"], cfg["dec_in"], cfg["c_out"], cfg["mark_dim"]

    def rnd(shape):
        return jax.random.normal(kg(), shape, jnp.float32) * 0.05

    def emb(c_in):
        # token conv (3*c_in rows) and temporal linear (mark rows) concatenated
        return dict(emb_W=rnd((3 * c_in + mark, D)))

    def attn():
        # per-head weight layout: [H, D, E] / [H, E, D] so the fused MHA kernel
        # needs no in-kernel transposes or lane-offset slicing.
        return dict(q_W=rnd((H, D, E)), k_W=rnd((H, D, E)), v_W=rnd((H, D, E)),
                    q_b=jnp.zeros((H, 1, E), jnp.float32),
                    k_b=jnp.zeros((H, 1, E), jnp.float32),
                    v_b=jnp.zeros((H, 1, E), jnp.float32),
                    o_W=rnd((H, E, D)), o_b=jnp.zeros((1, D), jnp.float32))

    def ones_row():
        return jnp.ones((1, D), jnp.float32)

    def zeros_row():
        return jnp.zeros((1, D), jnp.float32)

    def enc_layer():
        return dict(attn=attn(),
                    conv1_W=rnd((D, dff)), conv1_b=jnp.zeros((1, dff), jnp.float32),
                    conv2_W=rnd((dff, D)), conv2_b=jnp.zeros((1, D), jnp.float32),
                    norm1_g=ones_row(), norm1_b=zeros_row(),
                    norm2_g=ones_row(), norm2_b=zeros_row())

    def dec_layer():
        return dict(self_attn=attn(), cross_attn=attn(),
                    conv1_W=rnd((D, dff)), conv1_b=jnp.zeros((1, dff), jnp.float32),
                    conv2_W=rnd((dff, D)), conv2_b=jnp.zeros((1, D), jnp.float32),
                    norm1_g=ones_row(), norm1_b=zeros_row(),
                    norm2_g=ones_row(), norm2_b=zeros_row(),
                    norm3_g=ones_row(), norm3_b=zeros_row())

    heads = dict(
        proj_W=rnd((D, c_out)), proj_b=jnp.zeros((1, c_out), jnp.float32),
        gamma1_W=rnd((c_out, 48)), gamma1_b=jnp.zeros((1, 48), jnp.float32),
        gamma2_W=rnd((48, 1)), gamma2_b=jnp.zeros((1, 1), jnp.float32),
        sigma1_W=rnd((c_out, 48)), sigma1_b=jnp.zeros((1, 48), jnp.float32),
        sigma2_W=rnd((48, 1)), sigma2_b=jnp.zeros((1, 1), jnp.float32),
        final_W=rnd((c_out, 1)), final_b=jnp.zeros((1, 1), jnp.float32),
    )

    return dict(
        enc_emb=emb(enc_in), dec_emb=emb(dec_in),
        enc_layers=[enc_layer() for _ in range(cfg["e_layers"])],
        enc_norm_g=ones_row(), enc_norm_b=zeros_row(),
        dec_layers=[dec_layer() for _ in range(cfg["d_layers"])],
        dec_norm_g=ones_row(), dec_norm_b=zeros_row(),
        heads=heads,
    )


# ----------------------------------- main -----------------------------------

if __name__ == "__main__":
    cfg = dict(
        enc_in=4, dec_in=4, c_out=4, mark_dim=4,     # freq='h', embed='timeF'
        d_model=32, n_heads=4, d_ff=64,
        e_layers=1, d_layers=1,
        seq_len=16, label_len=8, pred_len=8,
    )
    dec_len = cfg["label_len"] + cfg["pred_len"]
    B = 2

    key = jax.random.PRNGKey(0)
    k_par, k1, k2, k3, k4 = jax.random.split(key, 5)
    params = init_params(k_par, cfg)

    x_enc = jax.random.normal(k1, (B, cfg["seq_len"], cfg["enc_in"]), jnp.float32)
    x_mark_enc = jax.random.normal(k2, (B, cfg["seq_len"], cfg["mark_dim"]), jnp.float32)
    x_dec = jax.random.normal(k3, (B, dec_len, cfg["dec_in"]), jnp.float32)
    x_mark_dec = jax.random.normal(k4, (B, dec_len, cfg["mark_dim"]), jnp.float32)

    fwd = jax.jit(lambda p, a, b, c, d: transformer_forward(p, cfg, a, b, c, d))
    out, out_gamma, out_sigma = fwd(params, x_enc, x_mark_enc, x_dec, x_mark_dec)
    jax.block_until_ready((out, out_gamma, out_sigma))

    assert out.shape == (B, cfg["pred_len"], 1)
    assert out_gamma.shape == (B, cfg["pred_len"], 1)
    assert out_sigma.shape == (B, cfg["pred_len"], 1)
    print("KERNEL_OK")
</pallas_src>

<mosaic_0001>
module attributes {stable_mosaic.version = 11 : i64} {
  func.func @_embed_kernel(%arg0: i32, %arg1: memref<1x16x16xf32, #tpu.memory_space<vmem>>, %arg2: memref<16x32xf32, #tpu.memory_space<vmem>>, %arg3: memref<16x32xf32, #tpu.memory_space<vmem>>, %arg4: memref<1x16x32xf32, #tpu.memory_space<vmem>>) attributes {dimension_semantics = [#tpu.dimension_semantics<parallel>], iteration_bounds = array<i64: 2>, scalar_prefetch = 0 : i64, scratch_operands = 0 : i64, tpu.core_type = #tpu.core_type<tc>, window_params = [{transform_indices = @transform_0, window_bounds = array<i64: 1, 16, 16>}, {pipeline_mode = #tpu.pipeline_mode<synchronous>, transform_indices = @transform_1, window_bounds = array<i64: 16, 32>}, {pipeline_mode = #tpu.pipeline_mode<synchronous>, transform_indices = @transform_2, window_bounds = array<i64: 16, 32>}, {transform_indices = @transform_3, window_bounds = array<i64: 1, 16, 32>}]} {
    %c0 = arith.constant 0 : index
    %c0_0 = arith.constant 0 : index
    %c0_1 = arith.constant 0 : index
    %0 = vector.load %arg1[%c0, %c0_0, %c0_1] : memref<1x16x16xf32, #tpu.memory_space<vmem>>, vector<1x16x16xf32>
    %1 = vector.shape_cast %0 : vector<1x16x16xf32> to vector<16x16xf32>
    %c0_2 = arith.constant 0 : index
    %c0_3 = arith.constant 0 : index
    %2 = vector.load %arg2[%c0_2, %c0_3] : memref<16x32xf32, #tpu.memory_space<vmem>>, vector<16x32xf32>
    %cst = arith.constant dense<0.000000e+00> : vector<16x32xf32>
    %3 = tpu.matmul %1, %2, %cst {dimension_numbers = #tpu.dot_dimension_numbers<[1], [0], [0], [1], [0, 0, 1, 1], [], []>} : vector<16x16xf32>, vector<16x32xf32>, vector<16x32xf32> -> vector<16x32xf32>
    %c0_4 = arith.constant 0 : index
    %c0_5 = arith.constant 0 : index
    %4 = vector.load %arg3[%c0_4, %c0_5] : memref<16x32xf32, #tpu.memory_space<vmem>>, vector<16x32xf32>
    %5 = arith.addf %3, %4 : vector<16x32xf32>
    %c0_6 = arith.constant 0 : index
    %c0_7 = arith.constant 0 : index
    %c0_8 = arith.constant 0 : index
    %6 = vector.load %arg4[%c0_6, %c0_7, %c0_8] : memref<1x16x32xf32, #tpu.memory_space<vmem>>, vector<1x16x32xf32>
    %7 = vector.shape_cast %6 : vector<1x16x32xf32> to vector<16x32xf32>
    %8 = vector.shape_cast %5 : vector<16x32xf32> to vector<1x16x32xf32>
    tpu.vector_store %arg4[%c0_6, %c0_7, %c0_8], %8 {strides = array<i32>} : memref<1x16x32xf32, #tpu.memory_space<vmem>>, vector<1x16x32xf32>,
    return
  }
  func.func @transform_0(%arg0: i32) -> (i32, i32, i32) {
    %c0_i32 = arith.constant 0 : i32
    %c0_i32_0 = arith.constant 0 : i32
    %c0_i32_1 = arith.constant 0 : i32
    return %arg0, %c0_i32, %c0_i32_0 : i32, i32, i32
  }
  func.func @transform_1(%arg0: i32) -> (i32, i32) {
    %c0_i32 = arith.constant 0 : i32
    %c0_i32_0 = arith.constant 0 : i32
    %c0_i32_1 = arith.constant 0 : i32
    return %c0_i32, %c0_i32_0 : i32, i32
  }
  func.func @transform_2(%arg0: i32) -> (i32, i32) {
    %c0_i32 = arith.constant 0 : i32
    %c0_i32_0 = arith.constant 0 : i32
    %c0_i32_1 = arith.constant 0 : i32
    return %c0_i32, %c0_i32_0 : i32, i32
  }
  func.func @transform_3(%arg0: i32) -> (i32, i32, i32) {
    %c0_i32 = arith.constant 0 : i32
    %c0_i32_0 = arith.constant 0 : i32
    %c0_i32_1 = arith.constant 0 : i32
    return %arg0, %c0_i32, %c0_i32_0 : i32, i32, i32
  }
}

module attributes {stable_mosaic.version = 11 : i64} {
  func.func @_ffn_ln_kernel(%arg0: i32, %arg1: memref<1x16x32xf32, #tpu.memory_space<vmem>>, %arg2: memref<32x64xf32, #tpu.memory_space<vmem>>, %arg3: memref<1x64xf32, #tpu.memory_space<vmem>>, %arg4: memref<64x32xf32, #tpu.memory_space<vmem>>, %arg5: memref<1x32xf32, #tpu.memory_space<vmem>>, %arg6: memref<1x32xf32, #tpu.memory_space<vmem>>, %arg7: memref<1x32xf32, #tpu.memory_space<vmem>>, %arg8: memref<1x16x32xf32, #tpu.memory_space<vmem>>) attributes {dimension_semantics = [#tpu.dimension_semantics<parallel>], iteration_bounds = array<i64: 2>, scalar_prefetch = 0 : i64, scratch_operands = 0 : i64, tpu.core_type = #tpu.core_type<tc>, window_params = [{transform_indices = @transform_0, window_bounds = array<i64: 1, 16, 32>}, {pipeline_mode = #tpu.pipeline_mode<synchronous>, transform_indices = @transform_1, window_bounds = array<i64: 32, 64>}, {pipeline_mode = #tpu.pipeline_mode<synchronous>, transform_indices = @transform_2, window_bounds = array<i64: 1, 64>}, {pipeline_mode = #tpu.pipeline_mode<synchronous>, transform_indices = @transform_3, window_bounds = array<i64: 64, 32>}, {pipeline_mode = #tpu.pipeline_mode<synchronous>, transform_indices = @transform_4, window_bounds = array<i64: 1, 32>}, {pipeline_mode = #tpu.pipeline_mode<synchronous>, transform_indices = @transform_5, window_bounds = array<i64: 1, 32>}, {pipeline_mode = #tpu.pipeline_mode<synchronous>, transform_indices = @transform_6, window_bounds = array<i64: 1, 32>}, {transform_indices = @transform_7, window_bounds = array<i64: 1, 16, 32>}]} {
    %c0 = arith.constant 0 : index
    %c0_0 = arith.constant 0 : index
    %c0_1 = arith.constant 0 : index
    %0 = vector.load %arg1[%c0, %c0_0, %c0_1] : memref<1x16x32xf32, #tpu.memory_space<vmem>>, vector<1x16x32xf32>
    %1 = vector.shape_cast %0 : vector<1x16x32xf32> to vector<16x32xf32>
    %c0_2 = arith.constant 0 : index
    %c0_3 = arith.constant 0 : index
    %2 = vector.load %arg2[%c0_2, %c0_3] : memref<32x64xf32, #tpu.memory_space<vmem>>, vector<32x64xf32>
    %cst = arith.constant dense<0.000000e+00> : vector<16x64xf32>
    %3 = tpu.matmul %1, %2, %cst {dimension_numbers = #tpu.dot_dimension_numbers<[1], [0], [0], [1], [0, 0, 1, 1], [], []>} : vector<16x32xf32>, vector<32x64xf32>, vector<16x64xf32> -> vector<16x64xf32>
    %c0_4 = arith.constant 0 : index
    %c0_5 = arith.constant 0 : index
    %4 = vector.load %arg3[%c0_4, %c0_5] : memref<1x64xf32, #tpu.memory_space<vmem>>, vector<1x64xf32>
    %5 = vector.broadcast %4 : vector<1x64xf32> to vector<16x64xf32>
    %6 = arith.addf %3, %5 : vector<16x64xf32>
    %cst_6 = arith.constant 0.000000e+00 : f32
    %7 = vector.broadcast %cst_6 : f32 to vector<16x64xf32>
    %8 = arith.maximumf %6, %7 : vector<16x64xf32>
    %c0_7 = arith.constant 0 : index
    %c0_8 = arith.constant 0 : index
    %9 = vector.load %arg4[%c0_7, %c0_8] : memref<64x32xf32, #tpu.memory_space<vmem>>, vector<64x32xf32>
    %cst_9 = arith.constant dense<0.000000e+00> : vector<16x32xf32>
    %10 = tpu.matmul %8, %9, %cst_9 {dimension_numbers = #tpu.dot_dimension_numbers<[1], [0], [0], [1], [0, 0, 1, 1], [], []>} : vector<16x64xf32>, vector<64x32xf32>, vector<16x32xf32> -> vector<16x32xf32>
    %11 = arith.addf %1, %10 : vector<16x32xf32>
    %c0_10 = arith.constant 0 : index
    %c0_11 = arith.constant 0 : index
    %12 = vector.load %arg5[%c0_10, %c0_11] : memref<1x32xf32, #tpu.memory_space<vmem>>, vector<1x32xf32>
    %13 = vector.broadcast %12 : vector<1x32xf32> to vector<16x32xf32>
    %14 = arith.addf %11, %13 : vector<16x32xf32>
    %c0_12 = arith.constant 0 : index
    %c0_13 = arith.constant 0 : index
    %15 = vector.load %arg6[%c0_12, %c0_13] : memref<1x32xf32, #tpu.memory_space<vmem>>, vector<1x32xf32>
    %c0_14 = arith.constant 0 : index
    %c0_15 = arith.constant 0 : index
    %16 = vector.load %arg7[%c0_14, %c0_15] : memref<1x32xf32, #tpu.memory_space<vmem>>, vector<1x32xf32>
    %cst_16 = arith.constant dense<0.000000e+00> : vector<16xf32>
    %17 = vector.multi_reduction <add>, %14, %cst_16 [1] : vector<16x32xf32> to vector<16xf32>
    %18 = vector.shape_cast %17 : vector<16xf32> to vector<16x1xf32>
    %cst_17 = arith.constant 3.200000e+01 : f32
    %19 = vector.broadcast %cst_17 : f32 to vector<16x1xf32>
    %20 = arith.divf %18, %19 : vector<16x1xf32>
    %21 = vector.broadcast %20 : vector<16x1xf32> to vector<16x32xf32>
    %22 = arith.subf %14, %21 : vector<16x32xf32>
    %23 = arith.mulf %22, %22 : vector<16x32xf32>
    %cst_18 = arith.constant dense<0.000000e+00> : vector<16xf32>
    %24 = vector.multi_reduction <add>, %23, %cst_18 [1] : vector<16x32xf32> to vector<16xf32>
    %25 = vector.shape_cast %24 : vector<16xf32> to vector<16x1xf32>
    %cst_19 = arith.constant 3.200000e+01 : f32
    %26 = vector.broadcast %cst_19 : f32 to vector<16x1xf32>
    %27 = arith.divf %25, %26 : vector<16x1xf32>
    %cst_20 = arith.constant 9.99999974E-6 : f32
    %28 = vector.broadcast %cst_20 : f32 to vector<16x1xf32>
    %29 = arith.addf %27, %28 : vector<16x1xf32>
    %30 = math.rsqrt %29 : vector<16x1xf32>
    %31 = vector.broadcast %30 : vector<16x1xf32> to vector<16x32xf32>
    %32 = arith.mulf %22, %31 : vector<16x32xf32>
    %33 = vector.broadcast %15 : vector<1x32xf32> to vector<16x32xf32>
    %34 = arith.mulf %32, %33 : vector<16x32xf32>
    %35 = vector.broadcast %16 : vector<1x32xf32> to vector<16x32xf32>
    %36 = arith.addf %34, %35 : vector<16x32xf32>
    %c0_21 = arith.constant 0 : index
    %c0_22 = arith.constant 0 : index
    %c0_23 = arith.constant 0 : index
    %37 = vector.load %arg8[%c0_21, %c0_22, %c0_23] : memref<1x16x32xf32, #tpu.memory_space<vmem>>, vector<1x16x32xf32>
    %38 = vector.shape_cast %37 : vector<1x16x32xf32> to vector<16x32xf32>
    %39 = vector.shape_cast %36 : vector<16x32xf32> to vector<1x16x32xf32>
    tpu.vector_store %arg8[%c0_21, %c0_22, %c0_23], %39 {strides = array<i32>} : memref<1x16x32xf32, #tpu.memory_space<vmem>>, vector<1x16x32xf32>,
    return
  }
  func.func @transform_0(%arg0: i32) -> (i32, i32, i32) {
    %c0_i32 = arith.constant 0 : i32
    %c0_i32_0 = arith.constant 0 : i32
    %c0_i32_1 = arith.constant 0 : i32
    return %arg0, %c0_i32, %c0_i32_0 : i32, i32, i32
  }
  func.func @transform_1(%arg0: i32) -> (i32, i32) {
    %c0_i32 = arith.constant 0 : i32
    %c0_i32_0 = arith.constant 0 : i32
    %c0_i32_1 = arith.constant 0 : i32
    return %c0_i32, %c0_i32_0 : i32, i32
  }
  func.func @transform_2(%arg0: i32) -> (i32, i32) {
    %c0_i32 = arith.constant 0 : i32
    %c0_i32_0 = arith.constant 0 : i32
    %c0_i32_1 = arith.constant 0 : i32
    return %c0_i32, %c0_i32_0 : i32, i32
  }
  func.func @transform_3(%arg0: i32) -> (i32, i32) {
    %c0_i32 = arith.constant 0 : i32
    %c0_i32_0 = arith.constant 0 : i32
    %c0_i32_1 = arith.constant 0 : i32
    return %c0_i32, %c0_i32_0 : i32, i32
  }
  func.func @transform_4(%arg0: i32) -> (i32, i32) {
    %c0_i32 = arith.constant 0 : i32
    %c0_i32_0 = arith.constant 0 : i32
    %c0_i32_1 = arith.constant 0 : i32
    return %c0_i32, %c0_i32_0 : i32, i32
  }
  func.func @transform_5(%arg0: i32) -> (i32, i32) {
    %c0_i32 = arith.constant 0 : i32
    %c0_i32_0 = arith.constant 0 : i32
    %c0_i32_1 = arith.constant 0 : i32
    return %c0_i32, %c0_i32_0 : i32, i32
  }
  func.func @transform_6(%arg0: i32) -> (i32, i32) {
    %c0_i32 = arith.constant 0 : i32
    %c0_i32_0 = arith.constant 0 : i32
    %c0_i32_1 = arith.constant 0 : i32
    return %c0_i32, %c0_i32_0 : i32, i32
  }
  func.func @transform_7(%arg0: i32) -> (i32, i32, i32) {
    %c0_i32 = arith.constant 0 : i32
    %c0_i32_0 = arith.constant 0 : i32
    %c0_i32_1 = arith.constant 0 : i32
    return %arg0, %c0_i32, %c0_i32_0 : i32, i32, i32
  }
}

module attributes {stable_mosaic.version = 11 : i64} {
  func.func @_mha_ln_kernel(%arg0: i32, %arg1: memref<1x16x32xf32, #tpu.memory_space<vmem>>, %arg2: memref<1x16x32xf32, #tpu.memory_space<vmem>>, %arg3: memref<4x32x8xf32, #tpu.memory_space<vmem>>, %arg4: memref<4x32x8xf32, #tpu.memory_space<vmem>>, %arg5: memref<4x32x8xf32, #tpu.memory_space<vmem>>, %arg6: memref<4x1x8xf32, #tpu.memory_space<vmem>>, %arg7: memref<4x1x8xf32, #tpu.memory_space<vmem>>, %arg8: memref<4x1x8xf32, #tpu.memory_space<vmem>>, %arg9: memref<4x8x32xf32, #tpu.memory_space<vmem>>, %arg10: memref<1x32xf32, #tpu.memory_space<vmem>>, %arg11: memref<1x32xf32, #tpu.memory_space<vmem>>, %arg12: memref<1x32xf32, #tpu.memory_space<vmem>>, %arg13: memref<1x16x32xf32, #tpu.memory_space<vmem>>) attributes {dimension_semantics = [#tpu.dimension_semantics<parallel>], iteration_bounds = array<i64: 2>, scalar_prefetch = 0 : i64, scratch_operands = 0 : i64, tpu.core_type = #tpu.core_type<tc>, window_params = [{transform_indices = @transform_0, window_bounds = array<i64: 1, 16, 32>}, {transform_indices = @transform_1, window_bounds = array<i64: 1, 16, 32>}, {pipeline_mode = #tpu.pipeline_mode<synchronous>, transform_indices = @transform_2, window_bounds = array<i64: 4, 32, 8>}, {pipeline_mode = #tpu.pipeline_mode<synchronous>, transform_indices = @transform_3, window_bounds = array<i64: 4, 32, 8>}, {pipeline_mode = #tpu.pipeline_mode<synchronous>, transform_indices = @transform_4, window_bounds = array<i64: 4, 32, 8>}, {pipeline_mode = #tpu.pipeline_mode<synchronous>, transform_indices = @transform_5, window_bounds = array<i64: 4, 1, 8>}, {pipeline_mode = #tpu.pipeline_mode<synchronous>, transform_indices = @transform_6, window_bounds = array<i64: 4, 1, 8>}, {pipeline_mode = #tpu.pipeline_mode<synchronous>, transform_indices = @transform_7, window_bounds = array<i64: 4, 1, 8>}, {pipeline_mode = #tpu.pipeline_mode<synchronous>, transform_indices = @transform_8, window_bounds = array<i64: 4, 8, 32>}, {pipeline_mode = #tpu.pipeline_mode<synchronous>, transform_indices = @transform_9, window_bounds = array<i64: 1, 32>}, {pipeline_mode = #tpu.pipeline_mode<synchronous>, transform_indices = @transform_10, window_bounds = array<i64: 1, 32>}, {pipeline_mode = #tpu.pipeline_mode<synchronous>, transform_indices = @transform_11, window_bounds = array<i64: 1, 32>}, {transform_indices = @transform_12, window_bounds = array<i64: 1, 16, 32>}]} {
    %c0 = arith.constant 0 : index
    %c0_0 = arith.constant 0 : index
    %c0_1 = arith.constant 0 : index
    %0 = vector.load %arg1[%c0, %c0_0, %c0_1] : memref<1x16x32xf32, #tpu.memory_space<vmem>>, vector<1x16x32xf32>
    %1 = vector.shape_cast %0 : vector<1x16x32xf32> to vector<16x32xf32>
    %c0_2 = arith.constant 0 : index
    %c0_3 = arith.constant 0 : index
    %c0_4 = arith.constant 0 : index
    %2 = vector.load %arg2[%c0_2, %c0_3, %c0_4] : memref<1x16x32xf32, #tpu.memory_space<vmem>>, vector<1x16x32xf32>
    %3 = vector.shape_cast %2 : vector<1x16x32xf32> to vector<16x32xf32>
    %cst = arith.constant 0.000000e+00 : f32
    %4 = vector.broadcast %cst : f32 to vector<16x32xf32>
    %c0_5 = arith.constant 0 : index
    %c0_6 = arith.constant 0 : index
    %c0_7 = arith.constant 0 : index
    %5 = vector.load %arg3[%c0_5, %c0_6, %c0_7] : memref<4x32x8xf32, #tpu.memory_space<vmem>>, vector<1x32x8xf32>
    %6 = vector.shape_cast %5 : vector<1x32x8xf32> to vector<32x8xf32>
    %cst_8 = arith.constant dense<0.000000e+00> : vector<16x8xf32>
    %7 = tpu.matmul %1, %6, %cst_8 {dimension_numbers = #tpu.dot_dimension_numbers<[1], [0], [0], [1], [0, 0, 1, 1], [], []>} : vector<16x32xf32>, vector<32x8xf32>, vector<16x8xf32> -> vector<16x8xf32>
    %c0_9 = arith.constant 0 : index
    %c0_10 = arith.constant 0 : index
    %c0_11 = arith.constant 0 : index
    %8 = vector.load %arg6[%c0_9, %c0_10, %c0_11] : memref<4x1x8xf32, #tpu.memory_space<vmem>>, vector<1x1x8xf32>
    %9 = vector.shape_cast %8 : vector<1x1x8xf32> to vector<1x8xf32>
    %10 = vector.broadcast %9 : vector<1x8xf32> to vector<16x8xf32>
    %11 = arith.addf %7, %10 : vector<16x8xf32>
    %c0_12 = arith.constant 0 : index
    %c0_13 = arith.constant 0 : index
    %c0_14 = arith.constant 0 : index
    %12 = vector.load %arg4[%c0_12, %c0_13, %c0_14] : memref<4x32x8xf32, #tpu.memory_space<vmem>>, vector<1x32x8xf32>
    %13 = vector.shape_cast %12 : vector<1x32x8xf32> to vector<32x8xf32>
    %cst_15 = arith.constant dense<0.000000e+00> : vector<16x8xf32>
    %14 = tpu.matmul %3, %13, %cst_15 {dimension_numbers = #tpu.dot_dimension_numbers<[1], [0], [0], [1], [0, 0, 1, 1], [], []>} : vector<16x32xf32>, vector<32x8xf32>, vector<16x8xf32> -> vector<16x8xf32>
    %c0_16 = arith.constant 0 : index
    %c0_17 = arith.constant 0 : index
    %c0_18 = arith.constant 0 : index
    %15 = vector.load %arg7[%c0_16, %c0_17, %c0_18] : memref<4x1x8xf32, #tpu.memory_space<vmem>>, vector<1x1x8xf32>
    %16 = vector.shape_cast %15 : vector<1x1x8xf32> to vector<1x8xf32>
    %17 = vector.broadcast %16 : vector<1x8xf32> to vector<16x8xf32>
    %18 = arith.addf %14, %17 : vector<16x8xf32>
    %c0_19 = arith.constant 0 : index
    %c0_20 = arith.constant 0 : index
    %c0_21 = arith.constant 0 : index
    %19 = vector.load %arg5[%c0_19, %c0_20, %c0_21] : memref<4x32x8xf32, #tpu.memory_space<vmem>>, vector<1x32x8xf32>
    %20 = vector.shape_cast %19 : vector<1x32x8xf32> to vector<32x8xf32>
    %cst_22 = arith.constant dense<0.000000e+00> : vector<16x8xf32>
    %21 = tpu.matmul %3, %20, %cst_22 {dimension_numbers = #tpu.dot_dimension_numbers<[1], [0], [0], [1], [0, 0, 1, 1], [], []>} : vector<16x32xf32>, vector<32x8xf32>, vector<16x8xf32> -> vector<16x8xf32>
    %c0_23 = arith.constant 0 : index
    %c0_24 = arith.constant 0 : index
    %c0_25 = arith.constant 0 : index
    %22 = vector.load %arg8[%c0_23, %c0_24, %c0_25] : memref<4x1x8xf32, #tpu.memory_space<vmem>>, vector<1x1x8xf32>
    %23 = vector.shape_cast %22 : vector<1x1x8xf32> to vector<1x8xf32>
    %24 = vector.broadcast %23 : vector<1x8xf32> to vector<16x8xf32>
    %25 = arith.addf %21, %24 : vector<16x8xf32>
    %cst_26 = arith.constant dense<0.000000e+00> : vector<16x16xf32>
    %26 = tpu.matmul %11, %18, %cst_26 {dimension_numbers = #tpu.dot_dimension_numbers<[1], [1], [0], [0], [0, 0, 1, 0], [], []>} : vector<16x8xf32>, vector<16x8xf32>, vector<16x16xf32> -> vector<16x16xf32>
    %cst_27 = arith.constant 0.353553385 : f32
    %27 = vector.broadcast %cst_27 : f32 to vector<16x16xf32>
    %28 = arith.mulf %26, %27 : vector<16x16xf32>
    %cst_28 = arith.constant dense<0xFF800000> : vector<16xf32>
    %29 = vector.multi_reduction <maximumf>, %28, %cst_28 [1] : vector<16x16xf32> to vector<16xf32>
    %30 = vector.shape_cast %29 : vector<16xf32> to vector<16x1xf32>
    %31 = vector.broadcast %30 : vector<16x1xf32> to vector<16x16xf32>
    %32 = arith.subf %28, %31 : vector<16x16xf32>
    %33 = math.exp %32 : vector<16x16xf32>
    %cst_29 = arith.constant dense<0.000000e+00> : vector<16xf32>
    %34 = vector.multi_reduction <add>, %33, %cst_29 [1] : vector<16x16xf32> to vector<16xf32>
    %35 = vector.shape_cast %34 : vector<16xf32> to vector<16x1xf32>
    %36 = tpu.reciprocal %35 {approx = true} : vector<16x1xf32> -> vector<16x1xf32>
    %37 = vector.broadcast %36 : vector<16x1xf32> to vector<16x16xf32>
    %38 = arith.mulf %33, %37 : vector<16x16xf32>
    %cst_30 = arith.constant dense<0.000000e+00> : vector<16x8xf32>
    %39 = tpu.matmul %38, %25, %cst_30 {dimension_numbers = #tpu.dot_dimension_numbers<[1], [0], [0], [1], [0, 0, 1, 1], [], []>} : vector<16x16xf32>, vector<16x8xf32>, vector<16x8xf32> -> vector<16x8xf32>
    %c0_31 = arith.constant 0 : index
    %c0_32 = arith.constant 0 : index
    %c0_33 = arith.constant 0 : index
    %40 = vector.load %arg9[%c0_31, %c0_32, %c0_33] : memref<4x8x32xf32, #tpu.memory_space<vmem>>, vector<1x8x32xf32>
    %41 = vector.shape_cast %40 : vector<1x8x32xf32> to vector<8x32xf32>
    %cst_34 = arith.constant dense<0.000000e+00> : vector<16x32xf32>
    %42 = tpu.matmul %39, %41, %cst_34 {dimension_numbers = #tpu.dot_dimension_numbers<[1], [0], [0], [1], [0, 0, 1, 1], [], []>} : vector<16x8xf32>, vector<8x32xf32>, vector<16x32xf32> -> vector<16x32xf32>
    %43 = arith.addf %4, %42 : vector<16x32xf32>
    %c1 = arith.constant 1 : index
    %c0_35 = arith.constant 0 : index
    %c0_36 = arith.constant 0 : index
    %44 = vector.load %arg3[%c1, %c0_35, %c0_36] : memref<4x32x8xf32, #tpu.memory_space<vmem>>, vector<1x32x8xf32>
    %45 = vector.shape_cast %44 : vector<1x32x8xf32> to vector<32x8xf32>
    %cst_37 = arith.constant dense<0.000000e+00> : vector<16x8xf32>
    %46 = tpu.matmul %1, %45, %cst_37 {dimension_numbers = #tpu.dot_dimension_numbers<[1], [0], [0], [1], [0, 0, 1, 1], [], []>} : vector<16x32xf32>, vector<32x8xf32>, vector<16x8xf32> -> vector<16x8xf32>
    %c1_38 = arith.constant 1 : index
    %c0_39 = arith.constant 0 : index
    %c0_40 = arith.constant 0 : index
    %47 = vector.load %arg6[%c1_38, %c0_39, %c0_40] : memref<4x1x8xf32, #tpu.memory_space<vmem>>, vector<1x1x8xf32>
    %48 = vector.shape_cast %47 : vector<1x1x8xf32> to vector<1x8xf32>
    %49 = vector.broadcast %48 : vector<1x8xf32> to vector<16x8xf32>
    %50 = arith.addf %46, %49 : vector<16x8xf32>
    %c1_41 = arith.constant 1 : index
    %c0_42 = arith.constant 0 : index
    %c0_43 = arith.constant 0 : index
    %51 = vector.load %arg4[%c1_41, %c0_42, %c0_43] : memref<4x32x8xf32, #tpu.memory_space<vmem>>, vector<1x32x8xf32>
    %52 = vector.shape_cast %51 : vector<1x32x8xf32> to vector<32x8xf32>
    %cst_44 = arith.constant dense<0.000000e+00> : vector<16x8xf32>
    %53 = tpu.matmul %3, %52, %cst_44 {dimension_numbers = #tpu.dot_dimension_numbers<[1], [0], [0], [1], [0, 0, 1, 1], [], []>} : vector<16x32xf32>, vector<32x8xf32>, vector<16x8xf32> -> vector<16x8xf32>
    %c1_45 = arith.constant 1 : index
    %c0_46 = arith.constant 0 : index
    %c0_47 = arith.constant 0 : index
    %54 = vector.load %arg7[%c1_45, %c0_46, %c0_47] : memref<4x1x8xf32, #tpu.memory_space<vmem>>, vector<1x1x8xf32>
    %55 = vector.shape_cast %54 : vector<1x1x8xf32> to vector<1x8xf32>
    %56 = vector.broadcast %55 : vector<1x8xf32> to vector<16x8xf32>
    %57 = arith.addf %53, %56 : vector<16x8xf32>
    %c1_48 = arith.constant 1 : index
    %c0_49 = arith.constant 0 : index
    %c0_50 = arith.constant 0 : index
    %58 = vector.load %arg5[%c1_48, %c0_49, %c0_50] : memref<4x32x8xf32, #tpu.memory_space<vmem>>, vector<1x32x8xf32>
    %59 = vector.shape_cast %58 : vector<1x32x8xf32> to vector<32x8xf32>
    %cst_51 = arith.constant dense<0.000000e+00> : vector<16x8xf32>
    %60 = tpu.matmul %3, %59, %cst_51 {dimension_numbers = #tpu.dot_dimension_numbers<[1], [0], [0], [1], [0, 0, 1, 1], [], []>} : vector<16x32xf32>, vector<32x8xf32>, vector<16x8xf32> -> vector<16x8xf32>
    %c1_52 = arith.constant 1 : index
    %c0_53 = arith.constant 0 : index
    %c0_54 = arith.constant 0 : index
    %61 = vector.load %arg8[%c1_52, %c0_53, %c0_54] : memref<4x1x8xf32, #tpu.memory_space<vmem>>, vector<1x1x8xf32>
    %62 = vector.shape_cast %61 : vector<1x1x8xf32> to vector<1x8xf32>
    %63 = vector.broadcast %62 : vector<1x8xf32> to vector<16x8xf32>
    %64 = arith.addf %60, %63 : vector<16x8xf32>
    %cst_55 = arith.constant dense<0.000000e+00> : vector<16x16xf32>
    %65 = tpu.matmul %50, %57, %cst_55 {dimension_numbers = #tpu.dot_dimension_numbers<[1], [1], [0], [0], [0, 0, 1, 0], [], []>} : vector<16x8xf32>, vector<16x8xf32>, vector<16x16xf32> -> vector<16x16xf32>
    %cst_56 = arith.constant 0.353553385 : f32
    %66 = vector.broadcast %cst_56 : f32 to vector<16x16xf32>
    %67 = arith.mulf %65, %66 : vector<16x16xf32>
    %cst_57 = arith.constant dense<0xFF800000> : vector<16xf32>
    %68 = vector.multi_reduction <maximumf>, %67, %cst_57 [1] : vector<16x16xf32> to vector<16xf32>
    %69 = vector.shape_cast %68 : vector<16xf32> to vector<16x1xf32>
    %70 = vector.broadcast %69 : vector<16x1xf32> to vector<16x16xf32>
    %71 = arith.subf %67, %70 : vector<16x16xf32>
    %72 = math.exp %71 : vector<16x16xf32>
    %cst_58 = arith.constant dense<0.000000e+00> : vector<16xf32>
    %73 = vector.multi_reduction <add>, %72, %cst_58 [1] : vector<16x16xf32> to vector<16xf32>
    %74 = vector.shape_cast %73 : vector<16xf32> to vector<16x1xf32>
    %75 = tpu.reciprocal %74 {approx = true} : vector<16x1xf32> -> vector<16x1xf32>
    %76 = vector.broadcast %75 : vector<16x1xf32> to vector<16x16xf32>
    %77 = arith.mulf %72, %76 : vector<16x16xf32>
    %cst_59 = arith.constant dense<0.000000e+00> : vector<16x8xf32>
    %78 = tpu.matmul %77, %64, %cst_59 {dimension_numbers = #tpu.dot_dimension_numbers<[1], [0], [0], [1], [0, 0, 1, 1], [], []>} : vector<16x16xf32>, vector<16x8xf32>, vector<16x8xf32> -> vector<16x8xf32>
    %c1_60 = arith.constant 1 : index
    %c0_61 = arith.constant 0 : index
    %c0_62 = arith.constant 0 : index
    %79 = vector.load %arg9[%c1_60, %c0_61, %c0_62] : memref<4x8x32xf32, #tpu.memory_space<vmem>>, vector<1x8x32xf32>
    %80 = vector.shape_cast %79 : vector<1x8x32xf32> to vector<8x32xf32>
    %cst_63 = arith.constant dense<0.000000e+00> : vector<16x32xf32>
    %81 = tpu.matmul %78, %80, %cst_63 {dimension_numbers = #tpu.dot_dimension_numbers<[1], [0], [0], [1], [0, 0, 1, 1], [], []>} : vector<16x8xf32>, vector<8x32xf32>, vector<16x32xf32> -> vector<16x32xf32>
    %82 = arith.addf %43, %81 : vector<16x32xf32>
    %c2 = arith.constant 2 : index
    %c0_64 = arith.constant 0 : index
    %c0_65 = arith.constant 0 : index
    %83 = vector.load %arg3[%c2, %c0_64, %c0_65] : memref<4x32x8xf32, #tpu.memory_space<vmem>>, vector<1x32x8xf32>
    %84 = vector.shape_cast %83 : vector<1x32x8xf32> to vector<32x8xf32>
    %cst_66 = arith.constant dense<0.000000e+00> : vector<16x8xf32>
    %85 = tpu.matmul %1, %84, %cst_66 {dimension_numbers = #tpu.dot_dimension_numbers<[1], [0], [0], [1], [0, 0, 1, 1], [], []>} : vector<16x32xf32>, vector<32x8xf32>, vector<16x8xf32> -> vector<16x8xf32>
    %c2_67 = arith.constant 2 : index
    %c0_68 = arith.constant 0 : index
    %c0_69 = arith.constant 0 : index
    %86 = vector.load %arg6[%c2_67, %c0_68, %c0_69] : memref<4x1x8xf32, #tpu.memory_space<vmem>>, vector<1x1x8xf32>
    %87 = vector.shape_cast %86 : vector<1x1x8xf32> to vector<1x8xf32>
    %88 = vector.broadcast %87 : vector<1x8xf32> to vector<16x8xf32>
    %89 = arith.addf %85, %88 : vector<16x8xf32>
    %c2_70 = arith.constant 2 : index
    %c0_71 = arith.constant 0 : index
    %c0_72 = arith.constant 0 : index
    %90 = vector.load %arg4[%c2_70, %c0_71, %c0_72] : memref<4x32x8xf32, #tpu.memory_space<vmem>>, vector<1x32x8xf32>
    %91 = vector.shape_cast %90 : vector<1x32x8xf32> to vector<32x8xf32>
    %cst_73 = arith.constant dense<0.000000e+00> : vector<16x8xf32>
    %92 = tpu.matmul %3, %91, %cst_73 {dimension_numbers = #tpu.dot_dimension_numbers<[1], [0], [0], [1], [0, 0, 1, 1], [], []>} : vector<16x32xf32>, vector<32x8xf32>, vector<16x8xf32> -> vector<16x8xf32>
    %c2_74 = arith.constant 2 : index
    %c0_75 = arith.constant 0 : index
    %c0_76 = arith.constant 0 : index
    %93 = vector.load %arg7[%c2_74, %c0_75, %c0_76] : memref<4x1x8xf32, #tpu.memory_space<vmem>>, vector<1x1x8xf32>
    %94 = vector.shape_cast %93 : vector<1x1x8xf32> to vector<1x8xf32>
    %95 = vector.broadcast %94 : vector<1x8xf32> to vector<16x8xf32>
    %96 = arith.addf %92, %95 : vector<16x8xf32>
    %c2_77 = arith.constant 2 : index
    %c0_78 = arith.constant 0 : index
    %c0_79 = arith.constant 0 : index
    %97 = vector.load %arg5[%c2_77, %c0_78, %c0_79] : memref<4x32x8xf32, #tpu.memory_space<vmem>>, vector<1x32x8xf32>
    %98 = vector.shape_cast %97 : vector<1x32x8xf32> to vector<32x8xf32>
    %cst_80 = arith.constant dense<0.000000e+00> : vector<16x8xf32>
    %99 = tpu.matmul %3, %98, %cst_80 {dimension_numbers = #tpu.dot_dimension_numbers<[1], [0], [0], [1], [0, 0, 1, 1], [], []>} : vector<16x32xf32>, vector<32x8xf32>, vector<16x8xf32> -> vector<16x8xf32>
    %c2_81 = arith.constant 2 : index
    %c0_82 = arith.constant 0 : index
    %c0_83 = arith.constant 0 : index
    %100 = vector.load %arg8[%c2_81, %c0_82, %c0_83] : memref<4x1x8xf32, #tpu.memory_space<vmem>>, vector<1x1x8xf32>
    %101 = vector.shape_cast %100 : vector<1x1x8xf32> to vector<1x8xf32>
    %102 = vector.broadcast %101 : vector<1x8xf32> to vector<16x8xf32>
    %103 = arith.addf %99, %102 : vector<16x8xf32>
    %cst_84 = arith.constant dense<0.000000e+00> : vector<16x16xf32>
    %104 = tpu.matmul %89, %96, %cst_84 {dimension_numbers = #tpu.dot_dimension_numbers<[1], [1], [0], [0], [0, 0, 1, 0], [], []>} : vector<16x8xf32>, vector<16x8xf32>, vector<16x16xf32> -> vector<16x16xf32>
    %cst_85 = arith.constant 0.353553385 : f32
    %105 = vector.broadcast %cst_85 : f32 to vector<16x16xf32>
    %106 = arith.mulf %104, %105 : vector<16x16xf32>
    %cst_86 = arith.constant dense<0xFF800000> : vector<16xf32>
    %107 = vector.multi_reduction <maximumf>, %106, %cst_86 [1] : vector<16x16xf32> to vector<16xf32>
    %108 = vector.shape_cast %107 : vector<16xf32> to vector<16x1xf32>
    %109 = vector.broadcast %108 : vector<16x1xf32> to vector<16x16xf32>
    %110 = arith.subf %106, %109 : vector<16x16xf32>
    %111 = math.exp %110 : vector<16x16xf32>
    %cst_87 = arith.constant dense<0.000000e+00> : vector<16xf32>
    %112 = vector.multi_reduction <add>, %111, %cst_87 [1] : vector<16x16xf32> to vector<16xf32>
    %113 = vector.shape_cast %112 : vector<16xf32> to vector<16x1xf32>
    %114 = tpu.reciprocal %113 {approx = true} : vector<16x1xf32> -> vector<16x1xf32>
    %115 = vector.broadcast %114 : vector<16x1xf32> to vector<16x16xf32>
    %116 = arith.mulf %111, %115 : vector<16x16xf32>
    %cst_88 = arith.constant dense<0.000000e+00> : vector<16x8xf32>
    %117 = tpu.matmul %116, %103, %cst_88 {dimension_numbers = #tpu.dot_dimension_numbers<[1], [0], [0], [1], [0, 0, 1, 1], [], []>} : vector<16x16xf32>, vector<16x8xf32>, vector<16x8xf32> -> vector<16x8xf32>
    %c2_89 = arith.constant 2 : index
    %c0_90 = arith.constant 0 : index
    %c0_91 = arith.constant 0 : index
    %118 = vector.load %arg9[%c2_89, %c0_90, %c0_91] : memref<4x8x32xf32, #tpu.memory_space<vmem>>, vector<1x8x32xf32>
    %119 = vector.shape_cast %118 : vector<1x8x32xf32> to vector<8x32xf32>
    %cst_92 = arith.constant dense<0.000000e+00> : vector<16x32xf32>
    %120 = tpu.matmul %117, %119, %cst_92 {dimension_numbers = #tpu.dot_dimension_numbers<[1], [0], [0], [1], [0, 0, 1, 1], [], []>} : vector<16x8xf32>, vector<8x32xf32>, vector<16x32xf32> -> vector<16x32xf32>
    %121 = arith.addf %82, %120 : vector<16x32xf32>
    %c3 = arith.constant 3 : index
    %c0_93 = arith.constant 0 : index
    %c0_94 = arith.constant 0 : index
    %122 = vector.load %arg3[%c3, %c0_93, %c0_94] : memref<4x32x8xf32, #tpu.memory_space<vmem>>, vector<1x32x8xf32>
    %123 = vector.shape_cast %122 : vector<1x32x8xf32> to vector<32x8xf32>
    %cst_95 = arith.constant dense<0.000000e+00> : vector<16x8xf32>
    %124 = tpu.matmul %1, %123, %cst_95 {dimension_numbers = #tpu.dot_dimension_numbers<[1], [0], [0], [1], [0, 0, 1, 1], [], []>} : vector<16x32xf32>, vector<32x8xf32>, vector<16x8xf32> -> vector<16x8xf32>
    %c3_96 = arith.constant 3 : index
    %c0_97 = arith.constant 0 : index
    %c0_98 = arith.constant 0 : index
    %125 = vector.load %arg6[%c3_96, %c0_97, %c0_98] : memref<4x1x8xf32, #tpu.memory_space<vmem>>, vector<1x1x8xf32>
    %126 = vector.shape_cast %125 : vector<1x1x8xf32> to vector<1x8xf32>
    %127 = vector.broadcast %126 : vector<1x8xf32> to vector<16x8xf32>
    %128 = arith.addf %124, %127 : vector<16x8xf32>
    %c3_99 = arith.constant 3 : index
    %c0_100 = arith.constant 0 : index
    %c0_101 = arith.constant 0 : index
    %129 = vector.load %arg4[%c3_99, %c0_100, %c0_101] : memref<4x32x8xf32, #tpu.memory_space<vmem>>, vector<1x32x8xf32>
    %130 = vector.shape_cast %129 : vector<1x32x8xf32> to vector<32x8xf32>
    %cst_102 = arith.constant dense<0.000000e+00> : vector<16x8xf32>
    %131 = tpu.matmul %3, %130, %cst_102 {dimension_numbers = #tpu.dot_dimension_numbers<[1], [0], [0], [1], [0, 0, 1, 1], [], []>} : vector<16x32xf32>, vector<32x8xf32>, vector<16x8xf32> -> vector<16x8xf32>
    %c3_103 = arith.constant 3 : index
    %c0_104 = arith.constant 0 : index
    %c0_105 = arith.constant 0 : index
    %132 = vector.load %arg7[%c3_103, %c0_104, %c0_105] : memref<4x1x8xf32, #tpu.memory_space<vmem>>, vector<1x1x8xf32>
    %133 = vector.shape_cast %132 : vector<1x1x8xf32> to vector<1x8xf32>
    %134 = vector.broadcast %133 : vector<1x8xf32> to vector<16x8xf32>
    %135 = arith.addf %131, %134 : vector<16x8xf32>
    %c3_106 = arith.constant 3 : index
    %c0_107 = arith.constant 0 : index
    %c0_108 = arith.constant 0 : index
    %136 = vector.load %arg5[%c3_106, %c0_107, %c0_108] : memref<4x32x8xf32, #tpu.memory_space<vmem>>, vector<1x32x8xf32>
    %137 = vector.shape_cast %136 : vector<1x32x8xf32> to vector<32x8xf32>
    %cst_109 = arith.constant dense<0.000000e+00> : vector<16x8xf32>
    %138 = tpu.matmul %3, %137, %cst_109 {dimension_numbers = #tpu.dot_dimension_numbers<[1], [0], [0], [1], [0, 0, 1, 1], [], []>} : vector<16x32xf32>, vector<32x8xf32>, vector<16x8xf32> -> vector<16x8xf32>
    %c3_110 = arith.constant 3 : index
    %c0_111 = arith.constant 0 : index
    %c0_112 = arith.constant 0 : index
    %139 = vector.load %arg8[%c3_110, %c0_111, %c0_112] : memref<4x1x8xf32, #tpu.memory_space<vmem>>, vector<1x1x8xf32>
    %140 = vector.shape_cast %139 : vector<1x1x8xf32> to vector<1x8xf32>
    %141 = vector.broadcast %140 : vector<1x8xf32> to vector<16x8xf32>
    %142 = arith.addf %138, %141 : vector<16x8xf32>
    %cst_113 = arith.constant dense<0.000000e+00> : vector<16x16xf32>
    %143 = tpu.matmul %128, %135, %cst_113 {dimension_numbers = #tpu.dot_dimension_numbers<[1], [1], [0], [0], [0, 0, 1, 0], [], []>} : vector<16x8xf32>, vector<16x8xf32>, vector<16x16xf32> -> vector<16x16xf32>
    %cst_114 = arith.constant 0.353553385 : f32
    %144 = vector.broadcast %cst_114 : f32 to vector<16x16xf32>
    %145 = arith.mulf %143, %144 : vector<16x16xf32>
    %cst_115 = arith.constant dense<0xFF800000> : vector<16xf32>
    %146 = vector.multi_reduction <maximumf>, %145, %cst_115 [1] : vector<16x16xf32> to vector<16xf32>
    %147 = vector.shape_cast %146 : vector<16xf32> to vector<16x1xf32>
    %148 = vector.broadcast %147 : vector<16x1xf32> to vector<16x16xf32>
    %149 = arith.subf %145, %148 : vector<16x16xf32>
    %150 = math.exp %149 : vector<16x16xf32>
    %cst_116 = arith.constant dense<0.000000e+00> : vector<16xf32>
    %151 = vector.multi_reduction <add>, %150, %cst_116 [1] : vector<16x16xf32> to vector<16xf32>
    %152 = vector.shape_cast %151 : vector<16xf32> to vector<16x1xf32>
    %153 = tpu.reciprocal %152 {approx = true} : vector<16x1xf32> -> vector<16x1xf32>
    %154 = vector.broadcast %153 : vector<16x1xf32> to vector<16x16xf32>
    %155 = arith.mulf %150, %154 : vector<16x16xf32>
    %cst_117 = arith.constant dense<0.000000e+00> : vector<16x8xf32>
    %156 = tpu.matmul %155, %142, %cst_117 {dimension_numbers = #tpu.dot_dimension_numbers<[1], [0], [0], [1], [0, 0, 1, 1], [], []>} : vector<16x16xf32>, vector<16x8xf32>, vector<16x8xf32> -> vector<16x8xf32>
    %c3_118 = arith.constant 3 : index
    %c0_119 = arith.constant 0 : index
    %c0_120 = arith.constant 0 : index
    %157 = vector.load %arg9[%c3_118, %c0_119, %c0_120] : memref<4x8x32xf32, #tpu.memory_space<vmem>>, vector<1x8x32xf32>
    %158 = vector.shape_cast %157 : vector<1x8x32xf32> to vector<8x32xf32>
    %cst_121 = arith.constant dense<0.000000e+00> : vector<16x32xf32>
    %159 = tpu.matmul %156, %158, %cst_121 {dimension_numbers = #tpu.dot_dimension_numbers<[1], [0], [0], [1], [0, 0, 1, 1], [], []>} : vector<16x8xf32>, vector<8x32xf32>, vector<16x32xf32> -> vector<16x32xf32>
    %160 = arith.addf %121, %159 : vector<16x32xf32>
    %161 = arith.addf %1, %160 : vector<16x32xf32>
    %c0_122 = arith.constant 0 : index
    %c0_123 = arith.constant 0 : index
    %162 = vector.load %arg10[%c0_122, %c0_123] : memref<1x32xf32, #tpu.memory_space<vmem>>, vector<1x32xf32>
    %163 = vector.broadcast %162 : vector<1x32xf32> to vector<16x32xf32>
    %164 = arith.addf %161, %163 : vector<16x32xf32>
    %c0_124 = arith.constant 0 : index
    %c0_125 = arith.constant 0 : index
    %165 = vector.load %arg11[%c0_124, %c0_125] : memref<1x32xf32, #tpu.memory_space<vmem>>, vector<1x32xf32>
    %c0_126 = arith.constant 0 : index
    %c0_127 = arith.constant 0 : index
    %166 = vector.load %arg12[%c0_126, %c0_127] : memref<1x32xf32, #tpu.memory_space<vmem>>, vector<1x32xf32>
    %cst_128 = arith.constant dense<0.000000e+00> : vector<16xf32>
    %167 = vector.multi_reduction <add>, %164, %cst_128 [1] : vector<16x32xf32> to vector<16xf32>
    %168 = vector.shape_cast %167 : vector<16xf32> to vector<16x1xf32>
    %cst_129 = arith.constant 3.200000e+01 : f32
    %169 = vector.broadcast %cst_129 : f32 to vector<16x1xf32>
    %170 = arith.divf %168, %169 : vector<16x1xf32>
    %171 = vector.broadcast %170 : vector<16x1xf32> to vector<16x32xf32>
    %172 = arith.subf %164, %171 : vector<16x32xf32>
    %173 = arith.mulf %172, %172 : vector<16x32xf32>
    %cst_130 = arith.constant dense<0.000000e+00> : vector<16xf32>
    %174 = vector.multi_reduction <add>, %173, %cst_130 [1] : vector<16x32xf32> to vector<16xf32>
    %175 = vector.shape_cast %174 : vector<16xf32> to vector<16x1xf32>
    %cst_131 = arith.constant 3.200000e+01 : f32
    %176 = vector.broadcast %cst_131 : f32 to vector<16x1xf32>
    %177 = arith.divf %175, %176 : vector<16x1xf32>
    %cst_132 = arith.constant 9.99999974E-6 : f32
    %178 = vector.broadcast %cst_132 : f32 to vector<16x1xf32>
    %179 = arith.addf %177, %178 : vector<16x1xf32>
    %180 = math.rsqrt %179 : vector<16x1xf32>
    %181 = vector.broadcast %180 : vector<16x1xf32> to vector<16x32xf32>
    %182 = arith.mulf %172, %181 : vector<16x32xf32>
    %183 = vector.broadcast %165 : vector<1x32xf32> to vector<16x32xf32>
    %184 = arith.mulf %182, %183 : vector<16x32xf32>
    %185 = vector.broadcast %166 : vector<1x32xf32> to vector<16x32xf32>
    %186 = arith.addf %184, %185 : vector<16x32xf32>
    %c0_133 = arith.constant 0 : index
    %c0_134 = arith.constant 0 : index
    %c0_135 = arith.constant 0 : index
    %187 = vector.load %arg13[%c0_133, %c0_134, %c0_135] : memref<1x16x32xf32, #tpu.memory_space<vmem>>, vector<1x16x32xf32>
    %188 = vector.shape_cast %187 : vector<1x16x32xf32> to vector<16x32xf32>
    %189 = vector.shape_cast %186 : vector<16x32xf32> to vector<1x16x32xf32>
    tpu.vector_store %arg13[%c0_133, %c0_134, %c0_135], %189 {strides = array<i32>} : memref<1x16x32xf32, #tpu.memory_space<vmem>>, vector<1x16x32xf32>,
    return
  }
  func.func @transform_0(%arg0: i32) -> (i32, i32, i32) {
    %c0_i32 = arith.constant 0 : i32
    %c0_i32_0 = arith.constant 0 : i32
    %c0_i32_1 = arith.constant 0 : i32
    return %arg0, %c0_i32, %c0_i32_0 : i32, i32, i32
  }
  func.func @transform_1(%arg0: i32) -> (i32, i32, i32) {
    %c0_i32 = arith.constant 0 : i32
    %c0_i32_0 = arith.constant 0 : i32
    %c0_i32_1 = arith.constant 0 : i32
    return %arg0, %c0_i32, %c0_i32_0 : i32, i32, i32
  }
  func.func @transform_2(%arg0: i32) -> (i32, i32, i32) {
    %c0_i32 = arith.constant 0 : i32
    %c0_i32_0 = arith.constant 0 : i32
    %c0_i32_1 = arith.constant 0 : i32
    %c0_i32_2 = arith.constant 0 : i32
    return %c0_i32, %c0_i32_0, %c0_i32_1 : i32, i32, i32
  }
  func.func @transform_3(%arg0: i32) -> (i32, i32, i32) {
    %c0_i32 = arith.constant 0 : i32
    %c0_i32_0 = arith.constant 0 : i32
    %c0_i32_1 = arith.constant 0 : i32
    %c0_i32_2 = arith.constant 0 : i32
    return %c0_i32, %c0_i32_0, %c0_i32_1 : i32, i32, i32
  }
  func.func @transform_4(%arg0: i32) -> (i32, i32, i32) {
    %c0_i32 = arith.constant 0 : i32
    %c0_i32_0 = arith.constant 0 : i32
    %c0_i32_1 = arith.constant 0 : i32
    %c0_i32_2 = arith.constant 0 : i32
    return %c0_i32, %c0_i32_0, %c0_i32_1 : i32, i32, i32
  }
  func.func @transform_5(%arg0: i32) -> (i32, i32, i32) {
    %c0_i32 = arith.constant 0 : i32
    %c0_i32_0 = arith.constant 0 : i32
    %c0_i32_1 = arith.constant 0 : i32
    %c0_i32_2 = arith.constant 0 : i32
    return %c0_i32, %c0_i32_0, %c0_i32_1 : i32, i32, i32
  }
  func.func @transform_6(%arg0: i32) -> (i32, i32, i32) {
    %c0_i32 = arith.constant 0 : i32
    %c0_i32_0 = arith.constant 0 : i32
    %c0_i32_1 = arith.constant 0 : i32
    %c0_i32_2 = arith.constant 0 : i32
    return %c0_i32, %c0_i32_0, %c0_i32_1 : i32, i32, i32
  }
  func.func @transform_7(%arg0: i32) -> (i32, i32, i32) {
    %c0_i32 = arith.constant 0 : i32
    %c0_i32_0 = arith.constant 0 : i32
    %c0_i32_1 = arith.constant 0 : i32
    %c0_i32_2 = arith.constant 0 : i32
    return %c0_i32, %c0_i32_0, %c0_i32_1 : i32, i32, i32
  }
  func.func @transform_8(%arg0: i32) -> (i32, i32, i32) {
    %c0_i32 = arith.constant 0 : i32
    %c0_i32_0 = arith.constant 0 : i32
    %c0_i32_1 = arith.constant 0 : i32
    %c0_i32_2 = arith.constant 0 : i32
    return %c0_i32, %c0_i32_0, %c0_i32_1 : i32, i32, i32
  }
  func.func @transform_9(%arg0: i32) -> (i32, i32) {
    %c0_i32 = arith.constant 0 : i32
    %c0_i32_0 = arith.constant 0 : i32
    %c0_i32_1 = arith.constant 0 : i32
    return %c0_i32, %c0_i32_0 : i32, i32
  }
  func.func @transform_10(%arg0: i32) -> (i32, i32) {
    %c0_i32 = arith.constant 0 : i32
    %c0_i32_0 = arith.constant 0 : i32
    %c0_i32_1 = arith.constant 0 : i32
    return %c0_i32, %c0_i32_0 : i32, i32
  }
  func.func @transform_11(%arg0: i32) -> (i32, i32) {
    %c0_i32 = arith.constant 0 : i32
    %c0_i32_0 = arith.constant 0 : i32
    %c0_i32_1 = arith.constant 0 : i32
    return %c0_i32, %c0_i32_0 : i32, i32
  }
  func.func @transform_12(%arg0: i32) -> (i32, i32, i32) {
    %c0_i32 = arith.constant 0 : i32
    %c0_i32_0 = arith.constant 0 : i32
    %c0_i32_1 = arith.constant 0 : i32
    return %arg0, %c0_i32, %c0_i32_0 : i32, i32, i32
  }
}

module attributes {stable_mosaic.version = 11 : i64} {
  func.func @_ln_kernel(%arg0: i32, %arg1: memref<1x16x32xf32, #tpu.memory_space<vmem>>, %arg2: memref<1x32xf32, #tpu.memory_space<vmem>>, %arg3: memref<1x32xf32, #tpu.memory_space<vmem>>, %arg4: memref<1x16x32xf32, #tpu.memory_space<vmem>>) attributes {dimension_semantics = [#tpu.dimension_semantics<parallel>], iteration_bounds = array<i64: 2>, scalar_prefetch = 0 : i64, scratch_operands = 0 : i64, tpu.core_type = #tpu.core_type<tc>, window_params = [{transform_indices = @transform_0, window_bounds = array<i64: 1, 16, 32>}, {pipeline_mode = #tpu.pipeline_mode<synchronous>, transform_indices = @transform_1, window_bounds = array<i64: 1, 32>}, {pipeline_mode = #tpu.pipeline_mode<synchronous>, transform_indices = @transform_2, window_bounds = array<i64: 1, 32>}, {transform_indices = @transform_3, window_bounds = array<i64: 1, 16, 32>}]} {
    %c0 = arith.constant 0 : index
    %c0_0 = arith.constant 0 : index
    %c0_1 = arith.constant 0 : index
    %0 = vector.load %arg1[%c0, %c0_0, %c0_1] : memref<1x16x32xf32, #tpu.memory_space<vmem>>, vector<1x16x32xf32>
    %1 = vector.shape_cast %0 : vector<1x16x32xf32> to vector<16x32xf32>
    %c0_2 = arith.constant 0 : index
    %c0_3 = arith.constant 0 : index
    %2 = vector.load %arg2[%c0_2, %c0_3] : memref<1x32xf32, #tpu.memory_space<vmem>>, vector<1x32xf32>
    %c0_4 = arith.constant 0 : index
    %c0_5 = arith.constant 0 : index
    %3 = vector.load %arg3[%c0_4, %c0_5] : memref<1x32xf32, #tpu.memory_space<vmem>>, vector<1x32xf32>
    %cst = arith.constant dense<0.000000e+00> : vector<16xf32>
    %4 = vector.multi_reduction <add>, %1, %cst [1] : vector<16x32xf32> to vector<16xf32>
    %5 = vector.shape_cast %4 : vector<16xf32> to vector<16x1xf32>
    %cst_6 = arith.constant 3.200000e+01 : f32
    %6 = vector.broadcast %cst_6 : f32 to vector<16x1xf32>
    %7 = arith.divf %5, %6 : vector<16x1xf32>
    %8 = vector.broadcast %7 : vector<16x1xf32> to vector<16x32xf32>
    %9 = arith.subf %1, %8 : vector<16x32xf32>
    %10 = arith.mulf %9, %9 : vector<16x32xf32>
    %cst_7 = arith.constant dense<0.000000e+00> : vector<16xf32>
    %11 = vector.multi_reduction <add>, %10, %cst_7 [1] : vector<16x32xf32> to vector<16xf32>
    %12 = vector.shape_cast %11 : vector<16xf32> to vector<16x1xf32>
    %cst_8 = arith.constant 3.200000e+01 : f32
    %13 = vector.broadcast %cst_8 : f32 to vector<16x1xf32>
    %14 = arith.divf %12, %13 : vector<16x1xf32>
    %cst_9 = arith.constant 9.99999974E-6 : f32
    %15 = vector.broadcast %cst_9 : f32 to vector<16x1xf32>
    %16 = arith.addf %14, %15 : vector<16x1xf32>
    %17 = math.rsqrt %16 : vector<16x1xf32>
    %18 = vector.broadcast %17 : vector<16x1xf32> to vector<16x32xf32>
    %19 = arith.mulf %9, %18 : vector<16x32xf32>
    %20 = vector.broadcast %2 : vector<1x32xf32> to vector<16x32xf32>
    %21 = arith.mulf %19, %20 : vector<16x32xf32>
    %22 = vector.broadcast %3 : vector<1x32xf32> to vector<16x32xf32>
    %23 = arith.addf %21, %22 : vector<16x32xf32>
    %c0_10 = arith.constant 0 : index
    %c0_11 = arith.constant 0 : index
    %c0_12 = arith.constant 0 : index
    %24 = vector.load %arg4[%c0_10, %c0_11, %c0_12] : memref<1x16x32xf32, #tpu.memory_space<vmem>>, vector<1x16x32xf32>
    %25 = vector.shape_cast %24 : vector<1x16x32xf32> to vector<16x32xf32>
    %26 = vector.shape_cast %23 : vector<16x32xf32> to vector<1x16x32xf32>
    tpu.vector_store %arg4[%c0_10, %c0_11, %c0_12], %26 {strides = array<i32>} : memref<1x16x32xf32, #tpu.memory_space<vmem>>, vector<1x16x32xf32>,
    return
  }
  func.func @transform_0(%arg0: i32) -> (i32, i32, i32) {
    %c0_i32 = arith.constant 0 : i32
    %c0_i32_0 = arith.constant 0 : i32
    %c0_i32_1 = arith.constant 0 : i32
    return %arg0, %c0_i32, %c0_i32_0 : i32, i32, i32
  }
  func.func @transform_1(%arg0: i32) -> (i32, i32) {
    %c0_i32 = arith.constant 0 : i32
    %c0_i32_0 = arith.constant 0 : i32
    %c0_i32_1 = arith.constant 0 : i32
    return %c0_i32, %c0_i32_0 : i32, i32
  }
  func.func @transform_2(%arg0: i32) -> (i32, i32) {
    %c0_i32 = arith.constant 0 : i32
    %c0_i32_0 = arith.constant 0 : i32
    %c0_i32_1 = arith.constant 0 : i32
    return %c0_i32, %c0_i32_0 : i32, i32
  }
  func.func @transform_3(%arg0: i32) -> (i32, i32, i32) {
    %c0_i32 = arith.constant 0 : i32
    %c0_i32_0 = arith.constant 0 : i32
    %c0_i32_1 = arith.constant 0 : i32
    return %arg0, %c0_i32, %c0_i32_0 : i32, i32, i32
  }
}

module attributes {stable_mosaic.version = 11 : i64} {
  func.func @_mha_ln_kernel(%arg0: i32, %arg1: memref<1x16x32xf32, #tpu.memory_space<vmem>>, %arg2: memref<1x16x32xf32, #tpu.memory_space<vmem>>, %arg3: memref<4x32x8xf32, #tpu.memory_space<vmem>>, %arg4: memref<4x32x8xf32, #tpu.memory_space<vmem>>, %arg5: memref<4x32x8xf32, #tpu.memory_space<vmem>>, %arg6: memref<4x1x8xf32, #tpu.memory_space<vmem>>, %arg7: memref<4x1x8xf32, #tpu.memory_space<vmem>>, %arg8: memref<4x1x8xf32, #tpu.memory_space<vmem>>, %arg9: memref<4x8x32xf32, #tpu.memory_space<vmem>>, %arg10: memref<1x32xf32, #tpu.memory_space<vmem>>, %arg11: memref<1x32xf32, #tpu.memory_space<vmem>>, %arg12: memref<1x32xf32, #tpu.memory_space<vmem>>, %arg13: memref<1x16x32xf32, #tpu.memory_space<vmem>>) attributes {dimension_semantics = [#tpu.dimension_semantics<parallel>], iteration_bounds = array<i64: 2>, scalar_prefetch = 0 : i64, scratch_operands = 0 : i64, tpu.core_type = #tpu.core_type<tc>, window_params = [{transform_indices = @transform_0, window_bounds = array<i64: 1, 16, 32>}, {transform_indices = @transform_1, window_bounds = array<i64: 1, 16, 32>}, {pipeline_mode = #tpu.pipeline_mode<synchronous>, transform_indices = @transform_2, window_bounds = array<i64: 4, 32, 8>}, {pipeline_mode = #tpu.pipeline_mode<synchronous>, transform_indices = @transform_3, window_bounds = array<i64: 4, 32, 8>}, {pipeline_mode = #tpu.pipeline_mode<synchronous>, transform_indices = @transform_4, window_bounds = array<i64: 4, 32, 8>}, {pipeline_mode = #tpu.pipeline_mode<synchronous>, transform_indices = @transform_5, window_bounds = array<i64: 4, 1, 8>}, {pipeline_mode = #tpu.pipeline_mode<synchronous>, transform_indices = @transform_6, window_bounds = array<i64: 4, 1, 8>}, {pipeline_mode = #tpu.pipeline_mode<synchronous>, transform_indices = @transform_7, window_bounds = array<i64: 4, 1, 8>}, {pipeline_mode = #tpu.pipeline_mode<synchronous>, transform_indices = @transform_8, window_bounds = array<i64: 4, 8, 32>}, {pipeline_mode = #tpu.pipeline_mode<synchronous>, transform_indices = @transform_9, window_bounds = array<i64: 1, 32>}, {pipeline_mode = #tpu.pipeline_mode<synchronous>, transform_indices = @transform_10, window_bounds = array<i64: 1, 32>}, {pipeline_mode = #tpu.pipeline_mode<synchronous>, transform_indices = @transform_11, window_bounds = array<i64: 1, 32>}, {transform_indices = @transform_12, window_bounds = array<i64: 1, 16, 32>}]} {
    %c0 = arith.constant 0 : index
    %c0_0 = arith.constant 0 : index
    %c0_1 = arith.constant 0 : index
    %0 = vector.load %arg1[%c0, %c0_0, %c0_1] : memref<1x16x32xf32, #tpu.memory_space<vmem>>, vector<1x16x32xf32>
    %1 = vector.shape_cast %0 : vector<1x16x32xf32> to vector<16x32xf32>
    %c0_2 = arith.constant 0 : index
    %c0_3 = arith.constant 0 : index
    %c0_4 = arith.constant 0 : index
    %2 = vector.load %arg2[%c0_2, %c0_3, %c0_4] : memref<1x16x32xf32, #tpu.memory_space<vmem>>, vector<1x16x32xf32>
    %3 = vector.shape_cast %2 : vector<1x16x32xf32> to vector<16x32xf32>
    %4 = tpu.iota {dimensions = array<i32: 0>} : vector<16x16xi32>
    %5 = tpu.iota {dimensions = array<i32: 1>} : vector<16x16xi32>
    %cst = arith.constant 0.000000e+00 : f32
    %6 = vector.broadcast %cst : f32 to vector<16x32xf32>
    %c0_5 = arith.constant 0 : index
    %c0_6 = arith.constant 0 : index
    %c0_7 = arith.constant 0 : index
    %7 = vector.load %arg3[%c0_5, %c0_6, %c0_7] : memref<4x32x8xf32, #tpu.memory_space<vmem>>, vector<1x32x8xf32>
    %8 = vector.shape_cast %7 : vector<1x32x8xf32> to vector<32x8xf32>
    %cst_8 = arith.constant dense<0.000000e+00> : vector<16x8xf32>
    %9 = tpu.matmul %1, %8, %cst_8 {dimension_numbers = #tpu.dot_dimension_numbers<[1], [0], [0], [1], [0, 0, 1, 1], [], []>} : vector<16x32xf32>, vector<32x8xf32>, vector<16x8xf32> -> vector<16x8xf32>
    %c0_9 = arith.constant 0 : index
    %c0_10 = arith.constant 0 : index
    %c0_11 = arith.constant 0 : index
    %10 = vector.load %arg6[%c0_9, %c0_10, %c0_11] : memref<4x1x8xf32, #tpu.memory_space<vmem>>, vector<1x1x8xf32>
    %11 = vector.shape_cast %10 : vector<1x1x8xf32> to vector<1x8xf32>
    %12 = vector.broadcast %11 : vector<1x8xf32> to vector<16x8xf32>
    %13 = arith.addf %9, %12 : vector<16x8xf32>
    %c0_12 = arith.constant 0 : index
    %c0_13 = arith.constant 0 : index
    %c0_14 = arith.constant 0 : index
    %14 = vector.load %arg4[%c0_12, %c0_13, %c0_14] : memref<4x32x8xf32, #tpu.memory_space<vmem>>, vector<1x32x8xf32>
    %15 = vector.shape_cast %14 : vector<1x32x8xf32> to vector<32x8xf32>
    %cst_15 = arith.constant dense<0.000000e+00> : vector<16x8xf32>
    %16 = tpu.matmul %3, %15, %cst_15 {dimension_numbers = #tpu.dot_dimension_numbers<[1], [0], [0], [1], [0, 0, 1, 1], [], []>} : vector<16x32xf32>, vector<32x8xf32>, vector<16x8xf32> -> vector<16x8xf32>
    %c0_16 = arith.constant 0 : index
    %c0_17 = arith.constant 0 : index
    %c0_18 = arith.constant 0 : index
    %17 = vector.load %arg7[%c0_16, %c0_17, %c0_18] : memref<4x1x8xf32, #tpu.memory_space<vmem>>, vector<1x1x8xf32>
    %18 = vector.shape_cast %17 : vector<1x1x8xf32> to vector<1x8xf32>
    %19 = vector.broadcast %18 : vector<1x8xf32> to vector<16x8xf32>
    %20 = arith.addf %16, %19 : vector<16x8xf32>
    %c0_19 = arith.constant 0 : index
    %c0_20 = arith.constant 0 : index
    %c0_21 = arith.constant 0 : index
    %21 = vector.load %arg5[%c0_19, %c0_20, %c0_21] : memref<4x32x8xf32, #tpu.memory_space<vmem>>, vector<1x32x8xf32>
    %22 = vector.shape_cast %21 : vector<1x32x8xf32> to vector<32x8xf32>
    %cst_22 = arith.constant dense<0.000000e+00> : vector<16x8xf32>
    %23 = tpu.matmul %3, %22, %cst_22 {dimension_numbers = #tpu.dot_dimension_numbers<[1], [0], [0], [1], [0, 0, 1, 1], [], []>} : vector<16x32xf32>, vector<32x8xf32>, vector<16x8xf32> -> vector<16x8xf32>
    %c0_23 = arith.constant 0 : index
    %c0_24 = arith.constant 0 : index
    %c0_25 = arith.constant 0 : index
    %24 = vector.load %arg8[%c0_23, %c0_24, %c0_25] : memref<4x1x8xf32, #tpu.memory_space<vmem>>, vector<1x1x8xf32>
    %25 = vector.shape_cast %24 : vector<1x1x8xf32> to vector<1x8xf32>
    %26 = vector.broadcast %25 : vector<1x8xf32> to vector<16x8xf32>
    %27 = arith.addf %23, %26 : vector<16x8xf32>
    %cst_26 = arith.constant dense<0.000000e+00> : vector<16x16xf32>
    %28 = tpu.matmul %13, %20, %cst_26 {dimension_numbers = #tpu.dot_dimension_numbers<[1], [1], [0], [0], [0, 0, 1, 0], [], []>} : vector<16x8xf32>, vector<16x8xf32>, vector<16x16xf32> -> vector<16x16xf32>
    %cst_27 = arith.constant 0.353553385 : f32
    %29 = vector.broadcast %cst_27 : f32 to vector<16x16xf32>
    %30 = arith.mulf %28, %29 : vector<16x16xf32>
    %31 = arith.cmpi sgt, %5, %4 : vector<16x16xi32>
    %cst_28 = arith.constant 0xFF800000 : f32
    %32 = vector.broadcast %cst_28 : f32 to vector<16x16xf32>
    %33 = arith.select %31, %32, %30 : vector<16x16xi1>, vector<16x16xf32>
    %cst_29 = arith.constant dense<0xFF800000> : vector<16xf32>
    %34 = vector.multi_reduction <maximumf>, %33, %cst_29 [1] : vector<16x16xf32> to vector<16xf32>
    %35 = vector.shape_cast %34 : vector<16xf32> to vector<16x1xf32>
    %36 = vector.broadcast %35 : vector<16x1xf32> to vector<16x16xf32>
    %37 = arith.subf %33, %36 : vector<16x16xf32>
    %38 = math.exp %37 : vector<16x16xf32>
    %cst_30 = arith.constant dense<0.000000e+00> : vector<16xf32>
    %39 = vector.multi_reduction <add>, %38, %cst_30 [1] : vector<16x16xf32> to vector<16xf32>
    %40 = vector.shape_cast %39 : vector<16xf32> to vector<16x1xf32>
    %41 = tpu.reciprocal %40 {approx = true} : vector<16x1xf32> -> vector<16x1xf32>
    %42 = vector.broadcast %41 : vector<16x1xf32> to vector<16x16xf32>
    %43 = arith.mulf %38, %42 : vector<16x16xf32>
    %cst_31 = arith.constant dense<0.000000e+00> : vector<16x8xf32>
    %44 = tpu.matmul %43, %27, %cst_31 {dimension_numbers = #tpu.dot_dimension_numbers<[1], [0], [0], [1], [0, 0, 1, 1], [], []>} : vector<16x16xf32>, vector<16x8xf32>, vector<16x8xf32> -> vector<16x8xf32>
    %c0_32 = arith.constant 0 : index
    %c0_33 = arith.constant 0 : index
    %c0_34 = arith.constant 0 : index
    %45 = vector.load %arg9[%c0_32, %c0_33, %c0_34] : memref<4x8x32xf32, #tpu.memory_space<vmem>>, vector<1x8x32xf32>
    %46 = vector.shape_cast %45 : vector<1x8x32xf32> to vector<8x32xf32>
    %cst_35 = arith.constant dense<0.000000e+00> : vector<16x32xf32>
    %47 = tpu.matmul %44, %46, %cst_35 {dimension_numbers = #tpu.dot_dimension_numbers<[1], [0], [0], [1], [0, 0, 1, 1], [], []>} : vector<16x8xf32>, vector<8x32xf32>, vector<16x32xf32> -> vector<16x32xf32>
    %48 = arith.addf %6, %47 : vector<16x32xf32>
    %c1 = arith.constant 1 : index
    %c0_36 = arith.constant 0 : index
    %c0_37 = arith.constant 0 : index
    %49 = vector.load %arg3[%c1, %c0_36, %c0_37] : memref<4x32x8xf32, #tpu.memory_space<vmem>>, vector<1x32x8xf32>
    %50 = vector.shape_cast %49 : vector<1x32x8xf32> to vector<32x8xf32>
    %cst_38 = arith.constant dense<0.000000e+00> : vector<16x8xf32>
    %51 = tpu.matmul %1, %50, %cst_38 {dimension_numbers = #tpu.dot_dimension_numbers<[1], [0], [0], [1], [0, 0, 1, 1], [], []>} : vector<16x32xf32>, vector<32x8xf32>, vector<16x8xf32> -> vector<16x8xf32>
    %c1_39 = arith.constant 1 : index
    %c0_40 = arith.constant 0 : index
    %c0_41 = arith.constant 0 : index
    %52 = vector.load %arg6[%c1_39, %c0_40, %c0_41] : memref<4x1x8xf32, #tpu.memory_space<vmem>>, vector<1x1x8xf32>
    %53 = vector.shape_cast %52 : vector<1x1x8xf32> to vector<1x8xf32>
    %54 = vector.broadcast %53 : vector<1x8xf32> to vector<16x8xf32>
    %55 = arith.addf %51, %54 : vector<16x8xf32>
    %c1_42 = arith.constant 1 : index
    %c0_43 = arith.constant 0 : index
    %c0_44 = arith.constant 0 : index
    %56 = vector.load %arg4[%c1_42, %c0_43, %c0_44] : memref<4x32x8xf32, #tpu.memory_space<vmem>>, vector<1x32x8xf32>
    %57 = vector.shape_cast %56 : vector<1x32x8xf32> to vector<32x8xf32>
    %cst_45 = arith.constant dense<0.000000e+00> : vector<16x8xf32>
    %58 = tpu.matmul %3, %57, %cst_45 {dimension_numbers = #tpu.dot_dimension_numbers<[1], [0], [0], [1], [0, 0, 1, 1], [], []>} : vector<16x32xf32>, vector<32x8xf32>, vector<16x8xf32> -> vector<16x8xf32>
    %c1_46 = arith.constant 1 : index
    %c0_47 = arith.constant 0 : index
    %c0_48 = arith.constant 0 : index
    %59 = vector.load %arg7[%c1_46, %c0_47, %c0_48] : memref<4x1x8xf32, #tpu.memory_space<vmem>>, vector<1x1x8xf32>
    %60 = vector.shape_cast %59 : vector<1x1x8xf32> to vector<1x8xf32>
    %61 = vector.broadcast %60 : vector<1x8xf32> to vector<16x8xf32>
    %62 = arith.addf %58, %61 : vector<16x8xf32>
    %c1_49 = arith.constant 1 : index
    %c0_50 = arith.constant 0 : index
    %c0_51 = arith.constant 0 : index
    %63 = vector.load %arg5[%c1_49, %c0_50, %c0_51] : memref<4x32x8xf32, #tpu.memory_space<vmem>>, vector<1x32x8xf32>
    %64 = vector.shape_cast %63 : vector<1x32x8xf32> to vector<32x8xf32>
    %cst_52 = arith.constant dense<0.000000e+00> : vector<16x8xf32>
    %65 = tpu.matmul %3, %64, %cst_52 {dimension_numbers = #tpu.dot_dimension_numbers<[1], [0], [0], [1], [0, 0, 1, 1], [], []>} : vector<16x32xf32>, vector<32x8xf32>, vector<16x8xf32> -> vector<16x8xf32>
    %c1_53 = arith.constant 1 : index
    %c0_54 = arith.constant 0 : index
    %c0_55 = arith.constant 0 : index
    %66 = vector.load %arg8[%c1_53, %c0_54, %c0_55] : memref<4x1x8xf32, #tpu.memory_space<vmem>>, vector<1x1x8xf32>
    %67 = vector.shape_cast %66 : vector<1x1x8xf32> to vector<1x8xf32>
    %68 = vector.broadcast %67 : vector<1x8xf32> to vector<16x8xf32>
    %69 = arith.addf %65, %68 : vector<16x8xf32>
    %cst_56 = arith.constant dense<0.000000e+00> : vector<16x16xf32>
    %70 = tpu.matmul %55, %62, %cst_56 {dimension_numbers = #tpu.dot_dimension_numbers<[1], [1], [0], [0], [0, 0, 1, 0], [], []>} : vector<16x8xf32>, vector<16x8xf32>, vector<16x16xf32> -> vector<16x16xf32>
    %cst_57 = arith.constant 0.353553385 : f32
    %71 = vector.broadcast %cst_57 : f32 to vector<16x16xf32>
    %72 = arith.mulf %70, %71 : vector<16x16xf32>
    %73 = arith.cmpi sgt, %5, %4 : vector<16x16xi32>
    %cst_58 = arith.constant 0xFF800000 : f32
    %74 = vector.broadcast %cst_58 : f32 to vector<16x16xf32>
    %75 = arith.select %73, %74, %72 : vector<16x16xi1>, vector<16x16xf32>
    %cst_59 = arith.constant dense<0xFF800000> : vector<16xf32>
    %76 = vector.multi_reduction <maximumf>, %75, %cst_59 [1] : vector<16x16xf32> to vector<16xf32>
    %77 = vector.shape_cast %76 : vector<16xf32> to vector<16x1xf32>
    %78 = vector.broadcast %77 : vector<16x1xf32> to vector<16x16xf32>
    %79 = arith.subf %75, %78 : vector<16x16xf32>
    %80 = math.exp %79 : vector<16x16xf32>
    %cst_60 = arith.constant dense<0.000000e+00> : vector<16xf32>
    %81 = vector.multi_reduction <add>, %80, %cst_60 [1] : vector<16x16xf32> to vector<16xf32>
    %82 = vector.shape_cast %81 : vector<16xf32> to vector<16x1xf32>
    %83 = tpu.reciprocal %82 {approx = true} : vector<16x1xf32> -> vector<16x1xf32>
    %84 = vector.broadcast %83 : vector<16x1xf32> to vector<16x16xf32>
    %85 = arith.mulf %80, %84 : vector<16x16xf32>
    %cst_61 = arith.constant dense<0.000000e+00> : vector<16x8xf32>
    %86 = tpu.matmul %85, %69, %cst_61 {dimension_numbers = #tpu.dot_dimension_numbers<[1], [0], [0], [1], [0, 0, 1, 1], [], []>} : vector<16x16xf32>, vector<16x8xf32>, vector<16x8xf32> -> vector<16x8xf32>
    %c1_62 = arith.constant 1 : index
    %c0_63 = arith.constant 0 : index
    %c0_64 = arith.constant 0 : index
    %87 = vector.load %arg9[%c1_62, %c0_63, %c0_64] : memref<4x8x32xf32, #tpu.memory_space<vmem>>, vector<1x8x32xf32>
    %88 = vector.shape_cast %87 : vector<1x8x32xf32> to vector<8x32xf32>
    %cst_65 = arith.constant dense<0.000000e+00> : vector<16x32xf32>
    %89 = tpu.matmul %86, %88, %cst_65 {dimension_numbers = #tpu.dot_dimension_numbers<[1], [0], [0], [1], [0, 0, 1, 1], [], []>} : vector<16x8xf32>, vector<8x32xf32>, vector<16x32xf32> -> vector<16x32xf32>
    %90 = arith.addf %48, %89 : vector<16x32xf32>
    %c2 = arith.constant 2 : index
    %c0_66 = arith.constant 0 : index
    %c0_67 = arith.constant 0 : index
    %91 = vector.load %arg3[%c2, %c0_66, %c0_67] : memref<4x32x8xf32, #tpu.memory_space<vmem>>, vector<1x32x8xf32>
    %92 = vector.shape_cast %91 : vector<1x32x8xf32> to vector<32x8xf32>
    %cst_68 = arith.constant dense<0.000000e+00> : vector<16x8xf32>
    %93 = tpu.matmul %1, %92, %cst_68 {dimension_numbers = #tpu.dot_dimension_numbers<[1], [0], [0], [1], [0, 0, 1, 1], [], []>} : vector<16x32xf32>, vector<32x8xf32>, vector<16x8xf32> -> vector<16x8xf32>
    %c2_69 = arith.constant 2 : index
    %c0_70 = arith.constant 0 : index
    %c0_71 = arith.constant 0 : index
    %94 = vector.load %arg6[%c2_69, %c0_70, %c0_71] : memref<4x1x8xf32, #tpu.memory_space<vmem>>, vector<1x1x8xf32>
    %95 = vector.shape_cast %94 : vector<1x1x8xf32> to vector<1x8xf32>
    %96 = vector.broadcast %95 : vector<1x8xf32> to vector<16x8xf32>
    %97 = arith.addf %93, %96 : vector<16x8xf32>
    %c2_72 = arith.constant 2 : index
    %c0_73 = arith.constant 0 : index
    %c0_74 = arith.constant 0 : index
    %98 = vector.load %arg4[%c2_72, %c0_73, %c0_74] : memref<4x32x8xf32, #tpu.memory_space<vmem>>, vector<1x32x8xf32>
    %99 = vector.shape_cast %98 : vector<1x32x8xf32> to vector<32x8xf32>
    %cst_75 = arith.constant dense<0.000000e+00> : vector<16x8xf32>
    %100 = tpu.matmul %3, %99, %cst_75 {dimension_numbers = #tpu.dot_dimension_numbers<[1], [0], [0], [1], [0, 0, 1, 1], [], []>} : vector<16x32xf32>, vector<32x8xf32>, vector<16x8xf32> -> vector<16x8xf32>
    %c2_76 = arith.constant 2 : index
    %c0_77 = arith.constant 0 : index
    %c0_78 = arith.constant 0 : index
    %101 = vector.load %arg7[%c2_76, %c0_77, %c0_78] : memref<4x1x8xf32, #tpu.memory_space<vmem>>, vector<1x1x8xf32>
    %102 = vector.shape_cast %101 : vector<1x1x8xf32> to vector<1x8xf32>
    %103 = vector.broadcast %102 : vector<1x8xf32> to vector<16x8xf32>
    %104 = arith.addf %100, %103 : vector<16x8xf32>
    %c2_79 = arith.constant 2 : index
    %c0_80 = arith.constant 0 : index
    %c0_81 = arith.constant 0 : index
    %105 = vector.load %arg5[%c2_79, %c0_80, %c0_81] : memref<4x32x8xf32, #tpu.memory_space<vmem>>, vector<1x32x8xf32>
    %106 = vector.shape_cast %105 : vector<1x32x8xf32> to vector<32x8xf32>
    %cst_82 = arith.constant dense<0.000000e+00> : vector<16x8xf32>
    %107 = tpu.matmul %3, %106, %cst_82 {dimension_numbers = #tpu.dot_dimension_numbers<[1], [0], [0], [1], [0, 0, 1, 1], [], []>} : vector<16x32xf32>, vector<32x8xf32>, vector<16x8xf32> -> vector<16x8xf32>
    %c2_83 = arith.constant 2 : index
    %c0_84 = arith.constant 0 : index
    %c0_85 = arith.constant 0 : index
    %108 = vector.load %arg8[%c2_83, %c0_84, %c0_85] : memref<4x1x8xf32, #tpu.memory_space<vmem>>, vector<1x1x8xf32>
    %109 = vector.shape_cast %108 : vector<1x1x8xf32> to vector<1x8xf32>
    %110 = vector.broadcast %109 : vector<1x8xf32> to vector<16x8xf32>
    %111 = arith.addf %107, %110 : vector<16x8xf32>
    %cst_86 = arith.constant dense<0.000000e+00> : vector<16x16xf32>
    %112 = tpu.matmul %97, %104, %cst_86 {dimension_numbers = #tpu.dot_dimension_numbers<[1], [1], [0], [0], [0, 0, 1, 0], [], []>} : vector<16x8xf32>, vector<16x8xf32>, vector<16x16xf32> -> vector<16x16xf32>
    %cst_87 = arith.constant 0.353553385 : f32
    %113 = vector.broadcast %cst_87 : f32 to vector<16x16xf32>
    %114 = arith.mulf %112, %113 : vector<16x16xf32>
    %115 = arith.cmpi sgt, %5, %4 : vector<16x16xi32>
    %cst_88 = arith.constant 0xFF800000 : f32
    %116 = vector.broadcast %cst_88 : f32 to vector<16x16xf32>
    %117 = arith.select %115, %116, %114 : vector<16x16xi1>, vector<16x16xf32>
    %cst_89 = arith.constant dense<0xFF800000> : vector<16xf32>
    %118 = vector.multi_reduction <maximumf>, %117, %cst_89 [1] : vector<16x16xf32> to vector<16xf32>
    %119 = vector.shape_cast %118 : vector<16xf32> to vector<16x1xf32>
    %120 = vector.broadcast %119 : vector<16x1xf32> to vector<16x16xf32>
    %121 = arith.subf %117, %120 : vector<16x16xf32>
    %122 = math.exp %121 : vector<16x16xf32>
    %cst_90 = arith.constant dense<0.000000e+00> : vector<16xf32>
    %123 = vector.multi_reduction <add>, %122, %cst_90 [1] : vector<16x16xf32> to vector<16xf32>
    %124 = vector.shape_cast %123 : vector<16xf32> to vector<16x1xf32>
    %125 = tpu.reciprocal %124 {approx = true} : vector<16x1xf32> -> vector<16x1xf32>
    %126 = vector.broadcast %125 : vector<16x1xf32> to vector<16x16xf32>
    %127 = arith.mulf %122, %126 : vector<16x16xf32>
    %cst_91 = arith.constant dense<0.000000e+00> : vector<16x8xf32>
    %128 = tpu.matmul %127, %111, %cst_91 {dimension_numbers = #tpu.dot_dimension_numbers<[1], [0], [0], [1], [0, 0, 1, 1], [], []>} : vector<16x16xf32>, vector<16x8xf32>, vector<16x8xf32> -> vector<16x8xf32>
    %c2_92 = arith.constant 2 : index
    %c0_93 = arith.constant 0 : index
    %c0_94 = arith.constant 0 : index
    %129 = vector.load %arg9[%c2_92, %c0_93, %c0_94] : memref<4x8x32xf32, #tpu.memory_space<vmem>>, vector<1x8x32xf32>
    %130 = vector.shape_cast %129 : vector<1x8x32xf32> to vector<8x32xf32>
    %cst_95 = arith.constant dense<0.000000e+00> : vector<16x32xf32>
    %131 = tpu.matmul %128, %130, %cst_95 {dimension_numbers = #tpu.dot_dimension_numbers<[1], [0], [0], [1], [0, 0, 1, 1], [], []>} : vector<16x8xf32>, vector<8x32xf32>, vector<16x32xf32> -> vector<16x32xf32>
    %132 = arith.addf %90, %131 : vector<16x32xf32>
    %c3 = arith.constant 3 : index
    %c0_96 = arith.constant 0 : index
    %c0_97 = arith.constant 0 : index
    %133 = vector.load %arg3[%c3, %c0_96, %c0_97] : memref<4x32x8xf32, #tpu.memory_space<vmem>>, vector<1x32x8xf32>
    %134 = vector.shape_cast %133 : vector<1x32x8xf32> to vector<32x8xf32>
    %cst_98 = arith.constant dense<0.000000e+00> : vector<16x8xf32>
    %135 = tpu.matmul %1, %134, %cst_98 {dimension_numbers = #tpu.dot_dimension_numbers<[1], [0], [0], [1], [0, 0, 1, 1], [], []>} : vector<16x32xf32>, vector<32x8xf32>, vector<16x8xf32> -> vector<16x8xf32>
    %c3_99 = arith.constant 3 : index
    %c0_100 = arith.constant 0 : index
    %c0_101 = arith.constant 0 : index
    %136 = vector.load %arg6[%c3_99, %c0_100, %c0_101] : memref<4x1x8xf32, #tpu.memory_space<vmem>>, vector<1x1x8xf32>
    %137 = vector.shape_cast %136 : vector<1x1x8xf32> to vector<1x8xf32>
    %138 = vector.broadcast %137 : vector<1x8xf32> to vector<16x8xf32>
    %139 = arith.addf %135, %138 : vector<16x8xf32>
    %c3_102 = arith.constant 3 : index
    %c0_103 = arith.constant 0 : index
    %c0_104 = arith.constant 0 : index
    %140 = vector.load %arg4[%c3_102, %c0_103, %c0_104] : memref<4x32x8xf32, #tpu.memory_space<vmem>>, vector<1x32x8xf32>
    %141 = vector.shape_cast %140 : vector<1x32x8xf32> to vector<32x8xf32>
    %cst_105 = arith.constant dense<0.000000e+00> : vector<16x8xf32>
    %142 = tpu.matmul %3, %141, %cst_105 {dimension_numbers = #tpu.dot_dimension_numbers<[1], [0], [0], [1], [0, 0, 1, 1], [], []>} : vector<16x32xf32>, vector<32x8xf32>, vector<16x8xf32> -> vector<16x8xf32>
    %c3_106 = arith.constant 3 : index
    %c0_107 = arith.constant 0 : index
    %c0_108 = arith.constant 0 : index
    %143 = vector.load %arg7[%c3_106, %c0_107, %c0_108] : memref<4x1x8xf32, #tpu.memory_space<vmem>>, vector<1x1x8xf32>
    %144 = vector.shape_cast %143 : vector<1x1x8xf32> to vector<1x8xf32>
    %145 = vector.broadcast %144 : vector<1x8xf32> to vector<16x8xf32>
    %146 = arith.addf %142, %145 : vector<16x8xf32>
    %c3_109 = arith.constant 3 : index
    %c0_110 = arith.constant 0 : index
    %c0_111 = arith.constant 0 : index
    %147 = vector.load %arg5[%c3_109, %c0_110, %c0_111] : memref<4x32x8xf32, #tpu.memory_space<vmem>>, vector<1x32x8xf32>
    %148 = vector.shape_cast %147 : vector<1x32x8xf32> to vector<32x8xf32>
    %cst_112 = arith.constant dense<0.000000e+00> : vector<16x8xf32>
    %149 = tpu.matmul %3, %148, %cst_112 {dimension_numbers = #tpu.dot_dimension_numbers<[1], [0], [0], [1], [0, 0, 1, 1], [], []>} : vector<16x32xf32>, vector<32x8xf32>, vector<16x8xf32> -> vector<16x8xf32>
    %c3_113 = arith.constant 3 : index
    %c0_114 = arith.constant 0 : index
    %c0_115 = arith.constant 0 : index
    %150 = vector.load %arg8[%c3_113, %c0_114, %c0_115] : memref<4x1x8xf32, #tpu.memory_space<vmem>>, vector<1x1x8xf32>
    %151 = vector.shape_cast %150 : vector<1x1x8xf32> to vector<1x8xf32>
    %152 = vector.broadcast %151 : vector<1x8xf32> to vector<16x8xf32>
    %153 = arith.addf %149, %152 : vector<16x8xf32>
    %cst_116 = arith.constant dense<0.000000e+00> : vector<16x16xf32>
    %154 = tpu.matmul %139, %146, %cst_116 {dimension_numbers = #tpu.dot_dimension_numbers<[1], [1], [0], [0], [0, 0, 1, 0], [], []>} : vector<16x8xf32>, vector<16x8xf32>, vector<16x16xf32> -> vector<16x16xf32>
    %cst_117 = arith.constant 0.353553385 : f32
    %155 = vector.broadcast %cst_117 : f32 to vector<16x16xf32>
    %156 = arith.mulf %154, %155 : vector<16x16xf32>
    %157 = arith.cmpi sgt, %5, %4 : vector<16x16xi32>
    %cst_118 = arith.constant 0xFF800000 : f32
    %158 = vector.broadcast %cst_118 : f32 to vector<16x16xf32>
    %159 = arith.select %157, %158, %156 : vector<16x16xi1>, vector<16x16xf32>
    %cst_119 = arith.constant dense<0xFF800000> : vector<16xf32>
    %160 = vector.multi_reduction <maximumf>, %159, %cst_119 [1] : vector<16x16xf32> to vector<16xf32>
    %161 = vector.shape_cast %160 : vector<16xf32> to vector<16x1xf32>
    %162 = vector.broadcast %161 : vector<16x1xf32> to vector<16x16xf32>
    %163 = arith.subf %159, %162 : vector<16x16xf32>
    %164 = math.exp %163 : vector<16x16xf32>
    %cst_120 = arith.constant dense<0.000000e+00> : vector<16xf32>
    %165 = vector.multi_reduction <add>, %164, %cst_120 [1] : vector<16x16xf32> to vector<16xf32>
    %166 = vector.shape_cast %165 : vector<16xf32> to vector<16x1xf32>
    %167 = tpu.reciprocal %166 {approx = true} : vector<16x1xf32> -> vector<16x1xf32>
    %168 = vector.broadcast %167 : vector<16x1xf32> to vector<16x16xf32>
    %169 = arith.mulf %164, %168 : vector<16x16xf32>
    %cst_121 = arith.constant dense<0.000000e+00> : vector<16x8xf32>
    %170 = tpu.matmul %169, %153, %cst_121 {dimension_numbers = #tpu.dot_dimension_numbers<[1], [0], [0], [1], [0, 0, 1, 1], [], []>} : vector<16x16xf32>, vector<16x8xf32>, vector<16x8xf32> -> vector<16x8xf32>
    %c3_122 = arith.constant 3 : index
    %c0_123 = arith.constant 0 : index
    %c0_124 = arith.constant 0 : index
    %171 = vector.load %arg9[%c3_122, %c0_123, %c0_124] : memref<4x8x32xf32, #tpu.memory_space<vmem>>, vector<1x8x32xf32>
    %172 = vector.shape_cast %171 : vector<1x8x32xf32> to vector<8x32xf32>
    %cst_125 = arith.constant dense<0.000000e+00> : vector<16x32xf32>
    %173 = tpu.matmul %170, %172, %cst_125 {dimension_numbers = #tpu.dot_dimension_numbers<[1], [0], [0], [1], [0, 0, 1, 1], [], []>} : vector<16x8xf32>, vector<8x32xf32>, vector<16x32xf32> -> vector<16x32xf32>
    %174 = arith.addf %132, %173 : vector<16x32xf32>
    %175 = arith.addf %1, %174 : vector<16x32xf32>
    %c0_126 = arith.constant 0 : index
    %c0_127 = arith.constant 0 : index
    %176 = vector.load %arg10[%c0_126, %c0_127] : memref<1x32xf32, #tpu.memory_space<vmem>>, vector<1x32xf32>
    %177 = vector.broadcast %176 : vector<1x32xf32> to vector<16x32xf32>
    %178 = arith.addf %175, %177 : vector<16x32xf32>
    %c0_128 = arith.constant 0 : index
    %c0_129 = arith.constant 0 : index
    %179 = vector.load %arg11[%c0_128, %c0_129] : memref<1x32xf32, #tpu.memory_space<vmem>>, vector<1x32xf32>
    %c0_130 = arith.constant 0 : index
    %c0_131 = arith.constant 0 : index
    %180 = vector.load %arg12[%c0_130, %c0_131] : memref<1x32xf32, #tpu.memory_space<vmem>>, vector<1x32xf32>
    %cst_132 = arith.constant dense<0.000000e+00> : vector<16xf32>
    %181 = vector.multi_reduction <add>, %178, %cst_132 [1] : vector<16x32xf32> to vector<16xf32>
    %182 = vector.shape_cast %181 : vector<16xf32> to vector<16x1xf32>
    %cst_133 = arith.constant 3.200000e+01 : f32
    %183 = vector.broadcast %cst_133 : f32 to vector<16x1xf32>
    %184 = arith.divf %182, %183 : vector<16x1xf32>
    %185 = vector.broadcast %184 : vector<16x1xf32> to vector<16x32xf32>
    %186 = arith.subf %178, %185 : vector<16x32xf32>
    %187 = arith.mulf %186, %186 : vector<16x32xf32>
    %cst_134 = arith.constant dense<0.000000e+00> : vector<16xf32>
    %188 = vector.multi_reduction <add>, %187, %cst_134 [1] : vector<16x32xf32> to vector<16xf32>
    %189 = vector.shape_cast %188 : vector<16xf32> to vector<16x1xf32>
    %cst_135 = arith.constant 3.200000e+01 : f32
    %190 = vector.broadcast %cst_135 : f32 to vector<16x1xf32>
    %191 = arith.divf %189, %190 : vector<16x1xf32>
    %cst_136 = arith.constant 9.99999974E-6 : f32
    %192 = vector.broadcast %cst_136 : f32 to vector<16x1xf32>
    %193 = arith.addf %191, %192 : vector<16x1xf32>
    %194 = math.rsqrt %193 : vector<16x1xf32>
    %195 = vector.broadcast %194 : vector<16x1xf32> to vector<16x32xf32>
    %196 = arith.mulf %186, %195 : vector<16x32xf32>
    %197 = vector.broadcast %179 : vector<1x32xf32> to vector<16x32xf32>
    %198 = arith.mulf %196, %197 : vector<16x32xf32>
    %199 = vector.broadcast %180 : vector<1x32xf32> to vector<16x32xf32>
    %200 = arith.addf %198, %199 : vector<16x32xf32>
    %c0_137 = arith.constant 0 : index
    %c0_138 = arith.constant 0 : index
    %c0_139 = arith.constant 0 : index
    %201 = vector.load %arg13[%c0_137, %c0_138, %c0_139] : memref<1x16x32xf32, #tpu.memory_space<vmem>>, vector<1x16x32xf32>
    %202 = vector.shape_cast %201 : vector<1x16x32xf32> to vector<16x32xf32>
    %203 = vector.shape_cast %200 : vector<16x32xf32> to vector<1x16x32xf32>
    tpu.vector_store %arg13[%c0_137, %c0_138, %c0_139], %203 {strides = array<i32>} : memref<1x16x32xf32, #tpu.memory_space<vmem>>, vector<1x16x32xf32>,
    return
  }
  func.func @transform_0(%arg0: i32) -> (i32, i32, i32) {
    %c0_i32 = arith.constant 0 : i32
    %c0_i32_0 = arith.constant 0 : i32
    %c0_i32_1 = arith.constant 0 : i32
    return %arg0, %c0_i32, %c0_i32_0 : i32, i32, i32
  }
  func.func @transform_1(%arg0: i32) -> (i32, i32, i32) {
    %c0_i32 = arith.constant 0 : i32
    %c0_i32_0 = arith.constant 0 : i32
    %c0_i32_1 = arith.constant 0 : i32
    return %arg0, %c0_i32, %c0_i32_0 : i32, i32, i32
  }
  func.func @transform_2(%arg0: i32) -> (i32, i32, i32) {
    %c0_i32 = arith.constant 0 : i32
    %c0_i32_0 = arith.constant 0 : i32
    %c0_i32_1 = arith.constant 0 : i32
    %c0_i32_2 = arith.constant 0 : i32
    return %c0_i32, %c0_i32_0, %c0_i32_1 : i32, i32, i32
  }
  func.func @transform_3(%arg0: i32) -> (i32, i32, i32) {
    %c0_i32 = arith.constant 0 : i32
    %c0_i32_0 = arith.constant 0 : i32
    %c0_i32_1 = arith.constant 0 : i32
    %c0_i32_2 = arith.constant 0 : i32
    return %c0_i32, %c0_i32_0, %c0_i32_1 : i32, i32, i32
  }
  func.func @transform_4(%arg0: i32) -> (i32, i32, i32) {
    %c0_i32 = arith.constant 0 : i32
    %c0_i32_0 = arith.constant 0 : i32
    %c0_i32_1 = arith.constant 0 : i32
    %c0_i32_2 = arith.constant 0 : i32
    return %c0_i32, %c0_i32_0, %c0_i32_1 : i32, i32, i32
  }
  func.func @transform_5(%arg0: i32) -> (i32, i32, i32) {
    %c0_i32 = arith.constant 0 : i32
    %c0_i32_0 = arith.constant 0 : i32
    %c0_i32_1 = arith.constant 0 : i32
    %c0_i32_2 = arith.constant 0 : i32
    return %c0_i32, %c0_i32_0, %c0_i32_1 : i32, i32, i32
  }
  func.func @transform_6(%arg0: i32) -> (i32, i32, i32) {
    %c0_i32 = arith.constant 0 : i32
    %c0_i32_0 = arith.constant 0 : i32
    %c0_i32_1 = arith.constant 0 : i32
    %c0_i32_2 = arith.constant 0 : i32
    return %c0_i32, %c0_i32_0, %c0_i32_1 : i32, i32, i32
  }
  func.func @transform_7(%arg0: i32) -> (i32, i32, i32) {
    %c0_i32 = arith.constant 0 : i32
    %c0_i32_0 = arith.constant 0 : i32
    %c0_i32_1 = arith.constant 0 : i32
    %c0_i32_2 = arith.constant 0 : i32
    return %c0_i32, %c0_i32_0, %c0_i32_1 : i32, i32, i32
  }
  func.func @transform_8(%arg0: i32) -> (i32, i32, i32) {
    %c0_i32 = arith.constant 0 : i32
    %c0_i32_0 = arith.constant 0 : i32
    %c0_i32_1 = arith.constant 0 : i32
    %c0_i32_2 = arith.constant 0 : i32
    return %c0_i32, %c0_i32_0, %c0_i32_1 : i32, i32, i32
  }
  func.func @transform_9(%arg0: i32) -> (i32, i32) {
    %c0_i32 = arith.constant 0 : i32
    %c0_i32_0 = arith.constant 0 : i32
    %c0_i32_1 = arith.constant 0 : i32
    return %c0_i32, %c0_i32_0 : i32, i32
  }
  func.func @transform_10(%arg0: i32) -> (i32, i32) {
    %c0_i32 = arith.constant 0 : i32
    %c0_i32_0 = arith.constant 0 : i32
    %c0_i32_1 = arith.constant 0 : i32
    return %c0_i32, %c0_i32_0 : i32, i32
  }
  func.func @transform_11(%arg0: i32) -> (i32, i32) {
    %c0_i32 = arith.constant 0 : i32
    %c0_i32_0 = arith.constant 0 : i32
    %c0_i32_1 = arith.constant 0 : i32
    return %c0_i32, %c0_i32_0 : i32, i32
  }
  func.func @transform_12(%arg0: i32) -> (i32, i32, i32) {
    %c0_i32 = arith.constant 0 : i32
    %c0_i32_0 = arith.constant 0 : i32
    %c0_i32_1 = arith.constant 0 : i32
    return %arg0, %c0_i32, %c0_i32_0 : i32, i32, i32
  }
}

module attributes {stable_mosaic.version = 11 : i64} {
  func.func @_heads_kernel(%arg0: i32, %arg1: memref<1x16x32xf32, #tpu.memory_space<vmem>>, %arg2: memref<32x4xf32, #tpu.memory_space<vmem>>, %arg3: memref<1x4xf32, #tpu.memory_space<vmem>>, %arg4: memref<4x48xf32, #tpu.memory_space<vmem>>, %arg5: memref<1x48xf32, #tpu.memory_space<vmem>>, %arg6: memref<48x1xf32, #tpu.memory_space<vmem>>, %arg7: memref<1x1xf32, #tpu.memory_space<vmem>>, %arg8: memref<4x48xf32, #tpu.memory_space<vmem>>, %arg9: memref<1x48xf32, #tpu.memory_space<vmem>>, %arg10: memref<48x1xf32, #tpu.memory_space<vmem>>, %arg11: memref<1x1xf32, #tpu.memory_space<vmem>>, %arg12: memref<4x1xf32, #tpu.memory_space<vmem>>, %arg13: memref<1x1xf32, #tpu.memory_space<vmem>>, %arg14: memref<1x16x1xf32, #tpu.memory_space<vmem>>, %arg15: memref<1x16x1xf32, #tpu.memory_space<vmem>>, %arg16: memref<1x16x1xf32, #tpu.memory_space<vmem>>) attributes {dimension_semantics = [#tpu.dimension_semantics<parallel>], iteration_bounds = array<i64: 2>, scalar_prefetch = 0 : i64, scratch_operands = 0 : i64, tpu.core_type = #tpu.core_type<tc>, window_params = [{transform_indices = @transform_0, window_bounds = array<i64: 1, 16, 32>}, {pipeline_mode = #tpu.pipeline_mode<synchronous>, transform_indices = @transform_1, window_bounds = array<i64: 32, 4>}, {pipeline_mode = #tpu.pipeline_mode<synchronous>, transform_indices = @transform_2, window_bounds = array<i64: 1, 4>}, {pipeline_mode = #tpu.pipeline_mode<synchronous>, transform_indices = @transform_3, window_bounds = array<i64: 4, 48>}, {pipeline_mode = #tpu.pipeline_mode<synchronous>, transform_indices = @transform_4, window_bounds = array<i64: 1, 48>}, {pipeline_mode = #tpu.pipeline_mode<synchronous>, transform_indices = @transform_5, window_bounds = array<i64: 48, 1>}, {pipeline_mode = #tpu.pipeline_mode<synchronous>, transform_indices = @transform_6, window_bounds = array<i64: 1, 1>}, {pipeline_mode = #tpu.pipeline_mode<synchronous>, transform_indices = @transform_7, window_bounds = array<i64: 4, 48>}, {pipeline_mode = #tpu.pipeline_mode<synchronous>, transform_indices = @transform_8, window_bounds = array<i64: 1, 48>}, {pipeline_mode = #tpu.pipeline_mode<synchronous>, transform_indices = @transform_9, window_bounds = array<i64: 48, 1>}, {pipeline_mode = #tpu.pipeline_mode<synchronous>, transform_indices = @transform_10, window_bounds = array<i64: 1, 1>}, {pipeline_mode = #tpu.pipeline_mode<synchronous>, transform_indices = @transform_11, window_bounds = array<i64: 4, 1>}, {pipeline_mode = #tpu.pipeline_mode<synchronous>, transform_indices = @transform_12, window_bounds = array<i64: 1, 1>}, {transform_indices = @transform_13, window_bounds = array<i64: 1, 16, 1>}, {transform_indices = @transform_14, window_bounds = array<i64: 1, 16, 1>}, {transform_indices = @transform_15, window_bounds = array<i64: 1, 16, 1>}]} {
    %c0 = arith.constant 0 : index
    %c0_0 = arith.constant 0 : index
    %c0_1 = arith.constant 0 : index
    %0 = vector.load %arg1[%c0, %c0_0, %c0_1] : memref<1x16x32xf32, #tpu.memory_space<vmem>>, vector<1x16x32xf32>
    %1 = vector.shape_cast %0 : vector<1x16x32xf32> to vector<16x32xf32>
    %c0_2 = arith.constant 0 : index
    %c0_3 = arith.constant 0 : index
    %2 = vector.load %arg2[%c0_2, %c0_3] : memref<32x4xf32, #tpu.memory_space<vmem>>, vector<32x4xf32>
    %cst = arith.constant dense<0.000000e+00> : vector<16x4xf32>
    %3 = tpu.matmul %1, %2, %cst {dimension_numbers = #tpu.dot_dimension_numbers<[1], [0], [0], [1], [0, 0, 1, 1], [], []>} : vector<16x32xf32>, vector<32x4xf32>, vector<16x4xf32> -> vector<16x4xf32>
    %c0_4 = arith.constant 0 : index
    %c0_5 = arith.constant 0 : index
    %4 = vector.load %arg3[%c0_4, %c0_5] : memref<1x4xf32, #tpu.memory_space<vmem>>, vector<1x4xf32>
    %5 = vector.broadcast %4 : vector<1x4xf32> to vector<16x4xf32>
    %6 = arith.addf %3, %5 : vector<16x4xf32>
    %c0_6 = arith.constant 0 : index
    %c0_7 = arith.constant 0 : index
    %7 = vector.load %arg4[%c0_6, %c0_7] : memref<4x48xf32, #tpu.memory_space<vmem>>, vector<4x48xf32>
    %cst_8 = arith.constant dense<0.000000e+00> : vector<16x48xf32>
    %8 = tpu.matmul %6, %7, %cst_8 {dimension_numbers = #tpu.dot_dimension_numbers<[1], [0], [0], [1], [0, 0, 1, 1], [], []>} : vector<16x4xf32>, vector<4x48xf32>, vector<16x48xf32> -> vector<16x48xf32>
    %c0_9 = arith.constant 0 : index
    %c0_10 = arith.constant 0 : index
    %9 = vector.load %arg5[%c0_9, %c0_10] : memref<1x48xf32, #tpu.memory_space<vmem>>, vector<1x48xf32>
    %10 = vector.broadcast %9 : vector<1x48xf32> to vector<16x48xf32>
    %11 = arith.addf %8, %10 : vector<16x48xf32>
    %c0_11 = arith.constant 0 : index
    %c0_12 = arith.constant 0 : index
    %12 = vector.load %arg6[%c0_11, %c0_12] : memref<48x1xf32, #tpu.memory_space<vmem>>, vector<48x1xf32>
    %cst_13 = arith.constant dense<0.000000e+00> : vector<16x1xf32>
    %13 = tpu.matmul %11, %12, %cst_13 {dimension_numbers = #tpu.dot_dimension_numbers<[1], [0], [0], [1], [0, 0, 1, 1], [], []>} : vector<16x48xf32>, vector<48x1xf32>, vector<16x1xf32> -> vector<16x1xf32>
    %c0_14 = arith.constant 0 : index
    %c0_15 = arith.constant 0 : index
    %14 = vector.load %arg7[%c0_14, %c0_15] : memref<1x1xf32, #tpu.memory_space<vmem>>, vector<1x1xf32>
    %15 = vector.broadcast %14 : vector<1x1xf32> to vector<16x1xf32>
    %16 = arith.addf %13, %15 : vector<16x1xf32>
    %cst_16 = arith.constant 0.000000e+00 : f32
    %17 = vector.broadcast %cst_16 : f32 to vector<16x1xf32>
    %18 = arith.maximumf %16, %17 : vector<16x1xf32>
    %c0_17 = arith.constant 0 : index
    %c0_18 = arith.constant 0 : index
    %19 = vector.load %arg8[%c0_17, %c0_18] : memref<4x48xf32, #tpu.memory_space<vmem>>, vector<4x48xf32>
    %cst_19 = arith.constant dense<0.000000e+00> : vector<16x48xf32>
    %20 = tpu.matmul %6, %19, %cst_19 {dimension_numbers = #tpu.dot_dimension_numbers<[1], [0], [0], [1], [0, 0, 1, 1], [], []>} : vector<16x4xf32>, vector<4x48xf32>, vector<16x48xf32> -> vector<16x48xf32>
    %c0_20 = arith.constant 0 : index
    %c0_21 = arith.constant 0 : index
    %21 = vector.load %arg9[%c0_20, %c0_21] : memref<1x48xf32, #tpu.memory_space<vmem>>, vector<1x48xf32>
    %22 = vector.broadcast %21 : vector<1x48xf32> to vector<16x48xf32>
    %23 = arith.addf %20, %22 : vector<16x48xf32>
    %c0_22 = arith.constant 0 : index
    %c0_23 = arith.constant 0 : index
    %24 = vector.load %arg10[%c0_22, %c0_23] : memref<48x1xf32, #tpu.memory_space<vmem>>, vector<48x1xf32>
    %cst_24 = arith.constant dense<0.000000e+00> : vector<16x1xf32>
    %25 = tpu.matmul %23, %24, %cst_24 {dimension_numbers = #tpu.dot_dimension_numbers<[1], [0], [0], [1], [0, 0, 1, 1], [], []>} : vector<16x48xf32>, vector<48x1xf32>, vector<16x1xf32> -> vector<16x1xf32>
    %c0_25 = arith.constant 0 : index
    %c0_26 = arith.constant 0 : index
    %26 = vector.load %arg11[%c0_25, %c0_26] : memref<1x1xf32, #tpu.memory_space<vmem>>, vector<1x1xf32>
    %27 = vector.broadcast %26 : vector<1x1xf32> to vector<16x1xf32>
    %28 = arith.addf %25, %27 : vector<16x1xf32>
    %cst_27 = arith.constant 0.000000e+00 : f32
    %29 = vector.broadcast %cst_27 : f32 to vector<16x1xf32>
    %30 = arith.maximumf %28, %29 : vector<16x1xf32>
    %c0_28 = arith.constant 0 : index
    %c0_29 = arith.constant 0 : index
    %31 = vector.load %arg12[%c0_28, %c0_29] : memref<4x1xf32, #tpu.memory_space<vmem>>, vector<4x1xf32>
    %cst_30 = arith.constant dense<0.000000e+00> : vector<16x1xf32>
    %32 = tpu.matmul %6, %31, %cst_30 {dimension_numbers = #tpu.dot_dimension_numbers<[1], [0], [0], [1], [0, 0, 1, 1], [], []>} : vector<16x4xf32>, vector<4x1xf32>, vector<16x1xf32> -> vector<16x1xf32>
    %c0_31 = arith.constant 0 : index
    %c0_32 = arith.constant 0 : index
    %33 = vector.load %arg13[%c0_31, %c0_32] : memref<1x1xf32, #tpu.memory_space<vmem>>, vector<1x1xf32>
    %34 = vector.broadcast %33 : vector<1x1xf32> to vector<16x1xf32>
    %35 = arith.addf %32, %34 : vector<16x1xf32>
    %c0_33 = arith.constant 0 : index
    %c0_34 = arith.constant 0 : index
    %c0_35 = arith.constant 0 : index
    %36 = vector.load %arg14[%c0_33, %c0_34, %c0_35] : memref<1x16x1xf32, #tpu.memory_space<vmem>>, vector<1x16x1xf32>
    %37 = vector.shape_cast %36 : vector<1x16x1xf32> to vector<16x1xf32>
    %38 = vector.shape_cast %35 : vector<16x1xf32> to vector<1x16x1xf32>
    tpu.vector_store %arg14[%c0_33, %c0_34, %c0_35], %38 {strides = array<i32>} : memref<1x16x1xf32, #tpu.memory_space<vmem>>, vector<1x16x1xf32>,
    %c0_36 = arith.constant 0 : index
    %c0_37 = arith.constant 0 : index
    %c0_38 = arith.constant 0 : index
    %39 = vector.load %arg15[%c0_36, %c0_37, %c0_38] : memref<1x16x1xf32, #tpu.memory_space<vmem>>, vector<1x16x1xf32>
    %40 = vector.shape_cast %39 : vector<1x16x1xf32> to vector<16x1xf32>
    %41 = vector.shape_cast %18 : vector<16x1xf32> to vector<1x16x1xf32>
    tpu.vector_store %arg15[%c0_36, %c0_37, %c0_38], %41 {strides = array<i32>} : memref<1x16x1xf32, #tpu.memory_space<vmem>>, vector<1x16x1xf32>,
    %c0_39 = arith.constant 0 : index
    %c0_40 = arith.constant 0 : index
    %c0_41 = arith.constant 0 : index
    %42 = vector.load %arg16[%c0_39, %c0_40, %c0_41] : memref<1x16x1xf32, #tpu.memory_space<vmem>>, vector<1x16x1xf32>
    %43 = vector.shape_cast %42 : vector<1x16x1xf32> to vector<16x1xf32>
    %44 = vector.shape_cast %30 : vector<16x1xf32> to vector<1x16x1xf32>
    tpu.vector_store %arg16[%c0_39, %c0_40, %c0_41], %44 {strides = array<i32>} : memref<1x16x1xf32, #tpu.memory_space<vmem>>, vector<1x16x1xf32>,
    return
  }
  func.func @transform_0(%arg0: i32) -> (i32, i32, i32) {
    %c0_i32 = arith.constant 0 : i32
    %c0_i32_0 = arith.constant 0 : i32
    %c0_i32_1 = arith.constant 0 : i32
    return %arg0, %c0_i32, %c0_i32_0 : i32, i32, i32
  }
  func.func @transform_1(%arg0: i32) -> (i32, i32) {
    %c0_i32 = arith.constant 0 : i32
    %c0_i32_0 = arith.constant 0 : i32
    %c0_i32_1 = arith.constant 0 : i32
    return %c0_i32, %c0_i32_0 : i32, i32
  }
  func.func @transform_2(%arg0: i32) -> (i32, i32) {
    %c0_i32 = arith.constant 0 : i32
    %c0_i32_0 = arith.constant 0 : i32
    %c0_i32_1 = arith.constant 0 : i32
    return %c0_i32, %c0_i32_0 : i32, i32
  }
  func.func @transform_3(%arg0: i32) -> (i32, i32) {
    %c0_i32 = arith.constant 0 : i32
    %c0_i32_0 = arith.constant 0 : i32
    %c0_i32_1 = arith.constant 0 : i32
    return %c0_i32, %c0_i32_0 : i32, i32
  }
  func.func @transform_4(%arg0: i32) -> (i32, i32) {
    %c0_i32 = arith.constant 0 : i32
    %c0_i32_0 = arith.constant 0 : i32
    %c0_i32_1 = arith.constant 0 : i32
    return %c0_i32, %c0_i32_0 : i32, i32
  }
  func.func @transform_5(%arg0: i32) -> (i32, i32) {
    %c0_i32 = arith.constant 0 : i32
    %c0_i32_0 = arith.constant 0 : i32
    %c0_i32_1 = arith.constant 0 : i32
    return %c0_i32, %c0_i32_0 : i32, i32
  }
  func.func @transform_6(%arg0: i32) -> (i32, i32) {
    %c0_i32 = arith.constant 0 : i32
    %c0_i32_0 = arith.constant 0 : i32
    %c0_i32_1 = arith.constant 0 : i32
    return %c0_i32, %c0_i32_0 : i32, i32
  }
  func.func @transform_7(%arg0: i32) -> (i32, i32) {
    %c0_i32 = arith.constant 0 : i32
    %c0_i32_0 = arith.constant 0 : i32
    %c0_i32_1 = arith.constant 0 : i32
    return %c0_i32, %c0_i32_0 : i32, i32
  }
  func.func @transform_8(%arg0: i32) -> (i32, i32) {
    %c0_i32 = arith.constant 0 : i32
    %c0_i32_0 = arith.constant 0 : i32
    %c0_i32_1 = arith.constant 0 : i32
    return %c0_i32, %c0_i32_0 : i32, i32
  }
  func.func @transform_9(%arg0: i32) -> (i32, i32) {
    %c0_i32 = arith.constant 0 : i32
    %c0_i32_0 = arith.constant 0 : i32
    %c0_i32_1 = arith.constant 0 : i32
    return %c0_i32, %c0_i32_0 : i32, i32
  }
  func.func @transform_10(%arg0: i32) -> (i32, i32) {
    %c0_i32 = arith.constant 0 : i32
    %c0_i32_0 = arith.constant 0 : i32
    %c0_i32_1 = arith.constant 0 : i32
    return %c0_i32, %c0_i32_0 : i32, i32
  }
  func.func @transform_11(%arg0: i32) -> (i32, i32) {
    %c0_i32 = arith.constant 0 : i32
    %c0_i32_0 = arith.constant 0 : i32
    %c0_i32_1 = arith.constant 0 : i32
    return %c0_i32, %c0_i32_0 : i32, i32
  }
  func.func @transform_12(%arg0: i32) -> (i32, i32) {
    %c0_i32 = arith.constant 0 : i32
    %c0_i32_0 = arith.constant 0 : i32
    %c0_i32_1 = arith.constant 0 : i32
    return %c0_i32, %c0_i32_0 : i32, i32
  }
  func.func @transform_13(%arg0: i32) -> (i32, i32, i32) {
    %c0_i32 = arith.constant 0 : i32
    %c0_i32_0 = arith.constant 0 : i32
    %c0_i32_1 = arith.constant 0 : i32
    return %arg0, %c0_i32, %c0_i32_0 : i32, i32, i32
  }
  func.func @transform_14(%arg0: i32) -> (i32, i32, i32) {
    %c0_i32 = arith.constant 0 : i32
    %c0_i32_0 = arith.constant 0 : i32
    %c0_i32_1 = arith.constant 0 : i32
    return %arg0, %c0_i32, %c0_i32_0 : i32, i32, i32
  }
  func.func @transform_15(%arg0: i32) -> (i32, i32, i32) {
    %c0_i32 = arith.constant 0 : i32
    %c0_i32_0 = arith.constant 0 : i32
    %c0_i32_1 = arith.constant 0 : i32
    return %arg0, %c0_i32, %c0_i32_0 : i32, i32, i32
  }
}

</mosaic_0001>

<bundles_post_ra>
// kernel: _lambda_.10
= control target key start
LH: loop header
LB: loop body
LE: loop exit
PB: predicated region body
PF: predicated region fallthrough
CT: control target
= control target key end

     0   :  { %s383_s12 = smov 0   ;;  %s412_s0 = inlined_call_operand.vmem [shape: f32[2,16,16], index: 0, kind: input, shape index: {}]   ;;  %s413_s1 = inlined_call_operand.vmem [shape: f32[16,32], index: 1, kind: input, shape index: {}]   ;;  %s414_s2 = inlined_call_operand.vmem [shape: f32[16,32], index: 2, kind: input, shape index: {}]   ;;  %s415_s3 = inlined_call_operand.vmem [shape: f32[2,16,32], index: 3, kind: output, shape index: {}]  }
   0x1 LB: > { %s317_s13 = sadd.s32 4294967295, %s361_s12   ;;  %p321_p0 = scmp.ge.s32.totalorder %s361_s12, 1  ;;  %s361_s12 = sphi %s383_s12, %s13_s12  }
   0x2   : > { %p137_p1 = scmp.lt.s32.totalorder %s361_s12, 3 }
   0x4   : > { %p138_p2 = pnand %p321_p0, %p137_p1 }
   0x5   : > { %v173_v0 = vld [vmem:[%s413_s1] sm:$0xff] (!%p138_p2)  ;;  %v174_v1 = vld [vmem:[%s413_s1 + $0x8] sm:$0xff] (!%p138_p2)  ;;  %p161_p3 = scmp.lt.s32.totalorder (!%p138_p2), %s317_s13, 1  ;;  %vm177_vm0 = vcmask (!%p138_p2), 130048   ;;  %vm259_vm1 = vcmask (!%p138_p2), 261120  }
   0x6   : > { %141 = sbr.rel (%p138_p2) target bundleno = 234 (0xea), region = 32  ;;  %v343_v2 = vpack.c.bf16 (!%p138_p2), %v174_v1, %v173_v0  ;;  %v176_v5 = vld [vmem:[%s414_s2 + $0x8] sm:$0xff] (!%p138_p2)  ;;  %v175_v6 = vld [vmem:[%s414_s2] sm:$0xff] (!%p138_p2) }
   0x8   : > { %344 = vmatprep.subr.bf16.mxu0 (!%p138_p2), %v343_v2 }
   0x9   : > { %346 = vmatpush3.bf16.msra.mxu0 (!%p138_p2), %v343_v2 }
   0xd   : > { %s417_s13 = smov (!%p161_p3, %s317_s13), 1 }
   0xe   : > { %s330_s18 = sshll.u32 %s417_s13, 4 }
   0xf   : > { %s165_s21 = scalar_lea.vmem %s412_s0, %s330_s18  ;;  %s170_s28 = scalar_lea.vmem %s415_s3, %s330_s18 }
  0x10   : > { %v171_v3 = vld [vmem:[%s165_s21] sm:$0xff]  ;;  %v172_v4 = vld [vmem:[%s165_s21 + $0x8] sm:$0xff] }
  0x11   : > { %340 = vmatprep.mubr.msk.f32.mxu0 %vm177_vm0, %v171_v3 }
  0x12   : > { %341 = vmatmul.mubr.msk.f32.vlgmr.msra.gmra.mrb[0].mxu0 %vm177_vm0, %v172_v4 }
  0xe5   : > { %v342_v7 = vpop.f32.mrb[0].mxu0 }
  0xe6   : > { %v256_v8 = vadd.f32 %v342_v7, %v176_v5  ;;  %v250_v9 = vpop.f32.mrb[1].mxu0 }
  0xe7   : > { %v251_v10 = vadd.f32 %v250_v9, %v175_v6 }
  0xe8   : > { %261 = vst.msk [vmem:[%s170_s28 + $0x8] sm:$0xff] %vm259_vm1, %v256_v8 }
  0xe9   : > { %260 = vst.msk [vmem:[%s170_s28] sm:$0xff] %vm259_vm1, %v251_v10 }
  0xea PF: > { %s13_s12 = sadd.s32 1, %s361_s12  }
  0xeb   : > { %p10_p4 = scmp.ge.s32.totalorder %s13_s12, 4  }
  0xed   :  { %12 = sbr.rel (!%p10_p4) target bundleno = 1 (0x1), region = 62 }

// kernel: _lambda_.13
= control target key start
LH: loop header
LB: loop body
LE: loop exit
PB: predicated region body
PF: predicated region fallthrough
CT: control target
= control target key end

     0   :  { %s331_s12 = smov 0   ;;  %s367_s0 = inlined_call_operand.vmem [shape: f32[2,16,32], index: 0, kind: input, shape index: {}]   ;;  %s368_s1 = inlined_call_operand.vmem [shape: f32[1,32], index: 1, kind: input, shape index: {}]   ;;  %s369_s2 = inlined_call_operand.vmem [shape: f32[1,32], index: 2, kind: input, shape index: {}]   ;;  %s370_s3 = inlined_call_operand.vmem [shape: f32[2,16,32], index: 3, kind: output, shape index: {}]  }
   0x1 LB: > { %s276_s13 = sadd.s32 4294967295, %s309_s12   ;;  %p280_p0 = scmp.ge.s32.totalorder %s309_s12, 1  ;;  %s309_s12 = sphi %s331_s12, %s13_s12  }
   0x2   : > { %p137_p1 = scmp.lt.s32.totalorder %s309_s12, 3 }
   0x4   : > { %p138_p2 = pnand %p280_p0, %p137_p1 }
   0x5   : > { %p161_p3 = scmp.lt.s32.totalorder (!%p138_p2), %s276_s13, 1  ;;  %vm175_vm0 = vcmask (!%p138_p2), 261120   ;;  %v285_v21 = vld [vmem:[%s368_s1] ss:$0 sm:$0xff] (!%p138_p2) }
   0x6   : > { %141 = sbr.rel (%p138_p2) target bundleno = 335 (0x14f), region = 32  ;;  %v286_v23 = vld [vmem:[%s369_s2] ss:$0 sm:$0xff] (!%p138_p2) }
   0xd   : > { %s372_s13 = smov (!%p161_p3, %s276_s13), 1 }
   0xe   : > { %s289_s14 = sshll.u32 %s372_s13, 4 }
   0xf   : > { %s165_s17 = scalar_lea.vmem %s367_s0, %s289_s14  ;;  %s170_s24 = scalar_lea.vmem %s370_s3, %s289_s14 }
  0x10   : > { %v171_v0 = vld [vmem:[%s165_s17] sm:$0xff]  ;;  %v172_v1 = vld [vmem:[%s165_s17 + $0x8] sm:$0xff] }
  0x11   : > { %v176_v2 = vsel %vm175_vm0, %v171_v0, 0.0  ;;  %v179_v3 = vsel %vm175_vm0, %v172_v1, 0.0 }
  0x12   : > { %177 = vadd.xlane.f32.xlu0 %v176_v2 }
  0x16   : > { %180 = vadd.xlane.f32.xlu0 %v179_v3 }
  0x9f   : > { %v178_v4 = vpop.xlane.xlu0 %177 }
  0xa0   : > { %v183_v5 = vmul.f32 0.03125, %v178_v4 }
  0xa2   : > { %v185_v6 = vsub.f32 %v171_v0, %v183_v5 }
  0xa3   : > { %v181_v7 = vpop.xlane.xlu0 %180 }
  0xa4   : > { %v184_v8 = vmul.f32 0.03125, %v181_v7  ;;  %v187_v9 = vmul.f32 %v185_v6, %v185_v6 }
  0xa6   : > { %v186_v10 = vsub.f32 %v172_v1, %v184_v8  ;;  %v189_v11 = vsel %vm175_vm0, %v187_v9, 0.0 }
  0xa7   : > { %190 = vadd.xlane.f32.xlu1 %v189_v11 }
  0xa8   : > { %v188_v12 = vmul.f32 %v186_v10, %v186_v10 }
  0xaa   : > { %v192_v13 = vsel %vm175_vm0, %v188_v12, 0.0 }
  0xab   : > { %193 = vadd.xlane.f32.xlu1 %v192_v13 }
 0x134   : > { %v191_v14 = vpop.xlane.xlu1 %190 }
 0x135   : > { %v195_v15 = vmul.f32 0.03125, %v191_v14 }
 0x137   : > { %v197_v16 = vadd.f32 1e-05, %v195_v15 }
 0x138   : > { %v194_v17 = vpop.xlane.xlu1 %193 }
 0x139   : > { %299 = vrsqrt.f32 %v197_v16  ;;  %v196_v18 = vmul.f32 0.03125, %v194_v17 }
 0x13b   : > { %v198_v19 = vadd.f32 1e-05, %v196_v18 }
 0x13d   : > { %301 = vrsqrt.f32 %v198_v19 }
 0x143   : > { %v300_v20 = vpop.eup %299 }
 0x144   : > { %v201_v22 = vmul.f32 %v300_v20, %v185_v6 }
 0x146   : > { %v209_v24 = vmul.f32 %v285_v21, %v201_v22 }
 0x147   : > { %v302_v25 = vpop.eup %301 }
 0x148   : > { %v217_v26 = vadd.f32 %v286_v23, %v209_v24  ;;  %v202_v27 = vmul.f32 %v302_v25, %v186_v10 }
 0x14a   : > { %219 = vst.msk [vmem:[%s170_s24] sm:$0xff] %vm175_vm0, %v217_v26  ;;  %v210_v28 = vmul.f32 %v285_v21, %v202_v27 }
 0x14c   : > { %v218_v29 = vadd.f32 %v286_v23, %v210_v28 }
 0x14e   : > { %220 = vst.msk [vmem:[%s170_s24 + $0x8] sm:$0xff] %vm175_vm0, %v218_v29 }
 0x14f PF: > { %s13_s12 = sadd.s32 1, %s309_s12  }
 0x150   : > { %p10_p4 = scmp.ge.s32.totalorder %s13_s12, 4  }
 0x152   :  { %12 = sbr.rel (!%p10_p4) target bundleno = 1 (0x1), region = 62 }

// kernel: _lambda_.12
= control target key start
LH: loop header
LB: loop body
LE: loop exit
PB: predicated region body
PF: predicated region fallthrough
CT: control target
= control target key end

     0   :  { %s730_s24 = smov 0   ;;  %s810_s0 = inlined_call_operand.vmem [shape: f32[2,16,32], index: 0, kind: input, shape index: {}]   ;;  %s811_s1 = inlined_call_operand.vmem [shape: f32[32,64], index: 1, kind: input, shape index: {}]   ;;  %s812_s2 = inlined_call_operand.vmem [shape: f32[1,64], index: 2, kind: input, shape index: {}]   ;;  %s813_s3 = inlined_call_operand.vmem [shape: f32[64,32], index: 3, kind: input, shape index: {}]   ;;  %s814_s4 = inlined_call_operand.vmem [shape: f32[1,32], index: 4, kind: input, shape index: {}]   ;;  %s815_s5 = inlined_call_operand.vmem [shape: f32[1,32], index: 5, kind: input, shape index: {}]   ;;  %s816_s6 = inlined_call_operand.vmem [shape: f32[1,32], index: 6, kind: input, shape index: {}]   ;;  %s817_s7 = inlined_call_operand.vmem [shape: f32[2,16,32], index: 7, kind: output, shape index: {}]  }
   0x1 LB: > { %s579_s25 = sadd.s32 4294967295, %s688_s24   ;;  %p583_p0 = scmp.ge.s32.totalorder %s688_s24, 1  ;;  %s688_s24 = sphi %s730_s24, %s17_s24  }
   0x2   : > { %p237_p1 = scmp.lt.s32.totalorder %s688_s24, 3 }
   0x4   : > { %p238_p2 = pnand %p583_p0, %p237_p1 }
   0x5   : > { %v281_v0 = vld [vmem:[%s811_s1] sm:$0xff] (!%p238_p2)  ;;  %v282_v1 = vld [vmem:[%s811_s1 + $0x8] sm:$0xff] (!%p238_p2)  ;;  %v283_v2 = vld [vmem:[%s811_s1 + $0x10] sm:$0xff] (!%p238_p2)  ;;  %p269_p3 = scmp.lt.s32.totalorder (!%p238_p2), %s579_s25, 1  ;;  %vm292_vm0 = vcmask (!%p238_p2), 261120   ;;  %vm384_vm1 = vcmask (!%p238_p2), 523264  }
   0x6   : > { %241 = sbr.rel (%p238_p2) target bundleno = 771 (0x303), region = 48  ;;  %v646_v3 = vpack.c.bf16 (!%p238_p2), %v282_v1, %v281_v0  ;;  %v284_v4 = vld [vmem:[%s811_s1 + $0x18] sm:$0xff] (!%p238_p2)  ;;  %v376_v5 = vld [vmem:[%s813_s3] sm:$0xff] (!%p238_p2)  ;;  %v377_v6 = vld [vmem:[%s813_s3 + $0x8] sm:$0xff] (!%p238_p2) }
   0x7   : > { %v650_v7 = vpack.c.bf16 (!%p238_p2), %v284_v4, %v283_v2  ;;  %v654_v8 = vpack.c.bf16 (!%p238_p2), %v377_v6, %v376_v5  ;;  %v378_v9 = vld [vmem:[%s813_s3 + $0x10] sm:$0xff] (!%p238_p2)  ;;  %v379_v10 = vld [vmem:[%s813_s3 + $0x18] sm:$0xff] (!%p238_p2)  ;;  %v380_v12 = vld [vmem:[%s813_s3 + $0x20] sm:$0xff] (!%p238_p2) }
   0x8   : > { %647 = vmatprep.subr.bf16.mxu0 (!%p238_p2), %v646_v3  ;;  %v658_v11 = vpack.c.bf16 (!%p238_p2), %v379_v10, %v378_v9  ;;  %v381_v13 = vld [vmem:[%s813_s3 + $0x28] sm:$0xff] (!%p238_p2)  ;;  %v382_v17 = vld [vmem:[%s813_s3 + $0x30] sm:$0xff] (!%p238_p2)  ;;  %v383_v18 = vld [vmem:[%s813_s3 + $0x38] sm:$0xff] (!%p238_p2) }
   0x9   : > { %649 = vmatpush3.bf16.msra.mxu0 (!%p238_p2), %v646_v3  ;;  %655 = vmatprep.subr.bf16.mxu1 (!%p238_p2), %v654_v8  ;;  %v662_v15 = vpack.c.bf16 (!%p238_p2), %v381_v13, %v380_v12  ;;  %v666_v19 = vpack.c.bf16 (!%p238_p2), %v383_v18, %v382_v17  ;;  %v588_v20 = vld [vmem:[%s812_s2] ss:$0 sm:$0xff] (!%p238_p2) }
   0xa   : > { %651 = vmatprep.subr.bf16.mxu0 (!%p238_p2), %v650_v7  ;;  %657 = vmatpush3.bf16.msra.mxu1 (!%p238_p2), %v654_v8  ;;  %v593_v29 = vld [vmem:[%s814_s4] ss:$0 sm:$0xff] (!%p238_p2) }
   0xb   : > { %659 = vmatprep.subr.bf16.mxu1 (!%p238_p2), %v658_v11  ;;  %v594_v53 = vld [vmem:[%s815_s5] ss:$0 sm:$0xff] (!%p238_p2) }
   0xc   : > { %v595_v55 = vld [vmem:[%s816_s6] ss:$0 sm:$0xff] (!%p238_p2) }
   0xd   : > { %s819_s25 = smov (!%p269_p3, %s579_s25), 1  ;;  %653 = vmatpush3.bf16.msra.mxu0 %v650_v7 }
   0xe   : > { %s598_s23 = sshll.u32 %s819_s25, 4  ;;  %661 = vmatpush3.bf16.msra.mxu1 %v658_v11 }
   0xf   : > { %s273_s28 = scalar_lea.vmem %s810_s0, %s598_s23  ;;  %663 = vmatprep.subr.bf16.mxu1 %v662_v15  ;;  %s278_s20 = scalar_lea.vmem %s817_s7, %s598_s23 }
  0x10   : > { %v279_v14 = vld [vmem:[%s273_s28] sm:$0xff]  ;;  %v280_v16 = vld [vmem:[%s273_s28 + $0x8] sm:$0xff] }
  0x11   : > { %624 = vmatprep.mubr.msk.f32.mxu0 %vm292_vm0, %v279_v14 }
  0x12   : > { %625 = vmatmul.mubr.msk.f32.vlgmr.msra.gmra.mrb[0].mxu0 %vm292_vm0, %v280_v16  ;;  %665 = vmatpush3.bf16.msra.mxu1 %v662_v15 }
  0x13   : > { %667 = vmatprep.subr.bf16.mxu1 %v666_v19 }
  0x16   : > { %669 = vmatpush3.bf16.msra.mxu1 %v666_v19 }
  0xe5   : > { %v626_v21 = vpop.f32.mrb[0].mxu0 }
  0xe6   : > { %v371_v22 = vadd.f32 %v626_v21, %v588_v20  ;;  %v365_v23 = vpop.f32.mrb[1].mxu0 }
  0xe7   : > { %v366_v24 = vadd.f32 %v588_v20, %v365_v23 }
  0xe8   : > { %v375_v26 = vmax.f32 %v371_v22, 0.0 }
  0xe9   : > { %v374_v25 = vmax.f32 %v366_v24, 0.0 }
  0xeb   : > { %643 = vmatprep.mubr.msk.f32.mxu1 %vm384_vm1, %v374_v25 }
  0xec   : > { %644 = vmatmul.mubr.msk.f32.vlgmr.msra.gmra.mrb[0].mxu1 %vm384_vm1, %v375_v26 }
 0x1bf   : > { %v645_v27 = vpop.f32.mrb[0].mxu1 }
 0x1c0   : > { %v457_v28 = vpop.f32.mrb[1].mxu1  ;;  %v467_v30 = vadd.f32 %v645_v27, %v280_v16 }
 0x1c1   : > { %v466_v31 = vadd.f32 %v457_v28, %v279_v14 }
 0x1c2   : > { %v476_v34 = vadd.f32 %v593_v29, %v467_v30 }
 0x1c3   : > { %v475_v32 = vadd.f32 %v593_v29, %v466_v31 }
 0x1c4   : > { %v482_v35 = vsel %vm292_vm0, %v476_v34, 0.0 }
 0x1c5   : > { %v479_v33 = vsel %vm292_vm0, %v475_v32, 0.0 }
 0x1c6   : > { %480 = vadd.xlane.f32.xlu0 %v479_v33 }
 0x1ca   : > { %483 = vadd.xlane.f32.xlu0 %v482_v35 }
 0x253   : > { %v481_v36 = vpop.xlane.xlu0 %480 }
 0x254   : > { %v486_v37 = vmul.f32 0.03125, %v481_v36 }
 0x256   : > { %v488_v38 = vsub.f32 %v475_v32, %v486_v37 }
 0x257   : > { %v484_v39 = vpop.xlane.xlu0 %483 }
 0x258   : > { %v487_v40 = vmul.f32 0.03125, %v484_v39  ;;  %v490_v41 = vmul.f32 %v488_v38, %v488_v38 }
 0x25a   : > { %v489_v42 = vsub.f32 %v476_v34, %v487_v40  ;;  %v492_v43 = vsel %vm292_vm0, %v490_v41, 0.0 }
 0x25b   : > { %493 = vadd.xlane.f32.xlu1 %v492_v43 }
 0x25c   : > { %v491_v44 = vmul.f32 %v489_v42, %v489_v42 }
 0x25e   : > { %v495_v45 = vsel %vm292_vm0, %v491_v44, 0.0 }
 0x25f   : > { %496 = vadd.xlane.f32.xlu1 %v495_v45 }
 0x2e8   : > { %v494_v46 = vpop.xlane.xlu1 %493 }
 0x2e9   : > { %v498_v47 = vmul.f32 0.03125, %v494_v46 }
 0x2eb   : > { %v500_v48 = vadd.f32 1e-05, %v498_v47 }
 0x2ec   : > { %v497_v49 = vpop.xlane.xlu1 %496 }
 0x2ed   : > { %678 = vrsqrt.f32 %v500_v48  ;;  %v499_v50 = vmul.f32 0.03125, %v497_v49 }
 0x2ef   : > { %v501_v51 = vadd.f32 1e-05, %v499_v50 }
 0x2f1   : > { %680 = vrsqrt.f32 %v501_v51 }
 0x2f7   : > { %v679_v52 = vpop.eup %678 }
 0x2f8   : > { %v504_v54 = vmul.f32 %v679_v52, %v488_v38 }
 0x2fa   : > { %v512_v56 = vmul.f32 %v594_v53, %v504_v54 }
 0x2fb   : > { %v681_v57 = vpop.eup %680 }
 0x2fc   : > { %v520_v58 = vadd.f32 %v595_v55, %v512_v56  ;;  %v505_v59 = vmul.f32 %v681_v57, %v489_v42 }
 0x2fe   : > { %522 = vst.msk [vmem:[%s278_s20] sm:$0xff] %vm292_vm0, %v520_v58  ;;  %v513_v60 = vmul.f32 %v594_v53, %v505_v59 }
 0x300   : > { %v521_v61 = vadd.f32 %v595_v55, %v513_v60 }
 0x302   : > { %523 = vst.msk [vmem:[%s278_s20 + $0x8] sm:$0xff] %vm292_vm0, %v521_v61 }
 0x303 PF: > { %s17_s24 = sadd.s32 1, %s688_s24  }
 0x304   : > { %p14_p4 = scmp.ge.s32.totalorder %s17_s24, 4  }
 0x306   :  { %16 = sbr.rel (!%p14_p4) target bundleno = 1 (0x1), region = 78 }

// kernel: _lambda_.11
= control target key start
LH: loop header
LB: loop body
LE: loop exit
PB: predicated region body
PF: predicated region fallthrough
CT: control target
= control target key end

     0   :  { %s3449_s21 = smov 0   ;;  %s3807_s0 = inlined_call_operand.vmem [shape: f32[2,16,32], index: 0, kind: input, shape index: {}, may-alias: {0,1}]   ;;  %s3808_s1 = inlined_call_operand.vmem [shape: f32[2,16,32], index: 1, kind: input, shape index: {}, may-alias: {0,1}]   ;;  %s3809_s2 = inlined_call_operand.vmem [shape: f32[4,32,8], index: 2, kind: input, shape index: {}]   ;;  %s3810_s3 = inlined_call_operand.vmem [shape: f32[4,32,8], index: 3, kind: input, shape index: {}]   ;;  %s3811_s4 = inlined_call_operand.vmem [shape: f32[4,32,8], index: 4, kind: input, shape index: {}]   ;;  %s3812_s5 = inlined_call_operand.vmem [shape: f32[4,1,8], index: 5, kind: input, shape index: {}]   ;;  %s3813_s6 = inlined_call_operand.vmem [shape: f32[4,1,8], index: 6, kind: input, shape index: {}]   ;;  %s3814_s7 = inlined_call_operand.vmem [shape: f32[4,1,8], index: 7, kind: input, shape index: {}]   ;;  %s3815_s8 = inlined_call_operand.vmem [shape: f32[4,8,32], index: 8, kind: input, shape index: {}]   ;;  %s3816_s9 = inlined_call_operand.vmem [shape: f32[1,32], index: 9, kind: input, shape index: {}]   ;;  %s3817_s10 = inlined_call_operand.vmem [shape: f32[1,32], index: 10, kind: input, shape index: {}]   ;;  %s3818_s11 = inlined_call_operand.vmem [shape: f32[1,32], index: 11, kind: input, shape index: {}]   ;;  %s3819_s12 = inlined_call_operand.vmem [shape: f32[2,16,32], index: 12, kind: output, shape index: {}]  }
   0x1 LB: > { %s2731_s22 = sadd.s32 4294967295, %s3382_s21   ;;  %p2735_p0 = scmp.ge.s32.totalorder %s3382_s21, 1  ;;  %s3382_s21 = sphi %s3449_s21, %s22_s21  }
   0x2   : > { %p372_p1 = scmp.lt.s32.totalorder %s3382_s21, 3 }
   0x4   : > { %p373_p2 = pnand %p2735_p0, %p372_p1 }
   0x5   : > { %v531_v0 = vld [vmem:[%s3810_s3] sm:$0xff] (!%p373_p2)  ;;  %v532_v1 = vld [vmem:[%s3810_s3 + $0x8] sm:$0xff] (!%p373_p2)  ;;  %v533_v2 = vld [vmem:[%s3810_s3 + $0x10] sm:$0xff] (!%p373_p2)  ;;  %p419_p3 = scmp.lt.s32.totalorder (!%p373_p2), %s2731_s22, 1  ;;  %vm449_vm0 = vcmask (!%p373_p2), 261120   ;;  %vm709_vm1 = vcmask (!%p373_p2), 64512  }
   0x6   : > { %376 = sbr.rel (%p373_p2) target bundleno = 4237 (0x108d), region = 68  ;;  %v3198_v3 = vpack.c.bf16 (!%p373_p2), %v532_v1, %v531_v0  ;;  %v534_v4 = vld [vmem:[%s3810_s3 + $0x18] sm:$0xff] (!%p373_p2)  ;;  %v438_v5 = vld [vmem:[%s3809_s2] sm:$0xff] (!%p373_p2)  ;;  %v439_v6 = vld [vmem:[%s3809_s2 + $0x8] sm:$0xff] (!%p373_p2)  ;;  %vm799_vm3 = vcmask (!%p373_p2), 130048  }
   0x7   : > { %v3202_v7 = vpack.c.bf16 (!%p373_p2), %v534_v4, %v533_v2  ;;  %v3190_v8 = vpack.c.bf16 (!%p373_p2), %v439_v6, %v438_v5  ;;  %v440_v9 = vld [vmem:[%s3809_s2 + $0x10] sm:$0xff] (!%p373_p2)  ;;  %v441_v10 = vld [vmem:[%s3809_s2 + $0x18] sm:$0xff] (!%p373_p2)  ;;  %v2745_v16 = vld [vmem:[%s3813_s6] ss:$0 sm:$0xff] (!%p373_p2) }
   0x8   : > { %3199 = vmatprep.subr.bf16.mxu1 (!%p373_p2), %v3198_v3  ;;  %v3194_v11 = vpack.c.bf16 (!%p373_p2), %v441_v10, %v440_v9  ;;  %v2742_v18 = vld [vmem:[%s3812_s5] ss:$0 sm:$0xff] (!%p373_p2)  ;;  %vm3517_vm2 = vmpackc.low (!%p373_p2), %vm709_vm1, %vm709_vm1  ;;  %v624_v29 = vld [vmem:[%s3811_s4 + $0x8] sm:$0xff] (!%p373_p2) }
   0x9   : > { %3201 = vmatpush3.bf16.msra.mxu1 (!%p373_p2), %v3198_v3  ;;  %3191 = vmatprep.subr.bf16.mxu0 (!%p373_p2), %v3190_v8  ;;  %v623_v28 = vld [vmem:[%s3811_s4] sm:$0xff] (!%p373_p2)  ;;  %v625_v30 = vld [vmem:[%s3811_s4 + $0x10] sm:$0xff] (!%p373_p2)  ;;  %v626_v32 = vld [vmem:[%s3811_s4 + $0x18] sm:$0xff] (!%p373_p2) }
   0xa   : > { %3203 = vmatprep.subr.bf16.mxu1 (!%p373_p2), %v3202_v7  ;;  %3193 = vmatpush3.bf16.msra.mxu0 (!%p373_p2), %v3190_v8  ;;  %v3206_v31 = vpack.c.bf16 (!%p373_p2), %v624_v29, %v623_v28  ;;  %v3210_v33 = vpack.c.bf16 (!%p373_p2), %v626_v32, %v625_v30  ;;  %v2765_v50 = vld [vmem:[%s3810_s3 + $0x20] sm:$0xff] (!%p373_p2)  ;;  %v2766_v51 = vld [vmem:[%s3810_s3 + $0x28] sm:$0xff] (!%p373_p2)  ;;  %v2767_v58 = vld [vmem:[%s3810_s3 + $0x30] sm:$0xff] (!%p373_p2) }
   0xb   : > { %3195 = vmatprep.subr.bf16.mxu0 (!%p373_p2), %v3194_v11  ;;  %v3232_v52 = vpack.c.bf16 (!%p373_p2), %v2766_v51, %v2765_v50  ;;  %v2748_v54 = vld [vmem:[%s3814_s7] ss:$0 sm:$0xff] (!%p373_p2)  ;;  %v2768_v59 = vld [vmem:[%s3810_s3 + $0x38] sm:$0xff] (!%p373_p2)  ;;  %v2758_v63 = vld [vmem:[%s3809_s2 + $0x28] sm:$0xff] (!%p373_p2) }
   0xc   : > { %v3236_v60 = vpack.c.bf16 (!%p373_p2), %v2768_v59, %v2767_v58  ;;  %v2757_v62 = vld [vmem:[%s3809_s2 + $0x20] sm:$0xff] (!%p373_p2)  ;;  %v2759_v5 = vld [vmem:[%s3809_s2 + $0x30] sm:$0xff] (!%p373_p2)  ;;  %v2760_v6 = vld [vmem:[%s3809_s2 + $0x38] sm:$0xff] (!%p373_p2) }
   0xd   : > { %s3823_s22 = smov (!%p419_p3, %s2731_s22), 1  ;;  %3205 = vmatpush3.bf16.msra.mxu1 %v3202_v7  ;;  %v3224_v0 = vpack.c.bf16 %v2758_v63, %v2757_v62  ;;  %v3228_v9 = vpack.c.bf16 %v2760_v6, %v2759_v5  ;;  %v2770_v10 = vld [vmem:[%s3813_s6 + $0x1] ss:$0 sm:$0xff]  ;;  %v2774_v29 = vld [vmem:[%s3811_s4 + $0x28] sm:$0xff]  ;;  %v2775_v30 = vld [vmem:[%s3811_s4 + $0x30] sm:$0xff] }
   0xe   : > { %s3481_s23 = sshll.u32 %s3823_s22, 4  ;;  %3197 = vmatpush3.bf16.msra.mxu0 %v3194_v11  ;;  %v2773_v28 = vld [vmem:[%s3811_s4 + $0x20] sm:$0xff]  ;;  %v2776_v32 = vld [vmem:[%s3811_s4 + $0x38] sm:$0xff] }
   0xf   : > { %s428_s26 = scalar_lea.vmem %s3808_s1, %s3481_s23  ;;  %s423_s29 = scalar_lea.vmem %s3807_s0, %s3481_s23  ;;  %3207 = vmatprep.subr.bf16.mxu0 %v3206_v31  ;;  %v2778_v51 = vld [vmem:[%s3814_s7 + $0x1] ss:$0 sm:$0xff]  ;;  %v2844_v24 = vld [vmem:[%s3811_s4 + $0x78] sm:$0xff] }
  0x10   : > { %v3487_v12 = vld [vmem:[%s428_s26] sm:$0xff]  ;;  %v3497_v14 = vld [vmem:[%s428_s26 + $0x8] sm:$0xff]  ;;  %s433_s19 = scalar_lea.vmem %s3819_s12, %s3481_s23 }
  0x11   : > { %3001 = vmatprep.mubr.msk.f32.mxu1 %vm449_vm0, %v3487_v12  ;;  %v3495_v13 = vld [vmem:[%s423_s29] sm:$0xff]  ;;  %v3501_v15 = vld [vmem:[%s423_s29 + $0x8] sm:$0xff] }
  0x12   : > { %2990 = vmatprep.mubr.msk.f32.mxu0 %vm449_vm0, %v3495_v13  ;;  %3002 = vmatmul.mubr.msk.f32.vlgmr.msra.gmra.mrb[0].mxu1 %vm449_vm0, %v3497_v14  ;;  %v903_v63 = vld [vmem:[%s3815_s8] sm:$0xff] }
  0x13   : > { %2991 = vmatmul.mubr.msk.f32.vlgmr.msra.gmra.mrb[0].mxu0 %vm449_vm0, %v3501_v15  ;;  %v2800_v6 = vld [vmem:[%s3810_s3 + $0x40] sm:$0xff] }
  0x14   : > { %3012 = vmatprep.mubr.msk.f32.mxu0 %vm449_vm0, %v3487_v12  ;;  %3209 = vmatpush3.bf16.msra.mxu0 %v3206_v31  ;;  %v3240_v31 = vpack.c.bf16 %v2774_v29, %v2773_v28 }
  0x15   : > { %3211 = vmatprep.subr.bf16.mxu0 %v3210_v33 }
  0x18   : > { %3213 = vmatpush3.bf16.msra.mxu0 %v3210_v33  ;;  %v3244_v33 = vpack.c.bf16 %v2776_v32, %v2775_v30  ;;  %v2808_v30 = vld [vmem:[%s3811_s4 + $0x40] sm:$0xff]  ;;  %v2810_v32 = vld [vmem:[%s3811_s4 + $0x50] sm:$0xff] }
  0x19   : > { %3233 = vmatprep.subr.bf16.mxu0 %v3232_v52 }
  0x1b   : > { %3013 = vmatmul.mubr.msk.f32.vlgmr.msra.gmra.mrb[2].mxu0 %vm449_vm0, %v3497_v14 }
  0x1c   : > { %3048 = vmatprep.mubr.msk.f32.mxu0 %vm449_vm0, %v3487_v12  ;;  %3235 = vmatpush3.bf16.msra.mxu0 %v3232_v52 }
  0x1d   : > { %3237 = vmatprep.subr.bf16.mxu0 %v3236_v60 }
  0x20   : > { %3239 = vmatpush3.bf16.msra.mxu0 %v3236_v60 }
  0x23   : > { %3049 = vmatmul.mubr.msk.f32.vlgmr.msra.gmra.mrb[4].mxu0 %vm449_vm0, %v3497_v14 }
  0xe5   : > { %v3003_v17 = vpop.f32.mrb[0].mxu1 }
  0xe6   : > { %v620_v19 = vadd.f32 %v3003_v17, %v2745_v16  ;;  %v614_v20 = vpop.f32.mrb[1].mxu1  ;;  %v2992_v21 = vpop.f32.mrb[0].mxu0 }
  0xe7   : > { %v615_v22 = vadd.f32 %v2745_v16, %v614_v20  ;;  %v522_v23 = vpop.f32.mrb[1].mxu0  ;;  %v528_v27 = vadd.f32 %v2992_v21, %v2742_v18 }
  0xe8   : > { %v523_v25 = vadd.f32 %v2742_v18, %v522_v23 }
  0xe9   : > { %v3214_v26 = vpack.c.bf16 %v620_v19, %v615_v22  ;;  %v2762_v22 = vld [vmem:[%s3812_s5 + $0x1] ss:$0 sm:$0xff] }
  0xea   : > { %3019 = vmatprep.mubr.msk.f32.mxu1 %vm709_vm1, %v523_v25 }
  0xeb   : > { %3216 = vmatprep.subr.msk.bf16.mxu1 %vm3517_vm2, %v3214_v26 }
  0xec   : > { %3219 = vmatpush3.bf16.xpose.msk.msra.mxu1 %vm3517_vm2, %v3214_v26 }
  0xee   : > { %v3014_v53 = vpop.f32.mrb[2].mxu0 }
  0xef   : > { %v700_v55 = vpop.f32.mrb[3].mxu0  ;;  %v706_v56 = vadd.f32 %v3014_v53, %v2748_v54 }
  0xf0   : > { %v701_v57 = vadd.f32 %v2748_v54, %v700_v55 }
  0xf2   : > { %v3220_v61 = vpack.c.bf16 %v706_v56, %v701_v57  ;;  %v2787_v56 = vld [vmem:[%s3815_s8 + $0x8] sm:$0xff] }
  0xf3   : > { %3020 = vmatmul.mubr.msk.f32.vlgmr.msra.gmra.mrb[2].mxu1 %vm709_vm1, %v528_v27 }
  0xf4   : > { %3221 = vmatprep.subr.bf16.mxu1 %v3220_v61 }
  0xf5   : > { %3223 = vmatpush3.bf16.msra.mxu1 %v3220_v61 }
  0xf6   : > { %3225 = vmatprep.subr.bf16.mxu1 %v3224_v0  ;;  %v3050_v11 = vpop.f32.mrb[4].mxu0 }
  0xf7   : > { %v1077_v16 = vadd.f32 %v3050_v11, %v2770_v10  ;;  %v1071_v17 = vpop.f32.mrb[5].mxu0  ;;  %v2802_v11 = vld [vmem:[%s3810_s3 + $0x50] sm:$0xff] }
  0xf8   : > { %v1072_v18 = vadd.f32 %v2770_v10, %v1071_v17 }
  0xfa   : > { %v3248_v19 = vpack.c.bf16 %v1077_v16, %v1072_v18  ;;  %v2803_v16 = vld [vmem:[%s3810_s3 + $0x58] sm:$0xff]  ;;  %v2797_v18 = vld [vmem:[%s3812_s5 + $0x2] ss:$0 sm:$0xff] }
  0xfb   : > { %v3270_v17 = vpack.c.bf16 %v2803_v16, %v2802_v11  ;;  %v2836_v11 = vld [vmem:[%s3810_s3 + $0x78] sm:$0xff] }
  0xfc   : > { %3250 = vmatprep.subr.msk.bf16.mxu0 %vm3517_vm2, %v3248_v19 }
  0xfd   : > { %3253 = vmatpush3.bf16.xpose.msk.msra.mxu0 %vm3517_vm2, %v3248_v19 }
  0xfe   : > { %3076 = vmatprep.subr.mxu0 %v2787_v56 }
 0x1c6   : > { %v3021_v34 = vpop.f32.mrb[2].mxu1 }
 0x1c7   : > { %v788_v35 = vpop.f32.mrb[3].mxu1  ;;  %v798_v37 = vmul.f32 0.35355338, %v3021_v34 }
 0x1c8   : > { %v797_v36 = vmul.f32 0.35355338, %v788_v35 }
 0x1c9   : > { %v803_v39 = vsel %vm799_vm3, %v798_v37, -inf }
 0x1ca   : > { %v800_v38 = vsel %vm799_vm3, %v797_v36, -inf }
 0x1cb   : > { %801 = vmax.xlane.f32.xlu0 %v800_v38 }
 0x1cf   : > { %804 = vmax.xlane.f32.xlu0 %v803_v39 }
 0x258   : > { %v802_v40 = vpop.xlane.xlu0 %801 }
 0x259   : > { %v806_v41 = vsub.f32 %v797_v36, %v802_v40 }
 0x25b   : > { %v808_v42 = vmul.f32 1.442695, %v806_v41 }
 0x25c   : > { %v805_v43 = vpop.xlane.xlu0 %804 }
 0x25d   : > { %3340 = vpow2.f32 %v808_v42  ;;  %v807_v44 = vsub.f32 %v798_v37, %v805_v43 }
 0x25f   : > { %v810_v45 = vmul.f32 1.442695, %v807_v44 }
 0x261   : > { %3342 = vpow2.f32 %v810_v45 }
 0x267   : > { %v3341_v46 = vpop.eup %3340 }
 0x268   : > { %v812_v47 = vsel %vm799_vm3, %v3341_v46, 0.0 }
 0x269   : > { %813 = vadd.xlane.f32.xlu1 %v812_v47 }
 0x26b   : > { %v3343_v48 = vpop.eup %3342 }
 0x26c   : > { %v815_v49 = vsel %vm799_vm3, %v3343_v48, 0.0 }
 0x26d   : > { %816 = vadd.xlane.f32.xlu1 %v815_v49 }
 0x2f6   : > { %v814_v1 = vpop.xlane.xlu1 %813 }
 0x2f7   : > { %3344 = vrcp.f32 %v814_v1  ;;  %v2793_v1 = vld [vmem:[%s3809_s2 + $0x48] sm:$0xff] }
 0x2fa   : > { %v817_v2 = vpop.xlane.xlu1 %816 }
 0x2fb   : > { %3346 = vrcp.f32 %v817_v2 }
 0x301   : > { %v3345_v3 = vpop.eup %3344 }
 0x302   : > { %v820_v4 = vmul.f32 %v3345_v3, %v3341_v46  ;;  %v2794_v3 = vld [vmem:[%s3809_s2 + $0x50] sm:$0xff] }
 0x304   : > { %3026 = vmatprep.mubr.msk.f32.mxu1 %vm799_vm3, %v820_v4  ;;  %v2795_v4 = vld [vmem:[%s3809_s2 + $0x58] sm:$0xff] }
 0x305   : > { %v3347_v7 = vpop.eup %3346  ;;  %v3262_v5 = vpack.c.bf16 %v2795_v4, %v2794_v3  ;;  %v2825_v4 = vld [vmem:[%s3809_s2 + $0x60] sm:$0xff] }
 0x306   : > { %v821_v8 = vmul.f32 %v3347_v7, %v3343_v48  ;;  %v2801_v7 = vld [vmem:[%s3810_s3 + $0x48] sm:$0xff] }
 0x307   : > { %v3266_v10 = vpack.c.bf16 %v2801_v7, %v2800_v6  ;;  %v2827_v7 = vld [vmem:[%s3809_s2 + $0x70] sm:$0xff] }
 0x308   : > { %3027 = vmatmul.mubr.msk.f32.vlgmr.msra.gmra.mrb[4].mxu1 %vm799_vm3, %v821_v8 }
 0x309   : > { %3227 = vmatpush3.bf16.msra.mxu1 %v3224_v0  ;;  %3037 = vmatprep.mubr.msk.f32.mxu1 %vm449_vm0, %v3495_v13  ;;  %v2792_v0 = vld [vmem:[%s3809_s2 + $0x40] sm:$0xff] }
 0x30a   : > { %3229 = vmatprep.subr.bf16.mxu1 %v3228_v9  ;;  %v3258_v2 = vpack.c.bf16 %v2793_v1, %v2792_v0  ;;  %v2833_v1 = vld [vmem:[%s3810_s3 + $0x60] sm:$0xff] }
 0x30d   : > { %3231 = vmatpush3.bf16.msra.mxu1 %v3228_v9 }
 0x30e   : > { %3241 = vmatprep.subr.bf16.mxu1 %v3240_v31 }
 0x310   : > { %3038 = vmatmul.mubr.msk.f32.vlgmr.msra.gmra.mrb[6].mxu1 %vm449_vm0, %v3501_v15 }
 0x311   : > { %3059 = vmatprep.mubr.msk.f32.mxu1 %vm449_vm0, %v3487_v12  ;;  %3243 = vmatpush3.bf16.msra.mxu1 %v3240_v31  ;;  %v2809_v31 = vld [vmem:[%s3811_s4 + $0x48] sm:$0xff] }
 0x312   : > { %3245 = vmatprep.subr.bf16.mxu1 %v3244_v33 }
 0x315   : > { %3247 = vmatpush3.bf16.msra.mxu1 %v3244_v33  ;;  %v3274_v33 = vpack.c.bf16 %v2809_v31, %v2808_v30  ;;  %v2841_v30 = vld [vmem:[%s3811_s4 + $0x60] sm:$0xff]  ;;  %v2842_v31 = vld [vmem:[%s3811_s4 + $0x68] sm:$0xff] }
 0x318   : > { %3060 = vmatmul.mubr.msk.f32.vlgmr.msra.gmra.mrb[8].mxu1 %vm449_vm0, %v3497_v14 }
 0x3db   : > { %v3591_v20 = vpop.f32.mrb[4].mxu1 }
 0x3dc   : > { %v3593_v21 = vpop.f32.mrb[5].mxu1 }
 0x3e3   : > { %v3039_v23 = vpop.f32.mrb[6].mxu1 }
 0x3e4   : > { %v983_v25 = vpop.f32.mrb[7].mxu1  ;;  %v989_v27 = vadd.f32 %v3039_v23, %v2762_v22 }
 0x3e5   : > { %v984_v26 = vadd.f32 %v2762_v22, %v983_v25 }
 0x3e7   : > { %3066 = vmatprep.mubr.msk.f32.mxu0 %vm709_vm1, %v984_v26 }
 0x3e8   : > { %3067 = vmatmul.mubr.msk.f32.vlgmr.msra.gmra.mrb[6].mxu0 %vm709_vm1, %v989_v27 }
 0x3e9   : > { %3077 = vmatpush3.msra.mxu0 %v2787_v56 }
 0x3ea   : > { %3081 = vmatprep.subr.mxu0 %v903_v63 }
 0x3eb   : > { %v3061_v50 = vpop.f32.mrb[8].mxu1 }
 0x3ec   : > { %v1159_v52 = vpop.f32.mrb[9].mxu1  ;;  %v1165_v53 = vadd.f32 %v3061_v50, %v2778_v51 }
 0x3ed   : > { %v1160_v54 = vadd.f32 %v2778_v51, %v1159_v52 }
 0x3ef   : > { %v3254_v55 = vpack.c.bf16 %v1165_v53, %v1160_v54  ;;  %v2813_v53 = vld [vmem:[%s3814_s7 + $0x2] ss:$0 sm:$0xff] }
 0x3f1   : > { %3255 = vmatprep.subr.bf16.mxu1 %v3254_v55 }
 0x3f2   : > { %3257 = vmatpush3.bf16.msra.mxu1 %v3254_v55 }
 0x3f3   : > { %3259 = vmatprep.subr.bf16.mxu1 %v3258_v2 }
 0x4bb   : > { %v3068_v34 = vpop.f32.mrb[6].mxu0 }
 0x4bc   : > { %v1256_v35 = vmul.f32 0.35355338, %v3068_v34  ;;  %v1246_v36 = vpop.f32.mrb[7].mxu0  ;;  %v2811_v34 = vld [vmem:[%s3811_s4 + $0x58] sm:$0xff] }
 0x4bd   : > { %v1255_v37 = vmul.f32 0.35355338, %v1246_v36 }
 0x4be   : > { %v1260_v38 = vsel %vm799_vm3, %v1256_v35, -inf }
 0x4bf   : > { %1261 = vmax.xlane.f32.xlu1 %v1260_v38  ;;  %v1257_v39 = vsel %vm799_vm3, %v1255_v37, -inf }
 0x4c0   : > { %1258 = vmax.xlane.f32.xlu0 %v1257_v39 }
 0x54c   : > { %v1262_v40 = vpop.xlane.xlu1 %1261 }
 0x54d   : > { %v1264_v41 = vsub.f32 %v1256_v35, %v1262_v40  ;;  %v1259_v42 = vpop.xlane.xlu0 %1258  ;;  %v3278_v35 = vpack.c.bf16 %v2811_v34, %v2810_v32  ;;  %v2843_v32 = vld [vmem:[%s3811_s4 + $0x70] sm:$0xff] }
 0x54e   : > { %v1263_v43 = vsub.f32 %v1255_v37, %v1259_v42  ;;  %v3312_v34 = vpack.c.bf16 %v2844_v24, %v2843_v32  ;;  %v2860_v32 = vld [vmem:[%s3818_s11] ss:$0 sm:$0xff] }
 0x54f   : > { %v1267_v44 = vmul.f32 1.442695, %v1264_v41 }
 0x550   : > { %v1265_v45 = vmul.f32 1.442695, %v1263_v43 }
 0x551   : > { %3348 = vpow2.f32 %v1267_v44 }
 0x552   : > { %3350 = vpow2.f32 %v1265_v45 }
 0x55b   : > { %v3349_v46 = vpop.eup %3348 }
 0x55c   : > { %v3351_v47 = vpop.eup %3350  ;;  %v1272_v48 = vsel %vm799_vm3, %v3349_v46, 0.0 }
 0x55d   : > { %1273 = vadd.xlane.f32.xlu1 %v1272_v48  ;;  %v1269_v49 = vsel %vm799_vm3, %v3351_v47, 0.0 }
 0x55e   : > { %1270 = vadd.xlane.f32.xlu0 %v1269_v49 }
 0x5ea   : > { %v1274_v57 = vpop.xlane.xlu1 %1273 }
 0x5eb   : > { %3352 = vrcp.f32 %v1274_v57  ;;  %v1271_v58 = vpop.xlane.xlu0 %1270 }
 0x5ec   : > { %3354 = vrcp.f32 %v1271_v58  ;;  %v2822_v58 = vld [vmem:[%s3815_s8 + $0x10] sm:$0xff] }
 0x5f5   : > { %v3353_v59 = vpop.eup %3352 }
 0x5f6   : > { %v3355_v60 = vpop.eup %3354  ;;  %v1278_v62 = vmul.f32 %v3353_v59, %v3349_v46 }
 0x5f7   : > { %v1277_v61 = vmul.f32 %v3355_v60, %v3351_v47 }
 0x5f9   : > { %3073 = vmatprep.mubr.msk.f32.mxu1 %vm799_vm3, %v1277_v61 }
 0x5fa   : > { %3074 = vmatmul.mubr.msk.f32.vlgmr.msra.gmra.mrb[10].mxu1 %vm799_vm3, %v1278_v62 }
 0x5fb   : > { %3094 = vmatprep.mubr.msk.f32.mxu1 %vm449_vm0, %v3495_v13  ;;  %3261 = vmatpush3.bf16.msra.mxu1 %v3258_v2  ;;  %v2834_v2 = vld [vmem:[%s3810_s3 + $0x68] sm:$0xff] }
 0x5fc   : > { %3263 = vmatprep.subr.bf16.mxu1 %v3262_v5  ;;  %v3300_v3 = vpack.c.bf16 %v2834_v2, %v2833_v1  ;;  %v2858_v2 = vld [vmem:[%s3816_s9] ss:$0 sm:$0xff] }
 0x5ff   : > { %3265 = vmatpush3.bf16.msra.mxu1 %v3262_v5  ;;  %v2826_v5 = vld [vmem:[%s3809_s2 + $0x68] sm:$0xff] }
 0x600   : > { %3275 = vmatprep.subr.bf16.mxu1 %v3274_v33  ;;  %v3292_v6 = vpack.c.bf16 %v2826_v5, %v2825_v4 }
 0x602   : > { %3095 = vmatmul.mubr.msk.f32.vlgmr.msra.gmra.mrb[12].mxu1 %vm449_vm0, %v3501_v15 }
 0x603   : > { %3116 = vmatprep.mubr.msk.f32.mxu1 %vm449_vm0, %v3487_v12  ;;  %3277 = vmatpush3.bf16.msra.mxu1 %v3274_v33  ;;  %v3308_v33 = vpack.c.bf16 %v2842_v31, %v2841_v30 }
 0x604   : > { %3279 = vmatprep.subr.bf16.mxu1 %v3278_v35 }
 0x607   : > { %3281 = vmatpush3.bf16.msra.mxu1 %v3278_v35 }
 0x60a   : > { %3117 = vmatmul.mubr.msk.f32.vlgmr.msra.gmra.mrb[14].mxu1 %vm449_vm0, %v3497_v14 }
 0x6cd   : > { %v3075_v8 = vpop.f32.mrb[10].mxu1 }
 0x6ce   : > { %v1351_v9 = vpop.f32.mrb[11].mxu1 }
 0x6cf   : > { %3078 = vmatprep.mubr.msk.f32.mxu0 %vm709_vm1, %v1351_v9 }
 0x6d0   : > { %3079 = vmatmul.mubr.msk.f32.vlgmr.msra.gmra.mrb[8].mxu0 %vm709_vm1, %v3075_v8  ;;  %v2828_v8 = vld [vmem:[%s3809_s2 + $0x78] sm:$0xff] }
 0x6d1   : > { %3082 = vmatpush3.msra.mxu0 %v903_v63  ;;  %3083 = vmatprep.mubr.msk.f32.mxu0 %vm709_vm1, %v3593_v21  ;;  %v3296_v9 = vpack.c.bf16 %v2828_v8, %v2827_v7 }
 0x6d2   : > { %3267 = vmatprep.subr.bf16.mxu0 %v3266_v10 }
 0x6d5   : > { %v3096_v19 = vpop.f32.mrb[12].mxu1 }
 0x6d6   : > { %v1609_v21 = vadd.f32 %v3096_v19, %v2797_v18  ;;  %v1603_v22 = vpop.f32.mrb[13].mxu1  ;;  %v2830_v19 = vld [vmem:[%s3812_s5 + $0x3] ss:$0 sm:$0xff] }
 0x6d7   : > { %v1604_v23 = vadd.f32 %v2797_v18, %v1603_v22 }
 0x6d8   : > { %3084 = vmatmul.mubr.msk.f32.vlgmr.msra.gmra.mrb[8].mxu0 %vm709_vm1, %v3591_v20  ;;  %v2805_v20 = vld [vmem:[%s3813_s6 + $0x2] ss:$0 sm:$0xff] }
 0x6d9   : > { %3269 = vmatpush3.bf16.msra.mxu0 %v3266_v10  ;;  %3105 = vmatprep.mubr.msk.f32.mxu0 %vm449_vm0, %v3487_v12  ;;  %v2835_v10 = vld [vmem:[%s3810_s3 + $0x70] sm:$0xff] }
 0x6da   : > { %3271 = vmatprep.subr.bf16.mxu0 %v3270_v17  ;;  %v3304_v18 = vpack.c.bf16 %v2836_v11, %v2835_v10 }
 0x6dd   : > { %3273 = vmatpush3.bf16.msra.mxu0 %v3270_v17  ;;  %v3118_v52 = vpop.f32.mrb[14].mxu1 }
 0x6de   : > { %v1779_v54 = vpop.f32.mrb[15].mxu1  ;;  %v1785_v55 = vadd.f32 %v3118_v52, %v2813_v53 }
 0x6df   : > { %v1780_v56 = vadd.f32 %v2813_v53, %v1779_v54 }
 0x6e0   : > { %3106 = vmatmul.mubr.msk.f32.vlgmr.msra.gmra.mrb[10].mxu0 %vm449_vm0, %v3497_v14 }
 0x6e1   : > { %3123 = vmatprep.mubr.msk.f32.mxu0 %vm709_vm1, %v1604_v23  ;;  %v3288_v57 = vpack.c.bf16 %v1785_v55, %v1780_v56  ;;  %v2855_v56 = vld [vmem:[%s3815_s8 + $0x18] sm:$0xff] }
 0x6e3   : > { %3289 = vmatprep.subr.bf16.mxu1 %v3288_v57 }
 0x6e4   : > { %3291 = vmatpush3.bf16.msra.mxu1 %v3288_v57 }
 0x6e5   : > { %3293 = vmatprep.subr.bf16.mxu1 %v3292_v6 }
 0x7b3   : > { %v3107_v25 = vpop.f32.mrb[10].mxu0 }
 0x7b4   : > { %v1697_v26 = vadd.f32 %v3107_v25, %v2805_v20  ;;  %v1691_v27 = vpop.f32.mrb[11].mxu0  ;;  %v2838_v25 = vld [vmem:[%s3813_s6 + $0x3] ss:$0 sm:$0xff] }
 0x7b5   : > { %v1692_v28 = vadd.f32 %v2805_v20, %v1691_v27 }
 0x7b7   : > { %v3282_v29 = vpack.c.bf16 %v1697_v26, %v1692_v28 }
 0x7b9   : > { %3284 = vmatprep.subr.msk.bf16.mxu0 %vm3517_vm2, %v3282_v29 }
 0x7ba   : > { %3287 = vmatpush3.bf16.xpose.msk.msra.mxu0 %vm3517_vm2, %v3282_v29 }
 0x7bb   : > { %3133 = vmatprep.subr.mxu0 %v2822_v58 }
 0x7c1   : > { %3124 = vmatmul.mubr.msk.f32.vlgmr.msra.gmra.mrb[12].mxu0 %vm709_vm1, %v1609_v21 }
 0x7c2   : > { %3134 = vmatpush3.msra.mxu0 %v2822_v58 }
 0x7c3   : > { %3301 = vmatprep.subr.bf16.mxu0 %v3300_v3 }
 0x894   : > { %v3125_v36 = vpop.f32.mrb[12].mxu0 }
 0x895   : > { %v1876_v37 = vmul.f32 0.35355338, %v3125_v36  ;;  %v1866_v38 = vpop.f32.mrb[13].mxu0 }
 0x896   : > { %v1875_v39 = vmul.f32 0.35355338, %v1866_v38 }
 0x897   : > { %v1880_v40 = vsel %vm799_vm3, %v1876_v37, -inf }
 0x898   : > { %1881 = vmax.xlane.f32.xlu1 %v1880_v40  ;;  %v1877_v41 = vsel %vm799_vm3, %v1875_v39, -inf }
 0x899   : > { %1878 = vmax.xlane.f32.xlu0 %v1877_v41 }
 0x925   : > { %v1882_v42 = vpop.xlane.xlu1 %1881 }
 0x926   : > { %v1884_v43 = vsub.f32 %v1876_v37, %v1882_v42  ;;  %v1879_v44 = vpop.xlane.xlu0 %1878 }
 0x927   : > { %v1883_v45 = vsub.f32 %v1875_v39, %v1879_v44 }
 0x928   : > { %v1887_v46 = vmul.f32 1.442695, %v1884_v43 }
 0x929   : > { %v1885_v47 = vmul.f32 1.442695, %v1883_v45 }
 0x92a   : > { %3356 = vpow2.f32 %v1887_v46 }
 0x92b   : > { %3358 = vpow2.f32 %v1885_v47 }
 0x934   : > { %v3357_v48 = vpop.eup %3356 }
 0x935   : > { %v3359_v49 = vpop.eup %3358  ;;  %v1892_v50 = vsel %vm799_vm3, %v3357_v48, 0.0 }
 0x936   : > { %1893 = vadd.xlane.f32.xlu1 %v1892_v50  ;;  %v1889_v51 = vsel %vm799_vm3, %v3359_v49, 0.0 }
 0x937   : > { %1890 = vadd.xlane.f32.xlu0 %v1889_v51  ;;  %v2846_v51 = vld [vmem:[%s3814_s7 + $0x3] ss:$0 sm:$0xff] }
 0x9c3   : > { %v1894_v59 = vpop.xlane.xlu1 %1893 }
 0x9c4   : > { %3360 = vrcp.f32 %v1894_v59  ;;  %v1891_v60 = vpop.xlane.xlu0 %1890 }
 0x9c5   : > { %3362 = vrcp.f32 %v1891_v60 }
 0x9ce   : > { %v3361_v61 = vpop.eup %3360 }
 0x9cf   : > { %v3363_v62 = vpop.eup %3362  ;;  %v1898_v0 = vmul.f32 %v3361_v61, %v3357_v48 }
 0x9d0   : > { %v1897_v63 = vmul.f32 %v3363_v62, %v3359_v49 }
 0x9d2   : > { %3130 = vmatprep.mubr.msk.f32.mxu1 %vm799_vm3, %v1897_v63 }
 0x9d3   : > { %3131 = vmatmul.mubr.msk.f32.vlgmr.msra.gmra.mrb[16].mxu1 %vm799_vm3, %v1898_v0 }
 0x9d4   : > { %3146 = vmatprep.mubr.msk.f32.mxu1 %vm449_vm0, %v3495_v13  ;;  %3295 = vmatpush3.bf16.msra.mxu1 %v3292_v6 }
 0x9d5   : > { %3297 = vmatprep.subr.bf16.mxu1 %v3296_v9 }
 0x9d8   : > { %3299 = vmatpush3.bf16.msra.mxu1 %v3296_v9 }
 0x9d9   : > { %3309 = vmatprep.subr.bf16.mxu1 %v3308_v33 }
 0x9db   : > { %3147 = vmatmul.mubr.msk.f32.vlgmr.msra.gmra.mrb[18].mxu1 %vm449_vm0, %v3501_v15 }
 0x9dc   : > { %3168 = vmatprep.mubr.msk.f32.mxu1 %vm449_vm0, %v3487_v12  ;;  %3311 = vmatpush3.bf16.msra.mxu1 %v3308_v33 }
 0x9dd   : > { %3313 = vmatprep.subr.bf16.mxu1 %v3312_v34 }
 0x9e0   : > { %3315 = vmatpush3.bf16.msra.mxu1 %v3312_v34 }
 0x9e3   : > { %3169 = vmatmul.mubr.msk.f32.vlgmr.msra.gmra.mrb[20].mxu1 %vm449_vm0, %v3497_v14 }
 0xaa6   : > { %v3132_v16 = vpop.f32.mrb[16].mxu1 }
 0xaa7   : > { %v1971_v17 = vpop.f32.mrb[17].mxu1 }
 0xaa8   : > { %3135 = vmatprep.mubr.msk.f32.mxu0 %vm709_vm1, %v1971_v17 }
 0xaa9   : > { %3136 = vmatmul.mubr.msk.f32.vlgmr.msra.gmra.mrb[8].mxu0 %vm709_vm1, %v3132_v16 }
 0xaaa   : > { %3303 = vmatpush3.bf16.msra.mxu0 %v3300_v3  ;;  %3157 = vmatprep.mubr.msk.f32.mxu0 %vm449_vm0, %v3487_v12 }
 0xaab   : > { %3305 = vmatprep.subr.bf16.mxu0 %v3304_v18 }
 0xaae   : > { %3307 = vmatpush3.bf16.msra.mxu0 %v3304_v18  ;;  %v3148_v21 = vpop.f32.mrb[18].mxu1 }
 0xaaf   : > { %v2150_v22 = vadd.f32 %v3148_v21, %v2830_v19  ;;  %v2144_v23 = vpop.f32.mrb[19].mxu1 }
 0xab0   : > { %v2145_v20 = vadd.f32 %v2830_v19, %v2144_v23 }
 0xab1   : > { %3158 = vmatmul.mubr.msk.f32.vlgmr.msra.gmra.mrb[14].mxu0 %vm449_vm0, %v3497_v14 }
 0xab2   : > { %3175 = vmatprep.mubr.msk.f32.mxu0 %vm709_vm1, %v2145_v20 }
 0xab6   : > { %v3170_v50 = vpop.f32.mrb[20].mxu1 }
 0xab7   : > { %v2320_v52 = vpop.f32.mrb[21].mxu1  ;;  %v2326_v53 = vadd.f32 %v3170_v50, %v2846_v51 }
 0xab8   : > { %v2321_v54 = vadd.f32 %v2846_v51, %v2320_v52 }
 0xaba   : > { %v3322_v55 = vpack.c.bf16 %v2326_v53, %v2321_v54 }
 0xabc   : > { %3323 = vmatprep.subr.bf16.mxu1 %v3322_v55 }
 0xabd   : > { %3325 = vmatpush3.bf16.msra.mxu1 %v3322_v55 }
 0xb84   : > { %v3159_v12 = vpop.f32.mrb[14].mxu0 }
 0xb85   : > { %v2238_v26 = vadd.f32 %v3159_v12, %v2838_v25  ;;  %v2232_v27 = vpop.f32.mrb[15].mxu0 }
 0xb86   : > { %v2233_v28 = vadd.f32 %v2838_v25, %v2232_v27 }
 0xb88   : > { %v3316_v29 = vpack.c.bf16 %v2238_v26, %v2233_v28 }
 0xb8a   : > { %3318 = vmatprep.subr.msk.bf16.mxu0 %vm3517_vm2, %v3316_v29 }
 0xb8b   : > { %3321 = vmatpush3.bf16.xpose.msk.msra.mxu0 %vm3517_vm2, %v3316_v29  ;;  %v2859_v29 = vld [vmem:[%s3817_s10] ss:$0 sm:$0xff] }
 0xb8c   : > { %3185 = vmatprep.subr.mxu0 %v2855_v56 }
 0xb92   : > { %3176 = vmatmul.mubr.msk.f32.vlgmr.msra.gmra.mrb[16].mxu0 %vm709_vm1, %v2150_v22 }
 0xb93   : > { %3186 = vmatpush3.msra.mxu0 %v2855_v56 }
 0xc65   : > { %v3177_v35 = vpop.f32.mrb[16].mxu0 }
 0xc66   : > { %v2417_v36 = vmul.f32 0.35355338, %v3177_v35  ;;  %v2407_v37 = vpop.f32.mrb[17].mxu0 }
 0xc67   : > { %v2416_v38 = vmul.f32 0.35355338, %v2407_v37 }
 0xc68   : > { %v2421_v39 = vsel %vm799_vm3, %v2417_v36, -inf }
 0xc69   : > { %2422 = vmax.xlane.f32.xlu1 %v2421_v39  ;;  %v2418_v40 = vsel %vm799_vm3, %v2416_v38, -inf }
 0xc6a   : > { %2419 = vmax.xlane.f32.xlu0 %v2418_v40 }
 0xcf6   : > { %v2423_v41 = vpop.xlane.xlu1 %2422 }
 0xcf7   : > { %v2425_v42 = vsub.f32 %v2417_v36, %v2423_v41  ;;  %v2420_v43 = vpop.xlane.xlu0 %2419 }
 0xcf8   : > { %v2424_v44 = vsub.f32 %v2416_v38, %v2420_v43 }
 0xcf9   : > { %v2428_v45 = vmul.f32 1.442695, %v2425_v42 }
 0xcfa   : > { %v2426_v46 = vmul.f32 1.442695, %v2424_v44 }
 0xcfb   : > { %3364 = vpow2.f32 %v2428_v45 }
 0xcfc   : > { %3366 = vpow2.f32 %v2426_v46 }
 0xd05   : > { %v3365_v47 = vpop.eup %3364 }
 0xd06   : > { %v3367_v14 = vpop.eup %3366  ;;  %v2433_v48 = vsel %vm799_vm3, %v3365_v47, 0.0 }
 0xd07   : > { %2434 = vadd.xlane.f32.xlu1 %v2433_v48  ;;  %v2430_v49 = vsel %vm799_vm3, %v3367_v14, 0.0 }
 0xd08   : > { %2431 = vadd.xlane.f32.xlu0 %v2430_v49 }
 0xd94   : > { %v2435_v57 = vpop.xlane.xlu1 %2434 }
 0xd95   : > { %3368 = vrcp.f32 %v2435_v57  ;;  %v2432_v58 = vpop.xlane.xlu0 %2431 }
 0xd96   : > { %3370 = vrcp.f32 %v2432_v58 }
 0xd9f   : > { %v3369_v59 = vpop.eup %3368 }
 0xda0   : > { %v3371_v60 = vpop.eup %3370  ;;  %v2439_v62 = vmul.f32 %v3369_v59, %v3365_v47 }
 0xda1   : > { %v2438_v61 = vmul.f32 %v3371_v60, %v3367_v14 }
 0xda3   : > { %3182 = vmatprep.mubr.msk.f32.mxu1 %vm799_vm3, %v2438_v61 }
 0xda4   : > { %3183 = vmatmul.mubr.msk.f32.vlgmr.msra.gmra.mrb[22].mxu1 %vm799_vm3, %v2439_v62 }
 0xe77   : > { %v3184_v63 = vpop.f32.mrb[22].mxu1 }
 0xe78   : > { %v2512_v0 = vpop.f32.mrb[23].mxu1 }
 0xe79   : > { %3187 = vmatprep.mubr.msk.f32.mxu0 %vm709_vm1, %v2512_v0 }
 0xe7a   : > { %3188 = vmatmul.mubr.msk.f32.vlgmr.msra.gmra.mrb[8].mxu0 %vm709_vm1, %v3184_v63 }
 0xf4d   : > { %v3189_v1 = vpop.f32.mrb[8].mxu0 }
 0xf4e   : > { %v2607_v3 = vadd.f32 %v3189_v1, %v3501_v15  ;;  %v2595_v4 = vpop.f32.mrb[9].mxu0 }
 0xf4f   : > { %v2606_v5 = vadd.f32 %v2595_v4, %v3495_v13 }
 0xf50   : > { %v2616_v6 = vadd.f32 %v2858_v2, %v2607_v3 }
 0xf51   : > { %v2615_v7 = vadd.f32 %v2858_v2, %v2606_v5 }
 0xf52   : > { %v2622_v8 = vsel %vm449_vm0, %v2616_v6, 0.0 }
 0xf53   : > { %2623 = vadd.xlane.f32.xlu1 %v2622_v8  ;;  %v2619_v9 = vsel %vm449_vm0, %v2615_v7, 0.0 }
 0xf54   : > { %2620 = vadd.xlane.f32.xlu0 %v2619_v9 }
 0xfe0   : > { %v2624_v10 = vpop.xlane.xlu1 %2623 }
 0xfe1   : > { %v2627_v11 = vmul.f32 0.03125, %v2624_v10  ;;  %v2621_v16 = vpop.xlane.xlu0 %2620 }
 0xfe2   : > { %v2626_v17 = vmul.f32 0.03125, %v2621_v16 }
 0xfe3   : > { %v2629_v18 = vsub.f32 %v2616_v6, %v2627_v11 }
 0xfe4   : > { %v2628_v19 = vsub.f32 %v2615_v7, %v2626_v17 }
 0xfe5   : > { %v2631_v21 = vmul.f32 %v2629_v18, %v2629_v18 }
 0xfe6   : > { %v2630_v22 = vmul.f32 %v2628_v19, %v2628_v19 }
 0xfe7   : > { %v2635_v15 = vsel %vm449_vm0, %v2631_v21, 0.0 }
 0xfe8   : > { %2636 = vadd.xlane.f32.xlu1 %v2635_v15  ;;  %v2632_v13 = vsel %vm449_vm0, %v2630_v22, 0.0 }
 0xfe9   : > { %2633 = vadd.xlane.f32.xlu0 %v2632_v13 }
0x1075   : > { %v2637_v23 = vpop.xlane.xlu1 %2636 }
0x1076   : > { %v2639_v20 = vmul.f32 0.03125, %v2637_v23  ;;  %v2634_v25 = vpop.xlane.xlu0 %2633 }
0x1077   : > { %v2638_v12 = vmul.f32 0.03125, %v2634_v25 }
0x1078   : > { %v2641_v26 = vadd.f32 1e-05, %v2639_v20 }
0x1079   : > { %v2640_v27 = vadd.f32 1e-05, %v2638_v12 }
0x107a   : > { %3372 = vrsqrt.f32 %v2641_v26 }
0x107b   : > { %3374 = vrsqrt.f32 %v2640_v27 }
0x1084   : > { %v3373_v28 = vpop.eup %3372 }
0x1085   : > { %v3375_v30 = vpop.eup %3374  ;;  %v2645_v31 = vmul.f32 %v3373_v28, %v2629_v18 }
0x1086   : > { %v2644_v33 = vmul.f32 %v3375_v30, %v2628_v19 }
0x1087   : > { %v2653_v24 = vmul.f32 %v2859_v29, %v2645_v31 }
0x1088   : > { %v2652_v34 = vmul.f32 %v2859_v29, %v2644_v33 }
0x1089   : > { %v2661_v35 = vadd.f32 %v2860_v32, %v2653_v24 }
0x108a   : > { %v2660_v36 = vadd.f32 %v2860_v32, %v2652_v34 }
0x108b   : > { %2663 = vst.msk [vmem:[%s433_s19 + $0x8] sm:$0xff] %vm449_vm0, %v2661_v35 }
0x108c   : > { %2662 = vst.msk [vmem:[%s433_s19] sm:$0xff] %vm449_vm0, %v2660_v36 }
0x108d PF: > { %s22_s21 = sadd.s32 1, %s3382_s21  }
0x108e   : > { %p19_p4 = scmp.ge.s32.totalorder %s22_s21, 4  }
0x1090   :  { %21 = sbr.rel (!%p19_p4) target bundleno = 1 (0x1), region = 122 }

// kernel: _lambda_.19
= control target key start
LH: loop header
LB: loop body
LE: loop exit
PB: predicated region body
PF: predicated region fallthrough
CT: control target
= control target key end

     0   :  { %s1472_s24 = smov 0   ;;  %s1589_s0 = inlined_call_operand.vmem [shape: f32[2,16,32], index: 0, kind: input, shape index: {}]   ;;  %s1590_s1 = inlined_call_operand.vmem [shape: f32[32,4], index: 1, kind: input, shape index: {}]   ;;  %s1591_s2 = inlined_call_operand.vmem [shape: f32[1,4], index: 2, kind: input, shape index: {}]   ;;  %s1592_s3 = inlined_call_operand.vmem [shape: f32[4,48], index: 3, kind: input, shape index: {}]   ;;  %s1593_s4 = inlined_call_operand.vmem [shape: f32[1,48], index: 4, kind: input, shape index: {}]   ;;  %s1594_s5 = inlined_call_operand.vmem [shape: f32[48,1], index: 5, kind: input, shape index: {}]   ;;  %s1595_s6 = inlined_call_operand.<no memory space> [shape: f32[1,1], index: 6, kind: input, shape index: {}]   ;;  %s1596_s7 = inlined_call_operand.vmem [shape: f32[4,48], index: 7, kind: input, shape index: {}]   ;;  %s1597_s8 = inlined_call_operand.vmem [shape: f32[1,48], index: 8, kind: input, shape index: {}]   ;;  %s1598_s9 = inlined_call_operand.vmem [shape: f32[48,1], index: 9, kind: input, shape index: {}]   ;;  %s1599_s11 = inlined_call_operand.vmem [shape: f32[4,1], index: 11, kind: input, shape index: {}]   ;;  %s1600_s13 = inlined_call_operand.vmem [shape: f32[2,16,1], index: 13, kind: output, shape index: {0}]   ;;  %s1601_s14 = inlined_call_operand.vmem [shape: f32[2,16,1], index: 14, kind: output, shape index: {1}]   ;;  %s1602_s15 = inlined_call_operand.vmem [shape: f32[2,16,1], index: 15, kind: output, shape index: {2}]   ;;  %s1603_s10 = inlined_call_operand.<no memory space> [shape: f32[1,1], index: 10, kind: input, shape index: {}]   ;;  %s1604_s12 = inlined_call_operand.<no memory space> [shape: f32[1,1], index: 12, kind: input, shape index: {}]  }
   0x1   :  { %v21_v0 = vstv %s1595_s6  ;;  %v23_v1 = vstv %s1603_s10  ;;  %v25_v2 = vstv %s1604_s12 }
   0x2   :  { %22 = vst [vmem:[#allocation2] sm:$0x1] %v21_v0  ;;  %24 = vst [vmem:[#allocation3] sm:$0x1] %v23_v1 }
   0x3   :  { %26 = vst [vmem:[#allocation4] sm:$0x1] %v25_v2 }
   0x4 LB: > { %s1208_s6 = sadd.s32 4294967295, %s1381_s24   ;;  %p1212_p0 = scmp.ge.s32.totalorder %s1381_s24, 1  ;;  %s1381_s24 = sphi %s1472_s24, %s32_s24  }
   0x5   : > { %p448_p1 = scmp.lt.s32.totalorder %s1381_s24, 3 }
   0x7   : > { %p449_p2 = pnand %p1212_p0, %p448_p1 }
   0x8   : > { %v528_v3 = vld [vmem:[%s1590_s1] sm:$0xff] (!%p449_p2)  ;;  %v529_v4 = vld [vmem:[%s1590_s1 + $0x8] sm:$0xff] (!%p449_p2)  ;;  %v530_v5 = vld [vmem:[%s1590_s1 + $0x10] sm:$0xff] (!%p449_p2)  ;;  %p506_p3 = scmp.lt.s32.totalorder (!%p449_p2), %s1208_s6, 1  ;;  %vm539_vm0 = vcmask (!%p449_p2), 261120   ;;  %vm636_vm1 = vcmask (!%p449_p2), 1043456  }
   0x9   : > { %452 = sbr.rel (%p449_p2) target bundleno = 891 (0x37b), region = 72  ;;  %v1335_v6 = vpack.c.bf16 (!%p449_p2), %v529_v4, %v528_v3  ;;  %v531_v7 = vld [vmem:[%s1590_s1 + $0x18] sm:$0xff] (!%p449_p2)  ;;  %v621_v11 = vld [vmem:[%s1592_s3] sm:$0xf] (!%p449_p2)  ;;  %v716_v13 = vld [vmem:[%s1594_s5 + $0x8] sm:$0xff] (!%p449_p2)  ;;  %vm629_vm2 = vcmask (!%p449_p2), 31744  }
   0xa   : > { %v1339_v8 = vpack.c.bf16 (!%p449_p2), %v531_v7, %v530_v5  ;;  %1290 = vmatprep.subr.msk.mxu1 (!%p449_p2), %vm636_vm1, %v621_v11  ;;  %v715_v12 = vld [vmem:[%s1594_s5] sm:$0xff] (!%p449_p2)  ;;  %v717_v17 = vld [vmem:[%s1594_s5 + $0x10] sm:$0xff] (!%p449_p2)  ;;  %v718_v18 = vld [vmem:[%s1594_s5 + $0x18] sm:$0xff] (!%p449_p2)  ;;  %vm728_vm3 = vcmask (!%p449_p2), 392192   ;;  %vm1080_vm4 = vcmask (!%p449_p2), 7168  }
   0xb   : > { %1336 = vmatprep.subr.bf16.mxu0 (!%p449_p2), %v1335_v6  ;;  %1291 = vmatpush3.msk.msra.mxu1 (!%p449_p2), %vm636_vm1, %v621_v11  ;;  %v1343_v14 = vpack.c.bf16 (!%p449_p2), %v716_v13, %v715_v12  ;;  %v1221_v15 = vld [vmem:[%s1591_s2] ss:$0 sm:$0xff] (!%p449_p2)  ;;  %v1347_v22 = vpack.c.bf16 (!%p449_p2), %v718_v18, %v717_v17  ;;  %v720_v24 = vld [vmem:[%s1594_s5 + $0x28] sm:$0xff] (!%p449_p2)  ;;  %v900_v36 = vld [vmem:[%s1598_s9 + $0x10] sm:$0xff] (!%p449_p2) }
   0xc   : > { %1338 = vmatpush3.bf16.msra.mxu0 (!%p449_p2), %v1335_v6  ;;  %v719_v23 = vld [vmem:[%s1594_s5 + $0x20] sm:$0xff] (!%p449_p2)  ;;  %v899_v28 = vld [vmem:[%s1598_s9 + $0x8] sm:$0xff] (!%p449_p2)  ;;  %v901_v37 = vld [vmem:[%s1598_s9 + $0x18] sm:$0xff] (!%p449_p2) }
   0xd   : > { %1340 = vmatprep.subr.bf16.mxu0 (!%p449_p2), %v1339_v8  ;;  %1344 = vmatprep.subr.bf16.mxu1 (!%p449_p2), %v1343_v14  ;;  %v1351_v25 = vpack.c.bf16 (!%p449_p2), %v720_v24, %v719_v23  ;;  %v812_v26 = vld [vmem:[%s1596_s7] sm:$0xf] (!%p449_p2)  ;;  %v1359_v38 = vpack.c.bf16 (!%p449_p2), %v901_v37, %v900_v36  ;;  %v903_v40 = vld [vmem:[%s1598_s9 + $0x28] sm:$0xff] (!%p449_p2) }
   0xe   : > { %v898_v27 = vld [vmem:[%s1598_s9] sm:$0xff] (!%p449_p2) }
   0xf   : > { %v1355_v29 = vpack.c.bf16 (!%p449_p2), %v899_v28, %v898_v27  ;;  %v1224_v30 = vld [vmem:[%s1593_s4] ss:$0 sm:$0xff] (!%p449_p2)  ;;  %v1238_v53 = vld [vmem:[#allocation4] ss:$0 sm:$0xff] (!%p449_p2)  ;;  %v1235_v59 = vld [vmem:[#allocation3] ss:$0 sm:$0xff] (!%p449_p2) }
  0x10   : > { %s1606_s6 = smov (!%p506_p3, %s1208_s6), 1  ;;  %1342 = vmatpush3.bf16.msra.mxu0 %v1339_v8  ;;  %v994_v35 = vld [vmem:[%s1599_s11] sm:$0xf] }
  0x11   : > { %s1492_s16 = sshll.u32 %s1606_s6, 4  ;;  %1356 = vmatprep.subr.bf16.mxu0 %v1355_v29  ;;  %v902_v39 = vld [vmem:[%s1598_s9 + $0x20] sm:$0xff] }
  0x12   : > { %s510_s19 = scalar_lea.vmem %s1589_s0, %s1492_s16  ;;  %v1363_v41 = vpack.c.bf16 %v903_v40, %v902_v39  ;;  %v1228_v42 = vld [vmem:[#allocation2] ss:$0 sm:$0xff]  ;;  %s520_s6 = scalar_lea.vmem %s1601_s14, %s1492_s16 }
  0x13   : > { %v526_v9 = vld [vmem:[%s510_s19] sm:$0xff]  ;;  %v527_v10 = vld [vmem:[%s510_s19 + $0x8] sm:$0xff]  ;;  %s515_s27 = scalar_lea.vmem %s1600_s13, %s1492_s16  ;;  %s525_s30 = scalar_lea.vmem %s1602_s15, %s1492_s16 }
  0x14   : > { %1287 = vmatprep.mubr.msk.f32.mxu0 %vm539_vm0, %v526_v9  ;;  %v1231_v48 = vld [vmem:[%s1597_s8] ss:$0 sm:$0xff] }
  0x15   : > { %1288 = vmatmul.mubr.msk.f32.vlgmr.msra.gmra.mrb[0].mxu0 %vm539_vm0, %v527_v10 }
  0x16   : > { %1358 = vmatpush3.bf16.msra.mxu0 %v1355_v29 }
  0x17   : > { %1360 = vmatprep.subr.bf16.mxu0 %v1359_v38 }
  0x1a   : > { %1362 = vmatpush3.bf16.msra.mxu0 %v1359_v38 }
  0x1b   : > { %1364 = vmatprep.subr.bf16.mxu0 %v1363_v41 }
  0x1e   : > { %1366 = vmatpush3.bf16.msra.mxu0 %v1363_v41 }
  0xe8   : > { %v1289_v16 = vpop.f32.mrb[0].mxu0 }
  0xe9   : > { %v612_v19 = vpop.f32.mrb[1].mxu0  ;;  %v618_v21 = vadd.f32 %v1289_v16, %v1221_v15 }
  0xea   : > { %v613_v20 = vadd.f32 %v1221_v15, %v612_v19 }
  0xec   : > { %1292 = vmatprep.mubr.msk.f32.mxu1 %vm629_vm2, %v613_v20 }
  0xed   : > { %1293 = vmatmul.mubr.msk.f32.vlgmr.msra.gmra.mrb[0].mxu1 %vm629_vm2, %v618_v21 }
  0xee   : > { %1346 = vmatpush3.bf16.msra.mxu1 %v1343_v14 }
  0xef   : > { %1348 = vmatprep.subr.bf16.mxu1 %v1347_v22 }
  0xf2   : > { %1350 = vmatpush3.bf16.msra.mxu1 %v1347_v22 }
  0xf3   : > { %1352 = vmatprep.subr.bf16.mxu1 %v1351_v25 }
  0xf6   : > { %1354 = vmatpush3.bf16.msra.mxu1 %v1351_v25 }
  0xf7   : > { %1310 = vmatprep.subr.msk.mxu1 %vm636_vm1, %v812_v26 }
 0x1c0   : > { %v1294_v31 = vpop.f32.mrb[0].mxu1 }
 0x1c1   : > { %v706_v32 = vpop.f32.mrb[1].mxu1  ;;  %v712_v34 = vadd.f32 %v1294_v31, %v1224_v30 }
 0x1c2   : > { %v707_v33 = vadd.f32 %v1224_v30, %v706_v32 }
 0x1c4   : > { %1307 = vmatprep.mubr.msk.f32.mxu1 %vm728_vm3, %v707_v33 }
 0x1c5   : > { %1308 = vmatmul.mubr.msk.f32.vlgmr.msra.gmra.mrb[2].mxu1 %vm728_vm3, %v712_v34 }
 0x1c6   : > { %1311 = vmatpush3.msk.msra.mxu1 %vm636_vm1, %v812_v26  ;;  %1312 = vmatprep.mubr.msk.f32.mxu1 %vm629_vm2, %v613_v20 }
 0x1c7   : > { %1330 = vmatprep.subr.msk.mxu1 %vm636_vm1, %v994_v35 }
 0x1c9   : > { %1313 = vmatmul.mubr.msk.f32.vlgmr.msra.gmra.mrb[4].mxu1 %vm629_vm2, %v618_v21 }
 0x1ca   : > { %1332 = vmatprep.mubr.msk.f32.mxu1 %vm629_vm2, %v613_v20  ;;  %1331 = vmatpush3.msk.msra.mxu1 %vm636_vm1, %v994_v35 }
 0x1cd   : > { %1333 = vmatmul.mubr.msk.f32.vlgmr.msra.gmra.mrb[6].mxu1 %vm629_vm2, %v618_v21 }
 0x298   : > { %v1309_v43 = vpop.f32.mrb[2].mxu1 }
 0x299   : > { %v807_v44 = vadd.f32 %v1309_v43, %v1228_v42  ;;  %v801_v45 = vpop.f32.mrb[3].mxu1 }
 0x29a   : > { %v802_v46 = vadd.f32 %v1228_v42, %v801_v45 }
 0x29b   : > { %v811_v47 = vmax.f32 %v807_v44, 0.0 }
 0x29c   : > { %v810_v49 = vmax.f32 %v802_v46, 0.0  ;;  %v1314_v50 = vpop.f32.mrb[4].mxu1 }
 0x29d   : > { %1084 = vst.msk [vmem:[%s520_s6 + $0x8] sm:$0xff] %vm1080_vm4, %v811_v47  ;;  %v889_v51 = vpop.f32.mrb[5].mxu1  ;;  %v895_v54 = vadd.f32 %v1314_v50, %v1231_v48 }
 0x29e   : > { %1083 = vst.msk [vmem:[%s520_s6] sm:$0xff] %vm1080_vm4, %v810_v49  ;;  %v890_v52 = vadd.f32 %v1231_v48, %v889_v51 }
 0x2a0   : > { %1327 = vmatprep.mubr.msk.f32.mxu0 %vm728_vm3, %v890_v52  ;;  %v1334_v55 = vpop.f32.mrb[6].mxu1 }
 0x2a1   : > { %v1077_v56 = vadd.f32 %v1334_v55, %v1238_v53  ;;  %1328 = vmatmul.mubr.msk.f32.vlgmr.msra.gmra.mrb[2].mxu0 %vm728_vm3, %v895_v54  ;;  %v1071_v57 = vpop.f32.mrb[7].mxu1 }
 0x2a2   : > { %v1072_v58 = vadd.f32 %v1238_v53, %v1071_v57 }
 0x2a3   : > { %1082 = vst.msk [vmem:[%s515_s27 + $0x8] sm:$0xff] %vm1080_vm4, %v1077_v56 }
 0x2a4   : > { %1081 = vst.msk [vmem:[%s515_s27] sm:$0xff] %vm1080_vm4, %v1072_v58 }
 0x374   : > { %v1329_v60 = vpop.f32.mrb[2].mxu0 }
 0x375   : > { %v989_v61 = vadd.f32 %v1329_v60, %v1235_v59  ;;  %v983_v62 = vpop.f32.mrb[3].mxu0 }
 0x376   : > { %v984_v63 = vadd.f32 %v1235_v59, %v983_v62 }
 0x377   : > { %v993_v0 = vmax.f32 %v989_v61, 0.0 }
 0x378   : > { %v992_v1 = vmax.f32 %v984_v63, 0.0 }
 0x379   : > { %1086 = vst.msk [vmem:[%s525_s30 + $0x8] sm:$0xff] %vm1080_vm4, %v993_v0 }
 0x37a   : > { %1085 = vst.msk [vmem:[%s525_s30] sm:$0xff] %vm1080_vm4, %v992_v1 }
 0x37b PF: > { %s32_s24 = sadd.s32 1, %s1381_s24  }
 0x37c   : > { %p29_p4 = scmp.ge.s32.totalorder %s32_s24, 4  }
 0x37e   :  { %31 = sbr.rel (!%p29_p4) target bundleno = 4 (0x4), region = 126 }

// kernel: _lambda_.15
= control target key start
LH: loop header
LB: loop body
LE: loop exit
PB: predicated region body
PF: predicated region fallthrough
CT: control target
= control target key end

     0   :  { %s3464_s21 = smov 0   ;;  %s3857_s0 = inlined_call_operand.vmem [shape: f32[2,16,32], index: 0, kind: input, shape index: {}, may-alias: {0,1}]   ;;  %s3858_s1 = inlined_call_operand.vmem [shape: f32[2,16,32], index: 1, kind: input, shape index: {}, may-alias: {0,1}]   ;;  %s3859_s2 = inlined_call_operand.vmem [shape: f32[4,32,8], index: 2, kind: input, shape index: {}]   ;;  %s3860_s3 = inlined_call_operand.vmem [shape: f32[4,32,8], index: 3, kind: input, shape index: {}]   ;;  %s3861_s4 = inlined_call_operand.vmem [shape: f32[4,32,8], index: 4, kind: input, shape index: {}]   ;;  %s3862_s5 = inlined_call_operand.vmem [shape: f32[4,1,8], index: 5, kind: input, shape index: {}]   ;;  %s3863_s6 = inlined_call_operand.vmem [shape: f32[4,1,8], index: 6, kind: input, shape index: {}]   ;;  %s3864_s7 = inlined_call_operand.vmem [shape: f32[4,1,8], index: 7, kind: input, shape index: {}]   ;;  %s3865_s8 = inlined_call_operand.vmem [shape: f32[4,8,32], index: 8, kind: input, shape index: {}]   ;;  %s3866_s9 = inlined_call_operand.vmem [shape: f32[1,32], index: 9, kind: input, shape index: {}]   ;;  %s3867_s10 = inlined_call_operand.vmem [shape: f32[1,32], index: 10, kind: input, shape index: {}]   ;;  %s3868_s11 = inlined_call_operand.vmem [shape: f32[1,32], index: 11, kind: input, shape index: {}]   ;;  %s3869_s12 = inlined_call_operand.vmem [shape: f32[2,16,32], index: 12, kind: output, shape index: {}]  }
   0x1 LB: > { %s2746_s22 = sadd.s32 4294967295, %s3397_s21   ;;  %p2750_p0 = scmp.ge.s32.totalorder %s3397_s21, 1  ;;  %s3397_s21 = sphi %s3464_s21, %s22_s21  }
   0x2   : > { %p372_p1 = scmp.lt.s32.totalorder %s3397_s21, 3 }
   0x4   : > { %p373_p2 = pnand %p2750_p0, %p372_p1 }
   0x5   : > { %v536_v0 = vld [vmem:[%s3860_s3] sm:$0xff] (!%p373_p2)  ;;  %v537_v1 = vld [vmem:[%s3860_s3 + $0x8] sm:$0xff] (!%p373_p2)  ;;  %v538_v2 = vld [vmem:[%s3860_s3 + $0x10] sm:$0xff] (!%p373_p2)  ;;  %p419_p3 = scmp.lt.s32.totalorder (!%p373_p2), %s2746_s22, 1  ;;  %vm454_vm0 = vcmask (!%p373_p2), 261120   ;;  %vm714_vm1 = vcmask (!%p373_p2), 64512   ;;  %v438_v34 = vlaneseq (!%p373_p2) }
   0x6   : > { %376 = sbr.rel (%p373_p2) target bundleno = 4241 (0x1091), region = 68  ;;  %v3213_v3 = vpack.c.bf16 (!%p373_p2), %v537_v1, %v536_v0  ;;  %v539_v4 = vld [vmem:[%s3860_s3 + $0x18] sm:$0xff] (!%p373_p2)  ;;  %v443_v5 = vld [vmem:[%s3859_s2] sm:$0xff] (!%p373_p2)  ;;  %v444_v6 = vld [vmem:[%s3859_s2 + $0x8] sm:$0xff] (!%p373_p2)  ;;  %vm808_vm4 = vcmask (!%p373_p2), 130048  }
   0x7   : > { %v3217_v7 = vpack.c.bf16 (!%p373_p2), %v539_v4, %v538_v2  ;;  %v3205_v8 = vpack.c.bf16 (!%p373_p2), %v444_v6, %v443_v5  ;;  %v445_v9 = vld [vmem:[%s3859_s2 + $0x10] sm:$0xff] (!%p373_p2)  ;;  %v446_v10 = vld [vmem:[%s3859_s2 + $0x18] sm:$0xff] (!%p373_p2)  ;;  %v2760_v16 = vld [vmem:[%s3863_s6] ss:$0 sm:$0xff] (!%p373_p2)  ;;  %v3558_v35 = vshrl.u32 (!%p373_p2), %v438_v34, 7  ;;  %v3560_v36 = vand.u32 (!%p373_p2), 127, %v438_v34 }
   0x8   : > { %3214 = vmatprep.subr.bf16.mxu1 (!%p373_p2), %v3213_v3  ;;  %v3209_v11 = vpack.c.bf16 (!%p373_p2), %v446_v10, %v445_v9  ;;  %v2757_v18 = vld [vmem:[%s3862_s5] ss:$0 sm:$0xff] (!%p373_p2)  ;;  %vm3532_vm2 = vmpackc.low (!%p373_p2), %vm714_vm1, %vm714_vm1  ;;  %v629_v29 = vld [vmem:[%s3861_s4 + $0x8] sm:$0xff] (!%p373_p2) }
   0x9   : > { %3216 = vmatpush3.bf16.msra.mxu1 (!%p373_p2), %v3213_v3  ;;  %3206 = vmatprep.subr.bf16.mxu0 (!%p373_p2), %v3205_v8  ;;  %v628_v28 = vld [vmem:[%s3861_s4] sm:$0xff] (!%p373_p2)  ;;  %v630_v30 = vld [vmem:[%s3861_s4 + $0x10] sm:$0xff] (!%p373_p2)  ;;  %v631_v32 = vld [vmem:[%s3861_s4 + $0x18] sm:$0xff] (!%p373_p2)  ;;  %v3563_v37 = vadd.s32 (!%p373_p2), 8, %v3558_v35  ;;  %vm804_vm3 = vcmp.gt.s32.totalorder (!%p373_p2), %v3560_v36, %v3558_v35 }
   0xa   : > { %3218 = vmatprep.subr.bf16.mxu1 (!%p373_p2), %v3217_v7  ;;  %3208 = vmatpush3.bf16.msra.mxu0 (!%p373_p2), %v3205_v8  ;;  %v3221_v31 = vpack.c.bf16 (!%p373_p2), %v629_v29, %v628_v28  ;;  %v3225_v33 = vpack.c.bf16 (!%p373_p2), %v631_v32, %v630_v30  ;;  %v2780_v56 = vld [vmem:[%s3860_s3 + $0x20] sm:$0xff] (!%p373_p2)  ;;  %v2781_v57 = vld [vmem:[%s3860_s3 + $0x28] sm:$0xff] (!%p373_p2)  ;;  %v2782_v0 = vld [vmem:[%s3860_s3 + $0x30] sm:$0xff] (!%p373_p2) }
   0xb   : > { %3210 = vmatprep.subr.bf16.mxu0 (!%p373_p2), %v3209_v11  ;;  %vm805_vm5 = vcmp.gt.s32.totalorder (!%p373_p2), %v3560_v36, %v3563_v37  ;;  %v3247_v58 = vpack.c.bf16 (!%p373_p2), %v2781_v57, %v2780_v56  ;;  %v2763_v60 = vld [vmem:[%s3864_s7] ss:$0 sm:$0xff] (!%p373_p2)  ;;  %v2783_v1 = vld [vmem:[%s3860_s3 + $0x38] sm:$0xff] (!%p373_p2)  ;;  %v2773_v5 = vld [vmem:[%s3859_s2 + $0x28] sm:$0xff] (!%p373_p2) }
   0xc   : > { %v3251_v2 = vpack.c.bf16 (!%p373_p2), %v2783_v1, %v2782_v0  ;;  %v2772_v4 = vld [vmem:[%s3859_s2 + $0x20] sm:$0xff] (!%p373_p2)  ;;  %v2859_v24 = vld [vmem:[%s3861_s4 + $0x78] sm:$0xff] (!%p373_p2) }
   0xd   : > { %s3873_s22 = smov (!%p419_p3, %s2746_s22), 1  ;;  %3220 = vmatpush3.bf16.msra.mxu1 %v3217_v7  ;;  %v3239_v6 = vpack.c.bf16 %v2773_v5, %v2772_v4  ;;  %v2777_v29 = vld [vmem:[%s3862_s5 + $0x1] ss:$0 sm:$0xff] }
   0xe   : > { %s3496_s23 = sshll.u32 %s3873_s22, 4  ;;  %3212 = vmatpush3.bf16.msra.mxu0 %v3209_v11  ;;  %v2774_v11 = vld [vmem:[%s3859_s2 + $0x30] sm:$0xff]  ;;  %v2788_v34 = vld [vmem:[%s3861_s4 + $0x20] sm:$0xff] }
   0xf   : > { %s428_s26 = scalar_lea.vmem %s3858_s1, %s3496_s23  ;;  %s423_s29 = scalar_lea.vmem %s3857_s0, %s3496_s23  ;;  %3222 = vmatprep.subr.bf16.mxu0 %v3221_v31 }
  0x10   : > { %v3502_v12 = vld [vmem:[%s428_s26] sm:$0xff]  ;;  %v3512_v14 = vld [vmem:[%s428_s26 + $0x8] sm:$0xff]  ;;  %s433_s19 = scalar_lea.vmem %s3869_s12, %s3496_s23 }
  0x11   : > { %3016 = vmatprep.mubr.msk.f32.mxu1 %vm454_vm0, %v3502_v12  ;;  %v3510_v13 = vld [vmem:[%s423_s29] sm:$0xff]  ;;  %v3516_v15 = vld [vmem:[%s423_s29 + $0x8] sm:$0xff] }
  0x12   : > { %3005 = vmatprep.mubr.msk.f32.mxu0 %vm454_vm0, %v3510_v13  ;;  %3017 = vmatmul.mubr.msk.f32.vlgmr.msra.gmra.mrb[0].mxu1 %vm454_vm0, %v3512_v14 }
  0x13   : > { %3006 = vmatmul.mubr.msk.f32.vlgmr.msra.gmra.mrb[0].mxu0 %vm454_vm0, %v3516_v15 }
  0x14   : > { %3027 = vmatprep.mubr.msk.f32.mxu0 %vm454_vm0, %v3502_v12  ;;  %3224 = vmatpush3.bf16.msra.mxu0 %v3221_v31 }
  0x15   : > { %3226 = vmatprep.subr.bf16.mxu0 %v3225_v33 }
  0x18   : > { %3228 = vmatpush3.bf16.msra.mxu0 %v3225_v33 }
  0x19   : > { %3248 = vmatprep.subr.bf16.mxu0 %v3247_v58 }
  0x1b   : > { %3028 = vmatmul.mubr.msk.f32.vlgmr.msra.gmra.mrb[2].mxu0 %vm454_vm0, %v3512_v14 }
  0x1c   : > { %3063 = vmatprep.mubr.msk.f32.mxu0 %vm454_vm0, %v3502_v12  ;;  %3250 = vmatpush3.bf16.msra.mxu0 %v3247_v58 }
  0x1d   : > { %3252 = vmatprep.subr.bf16.mxu0 %v3251_v2 }
  0x20   : > { %3254 = vmatpush3.bf16.msra.mxu0 %v3251_v2 }
  0x23   : > { %3064 = vmatmul.mubr.msk.f32.vlgmr.msra.gmra.mrb[4].mxu0 %vm454_vm0, %v3512_v14 }
  0xe5   : > { %v3018_v17 = vpop.f32.mrb[0].mxu1 }
  0xe6   : > { %v625_v19 = vadd.f32 %v3018_v17, %v2760_v16  ;;  %v619_v20 = vpop.f32.mrb[1].mxu1  ;;  %v3007_v21 = vpop.f32.mrb[0].mxu0 }
  0xe7   : > { %v620_v22 = vadd.f32 %v2760_v16, %v619_v20  ;;  %v527_v23 = vpop.f32.mrb[1].mxu0  ;;  %v533_v27 = vadd.f32 %v3007_v21, %v2757_v18  ;;  %v2775_v16 = vld [vmem:[%s3859_s2 + $0x38] sm:$0xff]  ;;  %v2785_v20 = vld [vmem:[%s3863_s6 + $0x1] ss:$0 sm:$0xff] }
  0xe8   : > { %v528_v25 = vadd.f32 %v2757_v18, %v527_v23 }
  0xe9   : > { %v3229_v26 = vpack.c.bf16 %v625_v19, %v620_v22  ;;  %v3243_v19 = vpack.c.bf16 %v2775_v16, %v2774_v11  ;;  %v2807_v11 = vld [vmem:[%s3859_s2 + $0x40] sm:$0xff]  ;;  %v2808_v16 = vld [vmem:[%s3859_s2 + $0x48] sm:$0xff] }
  0xea   : > { %3034 = vmatprep.mubr.msk.f32.mxu1 %vm714_vm1, %v528_v25 }
  0xeb   : > { %3231 = vmatprep.subr.msk.bf16.mxu1 %vm3532_vm2, %v3229_v26 }
  0xec   : > { %3234 = vmatpush3.bf16.xpose.msk.msra.mxu1 %vm3532_vm2, %v3229_v26 }
  0xee   : > { %v3029_v59 = vpop.f32.mrb[2].mxu0 }
  0xef   : > { %v705_v61 = vpop.f32.mrb[3].mxu0  ;;  %v711_v62 = vadd.f32 %v3029_v59, %v2763_v60 }
  0xf0   : > { %v706_v63 = vadd.f32 %v2763_v60, %v705_v61 }
  0xf2   : > { %v3235_v3 = vpack.c.bf16 %v711_v62, %v706_v63  ;;  %v2793_v62 = vld [vmem:[%s3864_s7 + $0x1] ss:$0 sm:$0xff] }
  0xf3   : > { %3035 = vmatmul.mubr.msk.f32.vlgmr.msra.gmra.mrb[2].mxu1 %vm714_vm1, %v533_v27 }
  0xf4   : > { %3236 = vmatprep.subr.bf16.mxu1 %v3235_v3 }
  0xf5   : > { %3238 = vmatpush3.bf16.msra.mxu1 %v3235_v3  ;;  %v2802_v3 = vld [vmem:[%s3865_s8 + $0x8] sm:$0xff] }
  0xf6   : > { %3240 = vmatprep.subr.bf16.mxu1 %v3239_v6  ;;  %v3065_v21 = vpop.f32.mrb[4].mxu0 }
  0xf7   : > { %v1086_v22 = vadd.f32 %v3065_v21, %v2785_v20  ;;  %v1080_v23 = vpop.f32.mrb[5].mxu0  ;;  %v2815_v21 = vld [vmem:[%s3860_s3 + $0x40] sm:$0xff] }
  0xf8   : > { %v1081_v25 = vadd.f32 %v2785_v20, %v1080_v23 }
  0xfa   : > { %v3263_v26 = vpack.c.bf16 %v1086_v22, %v1081_v25  ;;  %v2816_v22 = vld [vmem:[%s3860_s3 + $0x48] sm:$0xff] }
  0xfc   : > { %3265 = vmatprep.subr.msk.bf16.mxu0 %vm3532_vm2, %v3263_v26 }
  0xfd   : > { %3268 = vmatpush3.bf16.xpose.msk.msra.mxu0 %vm3532_vm2, %v3263_v26  ;;  %v3281_v26 = vpack.c.bf16 %v2816_v22, %v2815_v21  ;;  %v2848_v21 = vld [vmem:[%s3860_s3 + $0x60] sm:$0xff]  ;;  %v2849_v22 = vld [vmem:[%s3860_s3 + $0x68] sm:$0xff] }
  0xfe   : > { %3091 = vmatprep.subr.mxu0 %v2802_v3 }
 0x1c6   : > { %v3036_v38 = vpop.f32.mrb[2].mxu1 }
 0x1c7   : > { %v793_v39 = vpop.f32.mrb[3].mxu1  ;;  %v803_v40 = vmul.f32 0.35355338, %v3036_v38  ;;  %v2789_v38 = vld [vmem:[%s3861_s4 + $0x28] sm:$0xff] }
 0x1c8   : > { %v802_v41 = vmul.f32 0.35355338, %v793_v39  ;;  %v2790_v39 = vld [vmem:[%s3861_s4 + $0x30] sm:$0xff] }
 0x1c9   : > { %v807_v44 = vsel %vm805_vm5, -inf, %v803_v40  ;;  %v3255_v40 = vpack.c.bf16 %v2789_v38, %v2788_v34 }
 0x1ca   : > { %v806_v42 = vsel %vm804_vm3, -inf, %v802_v41  ;;  %v812_v45 = vsel %vm808_vm4, %v807_v44, -inf  ;;  %v2791_v41 = vld [vmem:[%s3861_s4 + $0x38] sm:$0xff] }
 0x1cb   : > { %v809_v43 = vsel %vm808_vm4, %v806_v42, -inf }
 0x1cc   : > { %810 = vmax.xlane.f32.xlu0 %v809_v43 }
 0x1d0   : > { %813 = vmax.xlane.f32.xlu0 %v812_v45 }
 0x259   : > { %v811_v46 = vpop.xlane.xlu0 %810 }
 0x25a   : > { %v815_v47 = vsub.f32 %v806_v42, %v811_v46  ;;  %v3259_v42 = vpack.c.bf16 %v2791_v41, %v2790_v39 }
 0x25c   : > { %v817_v48 = vmul.f32 1.442695, %v815_v47 }
 0x25d   : > { %v814_v49 = vpop.xlane.xlu0 %813 }
 0x25e   : > { %3355 = vpow2.f32 %v817_v48  ;;  %v816_v50 = vsub.f32 %v807_v44, %v814_v49 }
 0x260   : > { %v819_v51 = vmul.f32 1.442695, %v816_v50 }
 0x262   : > { %3357 = vpow2.f32 %v819_v51 }
 0x268   : > { %v3356_v52 = vpop.eup %3355 }
 0x269   : > { %v821_v53 = vsel %vm808_vm4, %v3356_v52, 0.0 }
 0x26a   : > { %822 = vadd.xlane.f32.xlu1 %v821_v53 }
 0x26c   : > { %v3358_v54 = vpop.eup %3357 }
 0x26d   : > { %v824_v55 = vsel %vm808_vm4, %v3358_v54, 0.0 }
 0x26e   : > { %825 = vadd.xlane.f32.xlu1 %v824_v55 }
 0x2f7   : > { %v823_v7 = vpop.xlane.xlu1 %822 }
 0x2f8   : > { %3359 = vrcp.f32 %v823_v7 }
 0x2fb   : > { %v826_v8 = vpop.xlane.xlu1 %825 }
 0x2fc   : > { %3361 = vrcp.f32 %v826_v8 }
 0x302   : > { %v3360_v9 = vpop.eup %3359 }
 0x303   : > { %v829_v10 = vmul.f32 %v3360_v9, %v3356_v52 }
 0x305   : > { %3041 = vmatprep.mubr.msk.f32.mxu1 %vm808_vm4, %v829_v10  ;;  %v912_v10 = vld [vmem:[%s3865_s8] sm:$0xff] }
 0x306   : > { %v3362_v17 = vpop.eup %3361 }
 0x307   : > { %v830_v18 = vmul.f32 %v3362_v17, %v3358_v54  ;;  %v3273_v17 = vpack.c.bf16 %v2808_v16, %v2807_v11 }
 0x309   : > { %3042 = vmatmul.mubr.msk.f32.vlgmr.msra.gmra.mrb[4].mxu1 %vm808_vm4, %v830_v18  ;;  %v2809_v18 = vld [vmem:[%s3859_s2 + $0x50] sm:$0xff] }
 0x30a   : > { %3242 = vmatpush3.bf16.msra.mxu1 %v3239_v6  ;;  %3052 = vmatprep.mubr.msk.f32.mxu1 %vm454_vm0, %v3510_v13 }
 0x30b   : > { %3244 = vmatprep.subr.bf16.mxu1 %v3243_v19 }
 0x30e   : > { %3246 = vmatpush3.bf16.msra.mxu1 %v3243_v19  ;;  %v2810_v19 = vld [vmem:[%s3859_s2 + $0x58] sm:$0xff] }
 0x30f   : > { %3256 = vmatprep.subr.bf16.mxu1 %v3255_v40  ;;  %v3277_v20 = vpack.c.bf16 %v2810_v19, %v2809_v18 }
 0x311   : > { %3053 = vmatmul.mubr.msk.f32.vlgmr.msra.gmra.mrb[6].mxu1 %vm454_vm0, %v3516_v15 }
 0x312   : > { %3074 = vmatprep.mubr.msk.f32.mxu1 %vm454_vm0, %v3502_v12  ;;  %3258 = vmatpush3.bf16.msra.mxu1 %v3255_v40 }
 0x313   : > { %3260 = vmatprep.subr.bf16.mxu1 %v3259_v42 }
 0x316   : > { %3262 = vmatpush3.bf16.msra.mxu1 %v3259_v42 }
 0x319   : > { %3075 = vmatmul.mubr.msk.f32.vlgmr.msra.gmra.mrb[8].mxu1 %vm454_vm0, %v3512_v14 }
 0x3dc   : > { %v3623_v27 = vpop.f32.mrb[4].mxu1 }
 0x3dd   : > { %v3625_v28 = vpop.f32.mrb[5].mxu1 }
 0x3e4   : > { %v3054_v30 = vpop.f32.mrb[6].mxu1 }
 0x3e5   : > { %v992_v31 = vpop.f32.mrb[7].mxu1  ;;  %v998_v33 = vadd.f32 %v3054_v30, %v2777_v29  ;;  %v2818_v30 = vld [vmem:[%s3860_s3 + $0x58] sm:$0xff] }
 0x3e6   : > { %v993_v32 = vadd.f32 %v2777_v29, %v992_v31  ;;  %v2817_v29 = vld [vmem:[%s3860_s3 + $0x50] sm:$0xff] }
 0x3e7   : > { %v3285_v31 = vpack.c.bf16 %v2818_v30, %v2817_v29  ;;  %v2842_v30 = vld [vmem:[%s3859_s2 + $0x70] sm:$0xff] }
 0x3e8   : > { %3081 = vmatprep.mubr.msk.f32.mxu0 %vm714_vm1, %v993_v32 }
 0x3e9   : > { %3082 = vmatmul.mubr.msk.f32.vlgmr.msra.gmra.mrb[6].mxu0 %vm714_vm1, %v998_v33 }
 0x3ea   : > { %3092 = vmatpush3.msra.mxu0 %v2802_v3 }
 0x3eb   : > { %3096 = vmatprep.subr.mxu0 %v912_v10 }
 0x3ec   : > { %v3076_v61 = vpop.f32.mrb[8].mxu1 }
 0x3ed   : > { %v1168_v63 = vpop.f32.mrb[9].mxu1  ;;  %v1174_v0 = vadd.f32 %v3076_v61, %v2793_v62 }
 0x3ee   : > { %v1169_v1 = vadd.f32 %v2793_v62, %v1168_v63 }
 0x3f0   : > { %v3269_v2 = vpack.c.bf16 %v1174_v0, %v1169_v1 }
 0x3f2   : > { %3270 = vmatprep.subr.bf16.mxu1 %v3269_v2 }
 0x3f3   : > { %3272 = vmatpush3.bf16.msra.mxu1 %v3269_v2 }
 0x3f4   : > { %3274 = vmatprep.subr.bf16.mxu1 %v3273_v17 }
 0x4bc   : > { %v3083_v43 = vpop.f32.mrb[6].mxu0 }
 0x4bd   : > { %v1265_v44 = vmul.f32 0.35355338, %v3083_v43  ;;  %v1255_v45 = vpop.f32.mrb[7].mxu0 }
 0x4be   : > { %v1264_v46 = vmul.f32 0.35355338, %v1255_v45  ;;  %v2824_v45 = vld [vmem:[%s3861_s4 + $0x48] sm:$0xff] }
 0x4bf   : > { %v1267_v47 = vsel %vm805_vm5, -inf, %v1265_v44  ;;  %v2823_v44 = vld [vmem:[%s3861_s4 + $0x40] sm:$0xff] }
 0x4c0   : > { %v1271_v48 = vsel %vm808_vm4, %v1267_v47, -inf  ;;  %v1266_v49 = vsel %vm804_vm3, -inf, %v1264_v46  ;;  %v2825_v46 = vld [vmem:[%s3861_s4 + $0x50] sm:$0xff] }
 0x4c1   : > { %1272 = vmax.xlane.f32.xlu1 %v1271_v48  ;;  %v1268_v50 = vsel %vm808_vm4, %v1266_v49, -inf  ;;  %v2826_v48 = vld [vmem:[%s3861_s4 + $0x58] sm:$0xff] }
 0x4c2   : > { %1269 = vmax.xlane.f32.xlu0 %v1268_v50 }
 0x54e   : > { %v1273_v51 = vpop.xlane.xlu1 %1272 }
 0x54f   : > { %v1275_v52 = vsub.f32 %v1267_v47, %v1273_v51  ;;  %v1270_v53 = vpop.xlane.xlu0 %1269  ;;  %v3289_v47 = vpack.c.bf16 %v2824_v45, %v2823_v44  ;;  %v2853_v44 = vld [vmem:[%s3863_s6 + $0x3] ss:$0 sm:$0xff] }
 0x550   : > { %v1274_v54 = vsub.f32 %v1266_v49, %v1270_v53  ;;  %v3293_v49 = vpack.c.bf16 %v2826_v48, %v2825_v46 }
 0x551   : > { %v1278_v55 = vmul.f32 1.442695, %v1275_v52 }
 0x552   : > { %v1276_v56 = vmul.f32 1.442695, %v1274_v54 }
 0x553   : > { %3363 = vpow2.f32 %v1278_v55 }
 0x554   : > { %3365 = vpow2.f32 %v1276_v56 }
 0x55d   : > { %v3364_v57 = vpop.eup %3363 }
 0x55e   : > { %v3366_v58 = vpop.eup %3365  ;;  %v1283_v59 = vsel %vm808_vm4, %v3364_v57, 0.0 }
 0x55f   : > { %1284 = vadd.xlane.f32.xlu1 %v1283_v59  ;;  %v1280_v60 = vsel %vm808_vm4, %v3366_v58, 0.0 }
 0x560   : > { %1281 = vadd.xlane.f32.xlu0 %v1280_v60 }
 0x5ec   : > { %v1285_v4 = vpop.xlane.xlu1 %1284 }
 0x5ed   : > { %3367 = vrcp.f32 %v1285_v4  ;;  %v1282_v5 = vpop.xlane.xlu0 %1281 }
 0x5ee   : > { %3369 = vrcp.f32 %v1282_v5  ;;  %v2828_v5 = vld [vmem:[%s3864_s7 + $0x2] ss:$0 sm:$0xff] }
 0x5f7   : > { %v3368_v6 = vpop.eup %3367 }
 0x5f8   : > { %v3370_v7 = vpop.eup %3369  ;;  %v1289_v9 = vmul.f32 %v3368_v6, %v3364_v57 }
 0x5f9   : > { %v1288_v8 = vmul.f32 %v3370_v7, %v3366_v58 }
 0x5fb   : > { %3088 = vmatprep.mubr.msk.f32.mxu1 %vm808_vm4, %v1288_v8 }
 0x5fc   : > { %3089 = vmatmul.mubr.msk.f32.vlgmr.msra.gmra.mrb[10].mxu1 %vm808_vm4, %v1289_v9 }
 0x5fd   : > { %3109 = vmatprep.mubr.msk.f32.mxu1 %vm454_vm0, %v3510_v13  ;;  %3276 = vmatpush3.bf16.msra.mxu1 %v3273_v17 }
 0x5fe   : > { %3278 = vmatprep.subr.bf16.mxu1 %v3277_v20 }
 0x601   : > { %3280 = vmatpush3.bf16.msra.mxu1 %v3277_v20 }
 0x602   : > { %3290 = vmatprep.subr.bf16.mxu1 %v3289_v47 }
 0x604   : > { %3110 = vmatmul.mubr.msk.f32.vlgmr.msra.gmra.mrb[12].mxu1 %vm454_vm0, %v3516_v15 }
 0x605   : > { %3131 = vmatprep.mubr.msk.f32.mxu1 %vm454_vm0, %v3502_v12  ;;  %3292 = vmatpush3.bf16.msra.mxu1 %v3289_v47 }
 0x606   : > { %3294 = vmatprep.subr.bf16.mxu1 %v3293_v49 }
 0x609   : > { %3296 = vmatpush3.bf16.msra.mxu1 %v3293_v49  ;;  %v2856_v49 = vld [vmem:[%s3861_s4 + $0x60] sm:$0xff] }
 0x60c   : > { %3132 = vmatmul.mubr.msk.f32.vlgmr.msra.gmra.mrb[14].mxu1 %vm454_vm0, %v3512_v14 }
 0x6cf   : > { %v3090_v23 = vpop.f32.mrb[10].mxu1 }
 0x6d0   : > { %v1362_v25 = vpop.f32.mrb[11].mxu1 }
 0x6d1   : > { %3093 = vmatprep.mubr.msk.f32.mxu0 %vm714_vm1, %v1362_v25  ;;  %v2840_v25 = vld [vmem:[%s3859_s2 + $0x60] sm:$0xff] }
 0x6d2   : > { %3094 = vmatmul.mubr.msk.f32.vlgmr.msra.gmra.mrb[8].mxu0 %vm714_vm1, %v3090_v23  ;;  %v3315_v23 = vpack.c.bf16 %v2849_v22, %v2848_v21 }
 0x6d3   : > { %3097 = vmatpush3.msra.mxu0 %v912_v10  ;;  %3098 = vmatprep.mubr.msk.f32.mxu0 %vm714_vm1, %v3625_v28  ;;  %v2812_v28 = vld [vmem:[%s3862_s5 + $0x2] ss:$0 sm:$0xff]  ;;  %v2837_v10 = vld [vmem:[%s3865_s8 + $0x10] sm:$0xff] }
 0x6d4   : > { %3282 = vmatprep.subr.bf16.mxu0 %v3281_v26 }
 0x6d7   : > { %v3111_v32 = vpop.f32.mrb[12].mxu1 }
 0x6d8   : > { %v1620_v33 = vadd.f32 %v3111_v32, %v2812_v28  ;;  %v1614_v34 = vpop.f32.mrb[13].mxu1  ;;  %v2850_v32 = vld [vmem:[%s3860_s3 + $0x70] sm:$0xff] }
 0x6d9   : > { %v1615_v38 = vadd.f32 %v2812_v28, %v1614_v34 }
 0x6da   : > { %3099 = vmatmul.mubr.msk.f32.vlgmr.msra.gmra.mrb[8].mxu0 %vm714_vm1, %v3623_v27  ;;  %v2820_v27 = vld [vmem:[%s3863_s6 + $0x2] ss:$0 sm:$0xff] }
 0x6db   : > { %3284 = vmatpush3.bf16.msra.mxu0 %v3281_v26  ;;  %3120 = vmatprep.mubr.msk.f32.mxu0 %vm454_vm0, %v3502_v12  ;;  %v2841_v26 = vld [vmem:[%s3859_s2 + $0x68] sm:$0xff] }
 0x6dc   : > { %3286 = vmatprep.subr.bf16.mxu0 %v3285_v31  ;;  %v3307_v29 = vpack.c.bf16 %v2841_v26, %v2840_v25  ;;  %v2873_v25 = vld [vmem:[%s3866_s9] ss:$0 sm:$0xff] }
 0x6df   : > { %3288 = vmatpush3.bf16.msra.mxu0 %v3285_v31  ;;  %v3133_v4 = vpop.f32.mrb[14].mxu1  ;;  %v2843_v31 = vld [vmem:[%s3859_s2 + $0x78] sm:$0xff] }
 0x6e0   : > { %v1790_v6 = vpop.f32.mrb[15].mxu1  ;;  %v1796_v7 = vadd.f32 %v3133_v4, %v2828_v5  ;;  %v3311_v28 = vpack.c.bf16 %v2843_v31, %v2842_v30 }
 0x6e1   : > { %v1791_v8 = vadd.f32 %v2828_v5, %v1790_v6  ;;  %v2861_v5 = vld [vmem:[%s3864_s7 + $0x3] ss:$0 sm:$0xff] }
 0x6e2   : > { %3121 = vmatmul.mubr.msk.f32.vlgmr.msra.gmra.mrb[10].mxu0 %vm454_vm0, %v3512_v14 }
 0x6e3   : > { %3138 = vmatprep.mubr.msk.f32.mxu0 %vm714_vm1, %v1615_v38  ;;  %v3303_v9 = vpack.c.bf16 %v1796_v7, %v1791_v8 }
 0x6e5   : > { %3304 = vmatprep.subr.bf16.mxu1 %v3303_v9 }
 0x6e6   : > { %3306 = vmatpush3.bf16.msra.mxu1 %v3303_v9 }
 0x6e7   : > { %3308 = vmatprep.subr.bf16.mxu1 %v3307_v29 }
 0x7b5   : > { %v3122_v39 = vpop.f32.mrb[10].mxu0 }
 0x7b6   : > { %v1708_v40 = vadd.f32 %v3122_v39, %v2820_v27  ;;  %v1702_v41 = vpop.f32.mrb[11].mxu0  ;;  %v2845_v39 = vld [vmem:[%s3862_s5 + $0x3] ss:$0 sm:$0xff] }
 0x7b7   : > { %v1703_v42 = vadd.f32 %v2820_v27, %v1702_v41 }
 0x7b9   : > { %v3297_v43 = vpack.c.bf16 %v1708_v40, %v1703_v42 }
 0x7bb   : > { %3299 = vmatprep.subr.msk.bf16.mxu0 %vm3532_vm2, %v3297_v43 }
 0x7bc   : > { %3302 = vmatpush3.bf16.xpose.msk.msra.mxu0 %vm3532_vm2, %v3297_v43 }
 0x7bd   : > { %3148 = vmatprep.subr.mxu0 %v2837_v10 }
 0x7c3   : > { %3139 = vmatmul.mubr.msk.f32.vlgmr.msra.gmra.mrb[12].mxu0 %vm714_vm1, %v1620_v33  ;;  %v2851_v33 = vld [vmem:[%s3860_s3 + $0x78] sm:$0xff] }
 0x7c4   : > { %3149 = vmatpush3.msra.mxu0 %v2837_v10  ;;  %v3319_v27 = vpack.c.bf16 %v2851_v33, %v2850_v32  ;;  %v2870_v10 = vld [vmem:[%s3865_s8 + $0x18] sm:$0xff] }
 0x7c5   : > { %3316 = vmatprep.subr.bf16.mxu0 %v3315_v23 }
 0x896   : > { %v3140_v50 = vpop.f32.mrb[12].mxu0 }
 0x897   : > { %v1887_v51 = vmul.f32 0.35355338, %v3140_v50  ;;  %v1877_v52 = vpop.f32.mrb[13].mxu0  ;;  %v2857_v50 = vld [vmem:[%s3861_s4 + $0x68] sm:$0xff] }
 0x898   : > { %v1886_v53 = vmul.f32 0.35355338, %v1877_v52  ;;  %v3323_v52 = vpack.c.bf16 %v2857_v50, %v2856_v49  ;;  %v2874_v50 = vld [vmem:[%s3867_s10] ss:$0 sm:$0xff] }
 0x899   : > { %v1889_v54 = vsel %vm805_vm5, -inf, %v1887_v51  ;;  %v2858_v51 = vld [vmem:[%s3861_s4 + $0x70] sm:$0xff] }
 0x89a   : > { %v1893_v55 = vsel %vm808_vm4, %v1889_v54, -inf  ;;  %v1888_v56 = vsel %vm804_vm3, -inf, %v1886_v53  ;;  %v3327_v53 = vpack.c.bf16 %v2859_v24, %v2858_v51  ;;  %v2875_v24 = vld [vmem:[%s3868_s11] ss:$0 sm:$0xff] }
 0x89b   : > { %1894 = vmax.xlane.f32.xlu1 %v1893_v55  ;;  %v1890_v57 = vsel %vm808_vm4, %v1888_v56, -inf }
 0x89c   : > { %1891 = vmax.xlane.f32.xlu0 %v1890_v57 }
 0x928   : > { %v1895_v58 = vpop.xlane.xlu1 %1894 }
 0x929   : > { %v1897_v59 = vsub.f32 %v1889_v54, %v1895_v58  ;;  %v1892_v60 = vpop.xlane.xlu0 %1891 }
 0x92a   : > { %v1896_v61 = vsub.f32 %v1888_v56, %v1892_v60 }
 0x92b   : > { %v1900_v62 = vmul.f32 1.442695, %v1897_v59 }
 0x92c   : > { %v1898_v63 = vmul.f32 1.442695, %v1896_v61 }
 0x92d   : > { %3371 = vpow2.f32 %v1900_v62 }
 0x92e   : > { %3373 = vpow2.f32 %v1898_v63 }
 0x937   : > { %v3372_v0 = vpop.eup %3371 }
 0x938   : > { %v3374_v1 = vpop.eup %3373  ;;  %v1905_v2 = vsel %vm808_vm4, %v3372_v0, 0.0 }
 0x939   : > { %1906 = vadd.xlane.f32.xlu1 %v1905_v2  ;;  %v1902_v3 = vsel %vm808_vm4, %v3374_v1, 0.0 }
 0x93a   : > { %1903 = vadd.xlane.f32.xlu0 %v1902_v3 }
 0x9c6   : > { %v1907_v11 = vpop.xlane.xlu1 %1906 }
 0x9c7   : > { %3375 = vrcp.f32 %v1907_v11  ;;  %v1904_v16 = vpop.xlane.xlu0 %1903 }
 0x9c8   : > { %3377 = vrcp.f32 %v1904_v16 }
 0x9d1   : > { %v3376_v17 = vpop.eup %3375 }
 0x9d2   : > { %v3378_v18 = vpop.eup %3377  ;;  %v1911_v20 = vmul.f32 %v3376_v17, %v3372_v0 }
 0x9d3   : > { %v1910_v19 = vmul.f32 %v3378_v18, %v3374_v1 }
 0x9d5   : > { %3145 = vmatprep.mubr.msk.f32.mxu1 %vm808_vm4, %v1910_v19 }
 0x9d6   : > { %3146 = vmatmul.mubr.msk.f32.vlgmr.msra.gmra.mrb[16].mxu1 %vm808_vm4, %v1911_v20 }
 0x9d7   : > { %3161 = vmatprep.mubr.msk.f32.mxu1 %vm454_vm0, %v3510_v13  ;;  %3310 = vmatpush3.bf16.msra.mxu1 %v3307_v29 }
 0x9d8   : > { %3312 = vmatprep.subr.bf16.mxu1 %v3311_v28 }
 0x9db   : > { %3314 = vmatpush3.bf16.msra.mxu1 %v3311_v28 }
 0x9dc   : > { %3324 = vmatprep.subr.bf16.mxu1 %v3323_v52 }
 0x9de   : > { %3162 = vmatmul.mubr.msk.f32.vlgmr.msra.gmra.mrb[18].mxu1 %vm454_vm0, %v3516_v15 }
 0x9df   : > { %3183 = vmatprep.mubr.msk.f32.mxu1 %vm454_vm0, %v3502_v12  ;;  %3326 = vmatpush3.bf16.msra.mxu1 %v3323_v52 }
 0x9e0   : > { %3328 = vmatprep.subr.bf16.mxu1 %v3327_v53 }
 0x9e3   : > { %3330 = vmatpush3.bf16.msra.mxu1 %v3327_v53 }
 0x9e6   : > { %3184 = vmatmul.mubr.msk.f32.vlgmr.msra.gmra.mrb[20].mxu1 %vm454_vm0, %v3512_v14 }
 0xaa9   : > { %v3147_v34 = vpop.f32.mrb[16].mxu1 }
 0xaaa   : > { %v1984_v38 = vpop.f32.mrb[17].mxu1 }
 0xaab   : > { %3150 = vmatprep.mubr.msk.f32.mxu0 %vm714_vm1, %v1984_v38 }
 0xaac   : > { %3151 = vmatmul.mubr.msk.f32.vlgmr.msra.gmra.mrb[8].mxu0 %vm714_vm1, %v3147_v34 }
 0xaad   : > { %3318 = vmatpush3.bf16.msra.mxu0 %v3315_v23  ;;  %3172 = vmatprep.mubr.msk.f32.mxu0 %vm454_vm0, %v3502_v12 }
 0xaae   : > { %3320 = vmatprep.subr.bf16.mxu0 %v3319_v27 }
 0xab1   : > { %3322 = vmatpush3.bf16.msra.mxu0 %v3319_v27  ;;  %v3163_v40 = vpop.f32.mrb[18].mxu1 }
 0xab2   : > { %v2163_v41 = vadd.f32 %v3163_v40, %v2845_v39  ;;  %v2157_v42 = vpop.f32.mrb[19].mxu1 }
 0xab3   : > { %v2158_v43 = vadd.f32 %v2845_v39, %v2157_v42 }
 0xab4   : > { %3173 = vmatmul.mubr.msk.f32.vlgmr.msra.gmra.mrb[14].mxu0 %vm454_vm0, %v3512_v14 }
 0xab5   : > { %3190 = vmatprep.mubr.msk.f32.mxu0 %vm714_vm1, %v2158_v43 }
 0xab9   : > { %v3185_v36 = vpop.f32.mrb[20].mxu1 }
 0xaba   : > { %v2333_v6 = vpop.f32.mrb[21].mxu1  ;;  %v2339_v7 = vadd.f32 %v3185_v36, %v2861_v5 }
 0xabb   : > { %v2334_v8 = vadd.f32 %v2861_v5, %v2333_v6 }
 0xabd   : > { %v3337_v9 = vpack.c.bf16 %v2339_v7, %v2334_v8 }
 0xabf   : > { %3338 = vmatprep.subr.bf16.mxu1 %v3337_v9 }
 0xac0   : > { %3340 = vmatpush3.bf16.msra.mxu1 %v3337_v9 }
 0xb87   : > { %v3174_v12 = vpop.f32.mrb[14].mxu0 }
 0xb88   : > { %v2251_v45 = vadd.f32 %v3174_v12, %v2853_v44  ;;  %v2245_v46 = vpop.f32.mrb[15].mxu0 }
 0xb89   : > { %v2246_v47 = vadd.f32 %v2853_v44, %v2245_v46 }
 0xb8b   : > { %v3331_v48 = vpack.c.bf16 %v2251_v45, %v2246_v47 }
 0xb8d   : > { %3333 = vmatprep.subr.msk.bf16.mxu0 %vm3532_vm2, %v3331_v48 }
 0xb8e   : > { %3336 = vmatpush3.bf16.xpose.msk.msra.mxu0 %vm3532_vm2, %v3331_v48 }
 0xb8f   : > { %3200 = vmatprep.subr.mxu0 %v2870_v10 }
 0xb95   : > { %3191 = vmatmul.mubr.msk.f32.vlgmr.msra.gmra.mrb[16].mxu0 %vm714_vm1, %v2163_v41 }
 0xb96   : > { %3201 = vmatpush3.msra.mxu0 %v2870_v10 }
 0xc68   : > { %v3192_v54 = vpop.f32.mrb[16].mxu0 }
 0xc69   : > { %v2430_v55 = vmul.f32 0.35355338, %v3192_v54  ;;  %v2420_v56 = vpop.f32.mrb[17].mxu0 }
 0xc6a   : > { %v2429_v57 = vmul.f32 0.35355338, %v2420_v56 }
 0xc6b   : > { %v2432_v58 = vsel %vm805_vm5, -inf, %v2430_v55 }
 0xc6c   : > { %v2436_v59 = vsel %vm808_vm4, %v2432_v58, -inf  ;;  %v2431_v60 = vsel %vm804_vm3, -inf, %v2429_v57 }
 0xc6d   : > { %2437 = vmax.xlane.f32.xlu1 %v2436_v59  ;;  %v2433_v61 = vsel %vm808_vm4, %v2431_v60, -inf }
 0xc6e   : > { %2434 = vmax.xlane.f32.xlu0 %v2433_v61 }
 0xcfa   : > { %v2438_v62 = vpop.xlane.xlu1 %2437 }
 0xcfb   : > { %v2440_v14 = vsub.f32 %v2432_v58, %v2438_v62  ;;  %v2435_v63 = vpop.xlane.xlu0 %2434 }
 0xcfc   : > { %v2439_v0 = vsub.f32 %v2431_v60, %v2435_v63 }
 0xcfd   : > { %v2443_v1 = vmul.f32 1.442695, %v2440_v14 }
 0xcfe   : > { %v2441_v2 = vmul.f32 1.442695, %v2439_v0 }
 0xcff   : > { %3379 = vpow2.f32 %v2443_v1 }
 0xd00   : > { %3381 = vpow2.f32 %v2441_v2 }
 0xd09   : > { %v3380_v37 = vpop.eup %3379 }
 0xd0a   : > { %v3382_v3 = vpop.eup %3381  ;;  %v2448_v4 = vsel %vm808_vm4, %v3380_v37, 0.0 }
 0xd0b   : > { %2449 = vadd.xlane.f32.xlu1 %v2448_v4  ;;  %v2445_v35 = vsel %vm808_vm4, %v3382_v3, 0.0 }
 0xd0c   : > { %2446 = vadd.xlane.f32.xlu0 %v2445_v35 }
 0xd98   : > { %v2450_v11 = vpop.xlane.xlu1 %2449 }
 0xd99   : > { %3383 = vrcp.f32 %v2450_v11  ;;  %v2447_v16 = vpop.xlane.xlu0 %2446 }
 0xd9a   : > { %3385 = vrcp.f32 %v2447_v16 }
 0xda3   : > { %v3384_v17 = vpop.eup %3383 }
 0xda4   : > { %v3386_v18 = vpop.eup %3385  ;;  %v2454_v20 = vmul.f32 %v3384_v17, %v3380_v37 }
 0xda5   : > { %v2453_v19 = vmul.f32 %v3386_v18, %v3382_v3 }
 0xda7   : > { %3197 = vmatprep.mubr.msk.f32.mxu1 %vm808_vm4, %v2453_v19 }
 0xda8   : > { %3198 = vmatmul.mubr.msk.f32.vlgmr.msra.gmra.mrb[22].mxu1 %vm808_vm4, %v2454_v20 }
 0xe7b   : > { %v3199_v21 = vpop.f32.mrb[22].mxu1 }
 0xe7c   : > { %v2527_v22 = vpop.f32.mrb[23].mxu1 }
 0xe7d   : > { %3202 = vmatprep.mubr.msk.f32.mxu0 %vm714_vm1, %v2527_v22 }
 0xe7e   : > { %3203 = vmatmul.mubr.msk.f32.vlgmr.msra.gmra.mrb[8].mxu0 %vm714_vm1, %v3199_v21 }
 0xf51   : > { %v3204_v23 = vpop.f32.mrb[8].mxu0 }
 0xf52   : > { %v2622_v26 = vadd.f32 %v3204_v23, %v3516_v15  ;;  %v2610_v29 = vpop.f32.mrb[9].mxu0 }
 0xf53   : > { %v2621_v30 = vadd.f32 %v2610_v29, %v3510_v13 }
 0xf54   : > { %v2631_v31 = vadd.f32 %v2873_v25, %v2622_v26 }
 0xf55   : > { %v2630_v28 = vadd.f32 %v2873_v25, %v2621_v30 }
 0xf56   : > { %v2637_v32 = vsel %vm454_vm0, %v2631_v31, 0.0 }
 0xf57   : > { %2638 = vadd.xlane.f32.xlu1 %v2637_v32  ;;  %v2634_v33 = vsel %vm454_vm0, %v2630_v28, 0.0 }
 0xf58   : > { %2635 = vadd.xlane.f32.xlu0 %v2634_v33 }
 0xfe4   : > { %v2639_v34 = vpop.xlane.xlu1 %2638 }
 0xfe5   : > { %v2642_v38 = vmul.f32 0.03125, %v2639_v34  ;;  %v2636_v27 = vpop.xlane.xlu0 %2635 }
 0xfe6   : > { %v2641_v39 = vmul.f32 0.03125, %v2636_v27 }
 0xfe7   : > { %v2644_v40 = vsub.f32 %v2631_v31, %v2642_v38 }
 0xfe8   : > { %v2643_v41 = vsub.f32 %v2630_v28, %v2641_v39 }
 0xfe9   : > { %v2646_v42 = vmul.f32 %v2644_v40, %v2644_v40 }
 0xfea   : > { %v2645_v43 = vmul.f32 %v2643_v41, %v2643_v41 }
 0xfeb   : > { %v2650_v15 = vsel %vm454_vm0, %v2646_v42, 0.0 }
 0xfec   : > { %2651 = vadd.xlane.f32.xlu1 %v2650_v15  ;;  %v2647_v13 = vsel %vm454_vm0, %v2645_v43, 0.0 }
 0xfed   : > { %2648 = vadd.xlane.f32.xlu0 %v2647_v13 }
0x1079   : > { %v2652_v44 = vpop.xlane.xlu1 %2651 }
0x107a   : > { %v2654_v12 = vmul.f32 0.03125, %v2652_v44  ;;  %v2649_v45 = vpop.xlane.xlu0 %2648 }
0x107b   : > { %v2653_v46 = vmul.f32 0.03125, %v2649_v45 }
0x107c   : > { %v2656_v47 = vadd.f32 1e-05, %v2654_v12 }
0x107d   : > { %v2655_v48 = vadd.f32 1e-05, %v2653_v46 }
0x107e   : > { %3387 = vrsqrt.f32 %v2656_v47 }
0x107f   : > { %3389 = vrsqrt.f32 %v2655_v48 }
0x1088   : > { %v3388_v49 = vpop.eup %3387 }
0x1089   : > { %v3390_v51 = vpop.eup %3389  ;;  %v2660_v52 = vmul.f32 %v3388_v49, %v2644_v40 }
0x108a   : > { %v2659_v53 = vmul.f32 %v3390_v51, %v2643_v41 }
0x108b   : > { %v2668_v54 = vmul.f32 %v2874_v50, %v2660_v52 }
0x108c   : > { %v2667_v55 = vmul.f32 %v2874_v50, %v2659_v53 }
0x108d   : > { %v2676_v56 = vadd.f32 %v2875_v24, %v2668_v54 }
0x108e   : > { %v2675_v57 = vadd.f32 %v2875_v24, %v2667_v55 }
0x108f   : > { %2678 = vst.msk [vmem:[%s433_s19 + $0x8] sm:$0xff] %vm454_vm0, %v2676_v56 }
0x1090   : > { %2677 = vst.msk [vmem:[%s433_s19] sm:$0xff] %vm454_vm0, %v2675_v57 }
0x1091 PF: > { %s22_s21 = sadd.s32 1, %s3397_s21  }
0x1092   : > { %p19_p4 = scmp.ge.s32.totalorder %s22_s21, 4  }
0x1094   :  { %21 = sbr.rel (!%p19_p4) target bundleno = 1 (0x1), region = 122 }

</bundles_post_ra>
